<compile_context>
chip_gen: v6e
topology: v6e:2x2x1
jax: 0.10.0
libtpu: 0.0.40
codegen_flags: <defaults>
</compile_context>

<pallas_src>
import functools

import jax
import jax.numpy as jnp
from jax.experimental import pallas as pl
from jax.experimental.pallas import tpu as pltpu


def _round_up(x, m):
    return ((x + m - 1) // m) * m


def _vmem_capacity_bytes():
    """Physical VMEM per TensorCore; conservative fallback if undetectable."""
    try:
        return int(pltpu.get_tpu_info().vmem_capacity_bytes)
    except Exception:
        return 64 * 1024 * 1024  # v7x per-core size: safe lower bound


def _pick_t_block(seq_len, t_req):
    """Prefer a time-block that divides seq_len (no dead padded timesteps)."""
    t_req = max(1, min(t_req, seq_len))
    best = 1
    for tb in range(t_req, 0, -1):
        if seq_len % tb == 0:
            best = tb
            break
    # If the best divisor is much smaller than requested, accept a little
    # tail padding instead of losing the per-grid-step amortization.
    return best if best >= max(1, t_req // 2) else t_req


def _estimate_vmem_bytes(t_block, b_tile, ip, hp, single_buffer_weights):
    f32 = 4
    x_blk = t_block * b_tile * ip * f32
    out_blk = t_block * b_tile * hp * f32
    wmul = 1 if single_buffer_weights else 2
    weights = (ip * 3 * hp + 3 * hp + hp * 2 * hp + hp * hp) * f32 * wmul
    scratch = (b_tile * hp + t_block * b_tile * 3 * hp) * f32
    return 2 * (x_blk + out_blk) + weights + scratch


def _gru_kernel(x_ref, wx_ref, b_ref, whzr_ref, whh_ref, out_ref,
                h_scratch, xproj_scratch, *, hp, t_block, unroll):
    """One (batch_tile, time_block) grid step of the GRU recurrence.

    x_ref        : (t_block, b_tile, Ip)   raw inputs for this block
    wx_ref       : (Ip, 3*hp)              [W_xz | W_xr | W_xh]  (resident)
    b_ref        : (1, 3*hp)               [b_z  | b_r  | b_h ]  (resident)
    whzr_ref     : (hp, 2*hp)              [W_hz | W_hr]         (resident)
    whh_ref      : (hp, hp)                W_hh                  (resident)
    out_ref      : (t_block, b_tile, hp)   per-step hidden states
    h_scratch    : (b_tile, hp) f32        hidden state, persists over time axis
    xproj_scratch: (t_block, b_tile, 3*hp) f32
    """
    # Fresh hidden state at the first time-block of each batch tile.
    # NOTE: padded hidden lanes stay exactly zero only because H0 == 0 and
    # padded weight rows/cols are zero (a nonzero initial H would need masking).
    @pl.when(pl.program_id(1) == 0)
    def _():
        h_scratch[...] = jnp.zeros_like(h_scratch)

    b_tile = x_ref.shape[1]

    # Input-side projection X @ [Wxz|Wxr|Wxh] + b for the whole time block.
    # Done once per grid step (K = num_inputs is tiny), off the recurrent
    # critical path; avoids materializing xproj in HBM.
    Wx = wx_ref[...]
    bias = jnp.broadcast_to(b_ref[...], (b_tile, 3 * hp))  # hoisted broadcast
    for i in range(t_block):
        xproj_scratch[i] = (
            jnp.dot(x_ref[i], Wx, preferred_element_type=jnp.float32) + bias)

    Whzr = whzr_ref[...]
    Whh = whh_ref[...]

    def step(i, H):
        xp = xproj_scratch[i]                                       # (b_tile, 3*hp)
        zr = jnp.dot(H, Whzr, preferred_element_type=jnp.float32)   # (b_tile, 2*hp)
        ZR = jax.nn.sigmoid(xp[:, :2 * hp] + zr)                    # fused Z/R gates
        Z = ZR[:, :hp]
        R = ZR[:, hp:]
        H_tilde = jnp.tanh(
            xp[:, 2 * hp:]
            + jnp.dot(R * H, Whh, preferred_element_type=jnp.float32))
        H_new = H_tilde + Z * (H - H_tilde)           # == Z*H + (1-Z)*H_tilde
        out_ref[i] = H_new.astype(out_ref.dtype)
        return H_new

    # Partial unroll keeps LLO scheduling visibility without blowing the
    # 64-vreg file / spill traffic at large (b_tile, hp).
    h_scratch[...] = jax.lax.fori_loop(0, t_block, step, h_scratch[...],
                                       unroll=unroll)


def gru_scratch_forward(inputs, params, *, t_block=16):
    """inputs: (seq_len, batch, num_inputs) f32.

    Returns (outputs, H_final) with outputs (seq_len, batch, num_hiddens).
    Matches GRUScratch.forward with H=None (zero initial hidden state).
    """
    (W_xz, W_hz, b_z, W_xr, W_hr, b_r, W_xh, W_hh, b_h) = params
    S, B, I = inputs.shape
    Hd = W_xz.shape[1]

    # --- TPU-friendly padding / tiling ------------------------------------
    Hp = _round_up(Hd, 128)          # lane-dense hidden dim (unmasked vst)
    Ip = _round_up(I, 8)             # sublane-friendly input dim

    Bp8 = _round_up(B, 8)
    if Bp8 >= 16:
        # Keep at least 2 batch tiles so the "parallel" grid axis can shard
        # across TensorCores (v7x megacore); near-free on single-core chips.
        b_tile = min(128, _round_up(Bp8 // 2, 8))
    else:
        b_tile = Bp8

    t_block = _pick_t_block(S, t_block)

    # --- VMEM budget (per chip generation) and tile shrink -----------------
    capacity = _vmem_capacity_bytes()
    budget = int(capacity * 0.75)    # ~96 MiB on v5e/v6e, ~48 MiB on v7x
    while (_estimate_vmem_bytes(t_block, b_tile, Ip, Hp, True) > budget
           and t_block > 1):
        t_block = max(1, t_block // 2)
    while (_estimate_vmem_bytes(t_block, b_tile, Ip, Hp, True) > budget
           and b_tile > 8):
        b_tile = max(8, b_tile // 2)

    Bp = _round_up(B, b_tile)
    Sp = _round_up(S, t_block)
    n_b = Bp // b_tile
    n_t = Sp // t_block

    # --- Parameter packing (padded lanes stay exactly zero: H0 == 0 and
    # padded weight rows/cols are zero) --------------------------------------
    pad2 = lambda w, r, c: jnp.pad(w, ((0, r - w.shape[0]), (0, c - w.shape[1])))
    pad1 = lambda v, n: jnp.pad(v, (0, n - v.shape[0]))

    W_x_cat = jnp.concatenate(
        [pad2(W_xz, Ip, Hp), pad2(W_xr, Ip, Hp), pad2(W_xh, Ip, Hp)], axis=1)  # (Ip, 3*Hp)
    b_cat = jnp.concatenate(
        [pad1(b_z, Hp), pad1(b_r, Hp), pad1(b_h, Hp)]).reshape(1, 3 * Hp)      # (1, 3*Hp)
    W_hzr = jnp.concatenate([pad2(W_hz, Hp, Hp), pad2(W_hr, Hp, Hp)], axis=1)  # (Hp, 2*Hp)
    W_hh_p = pad2(W_hh, Hp, Hp)                                                # (Hp, Hp)

    x = jnp.pad(inputs.astype(jnp.float32),
                ((0, Sp - S), (0, Bp - B), (0, Ip - I)))                       # (Sp, Bp, Ip)

    kernel = functools.partial(_gru_kernel, hp=Hp, t_block=t_block,
                               unroll=min(8, t_block))

    def run(single_buffer_weights):
        w_kw = ({"pipeline_mode": pl.Buffered(1)}
                if single_buffer_weights else {})
        grid_spec = pltpu.PrefetchScalarGridSpec(
            num_scalar_prefetch=0,
            grid=(n_b, n_t),                 # (batch tiles ∥, time blocks seq)
            in_specs=[
                pl.BlockSpec((t_block, b_tile, Ip), lambda b, t: (t, b, 0)),
                pl.BlockSpec((Ip, 3 * Hp), lambda b, t: (0, 0), **w_kw),
                pl.BlockSpec((1, 3 * Hp), lambda b, t: (0, 0), **w_kw),
                pl.BlockSpec((Hp, 2 * Hp), lambda b, t: (0, 0), **w_kw),
                pl.BlockSpec((Hp, Hp), lambda b, t: (0, 0), **w_kw),
            ],
            out_specs=pl.BlockSpec((t_block, b_tile, Hp), lambda b, t: (t, b, 0)),
            scratch_shapes=[
                pltpu.VMEM((b_tile, Hp), jnp.float32),              # hidden state
                pltpu.VMEM((t_block, b_tile, 3 * Hp), jnp.float32),  # xproj
            ],
        )
        est = _estimate_vmem_bytes(t_block, b_tile, Ip, Hp, single_buffer_weights)
        vmem_limit = int(min(budget, max(32 * 1024 * 1024, 2 * est)))
        out = pl.pallas_call(
            kernel,
            out_shape=jax.ShapeDtypeStruct((Sp, Bp, Hp), jnp.float32),
            grid_spec=grid_spec,
            compiler_params=pltpu.CompilerParams(
                dimension_semantics=("parallel", "arbitrary"),  # batch ∥, time seq
                vmem_limit_bytes=vmem_limit),
        )(x, W_x_cat, b_cat, W_hzr, W_hh_p)
        return jax.block_until_ready(out)

    try:
        outputs_full = run(True)
    except Exception:
        # Fallback if this JAX version rejects pipeline_mode=pl.Buffered(1)
        # (single-buffered resident weights): use default double buffering.
        outputs_full = run(False)

    outputs = outputs_full[:S, :B, :Hd]
    h_final = outputs[-1]
    return outputs, h_final


def gru_reference(inputs, params):
    """Pure-JAX reference mirroring the PyTorch forward exactly."""
    (W_xz, W_hz, b_z, W_xr, W_hr, b_r, W_xh, W_hh, b_h) = params
    S, B, _ = inputs.shape
    Hd = W_xz.shape[1]
    H = jnp.zeros((B, Hd), jnp.float32)
    outs = []
    for s in range(S):
        X = inputs[s]
        Z = jax.nn.sigmoid(X @ W_xz + H @ W_hz + b_z)
        R = jax.nn.sigmoid(X @ W_xr + H @ W_hr + b_r)
        H_tilde = jnp.tanh(X @ W_xh + (R * H) @ W_hh + b_h)
        H = Z * H + (1 - Z) * H_tilde
        outs.append(H)
    return jnp.stack(outs, axis=0), H


def init_params(key, num_inputs, num_hiddens, sigma=0.01):
    ks = jax.random.split(key, 6)

    def w(k, *shape):
        return jax.random.normal(k, shape, jnp.float32) * sigma

    W_xz = w(ks[0], num_inputs, num_hiddens)
    W_hz = w(ks[1], num_hiddens, num_hiddens)
    b_z = jnp.zeros((num_hiddens,), jnp.float32)
    W_xr = w(ks[2], num_inputs, num_hiddens)
    W_hr = w(ks[3], num_hiddens, num_hiddens)
    b_r = jnp.zeros((num_hiddens,), jnp.float32)
    W_xh = w(ks[4], num_inputs, num_hiddens)
    W_hh = w(ks[5], num_hiddens, num_hiddens)
    b_h = jnp.zeros((num_hiddens,), jnp.float32)
    return (W_xz, W_hz, b_z, W_xr, W_hr, b_r, W_xh, W_hh, b_h)


if __name__ == "__main__":
    key = jax.random.PRNGKey(0)
    k_in, k_par = jax.random.split(key)

    seq_len, batch, num_inputs, num_hiddens = 8, 8, 16, 32
    inputs = jax.random.normal(k_in, (seq_len, batch, num_inputs), jnp.float32)
    params = init_params(k_par, num_inputs, num_hiddens)

    outputs, h_final = gru_scratch_forward(inputs, params)
    outputs, h_final = jax.block_until_ready((outputs, h_final))

    ref_out, ref_h = gru_reference(inputs, params)
    assert jnp.allclose(outputs, ref_out, atol=1e-5, rtol=1e-5)
    assert jnp.allclose(h_final, ref_h, atol=1e-5, rtol=1e-5)

    print("KERNEL_OK")
</pallas_src>

<mosaic_0001>
module attributes {stable_mosaic.version = 11 : i64} {
  func.func @_gru_kernel(%arg0: i32, %arg1: i32, %arg2: memref<8x8x16xf32, #tpu.memory_space<vmem>>, %arg3: memref<16x384xf32, #tpu.memory_space<vmem>>, %arg4: memref<1x384xf32, #tpu.memory_space<vmem>>, %arg5: memref<128x256xf32, #tpu.memory_space<vmem>>, %arg6: memref<128x128xf32, #tpu.memory_space<vmem>>, %arg7: memref<8x8x128xf32, #tpu.memory_space<vmem>>, %arg8: memref<8x128xf32, #tpu.memory_space<vmem>>, %arg9: memref<8x8x384xf32, #tpu.memory_space<vmem>>) attributes {dimension_semantics = [#tpu.dimension_semantics<parallel>, #tpu.dimension_semantics<arbitrary>], iteration_bounds = array<i64: 1, 1>, scalar_prefetch = 0 : i64, scratch_operands = 2 : i64, tpu.core_type = #tpu.core_type<tc>, window_params = [{transform_indices = @transform_0, window_bounds = array<i64: 8, 8, 16>}, {pipeline_mode = #tpu.pipeline_mode<synchronous>, transform_indices = @transform_1, window_bounds = array<i64: 16, 384>}, {pipeline_mode = #tpu.pipeline_mode<synchronous>, transform_indices = @transform_2, window_bounds = array<i64: 1, 384>}, {pipeline_mode = #tpu.pipeline_mode<synchronous>, transform_indices = @transform_3, window_bounds = array<i64: 128, 256>}, {pipeline_mode = #tpu.pipeline_mode<synchronous>, transform_indices = @transform_4, window_bounds = array<i64: 128, 128>}, {transform_indices = @transform_5, window_bounds = array<i64: 8, 8, 128>}]} {
    %c0_i32 = arith.constant 0 : i32
    %0 = arith.cmpi eq, %arg1, %c0_i32 : i32
    %1 = arith.extui %0 : i1 to i32
    %c0_i32_0 = arith.constant 0 : i32
    %2 = arith.cmpi ne, %1, %c0_i32_0 : i32
    scf.if %2 {
      %cst_117 = arith.constant 0.000000e+00 : f32
      %267 = vector.broadcast %cst_117 : f32 to vector<8x128xf32>
      %c0_118 = arith.constant 0 : index
      %c0_119 = arith.constant 0 : index
      %268 = vector.load %arg8[%c0_118, %c0_119] : memref<8x128xf32, #tpu.memory_space<vmem>>, vector<8x128xf32>
      tpu.vector_store %arg8[%c0_118, %c0_119], %267 {strides = array<i32>} : memref<8x128xf32, #tpu.memory_space<vmem>>, vector<8x128xf32>,
    } else {
    }
    %c0 = arith.constant 0 : index
    %c0_1 = arith.constant 0 : index
    %3 = vector.load %arg3[%c0, %c0_1] : memref<16x384xf32, #tpu.memory_space<vmem>>, vector<16x384xf32>
    %c0_2 = arith.constant 0 : index
    %c0_3 = arith.constant 0 : index
    %4 = vector.load %arg4[%c0_2, %c0_3] : memref<1x384xf32, #tpu.memory_space<vmem>>, vector<1x384xf32>
    %5 = vector.shape_cast %4 : vector<1x384xf32> to vector<1x384xf32>
    %6 = vector.broadcast %5 : vector<1x384xf32> to vector<8x384xf32>
    %c0_4 = arith.constant 0 : index
    %c0_5 = arith.constant 0 : index
    %c0_6 = arith.constant 0 : index
    %7 = vector.load %arg2[%c0_4, %c0_5, %c0_6] : memref<8x8x16xf32, #tpu.memory_space<vmem>>, vector<1x8x16xf32>
    %8 = vector.shape_cast %7 : vector<1x8x16xf32> to vector<8x16xf32>
    %cst = arith.constant dense<0.000000e+00> : vector<8x384xf32>
    %9 = tpu.matmul %8, %3, %cst {dimension_numbers = #tpu.dot_dimension_numbers<[1], [0], [0], [1], [0, 0, 1, 1], [], []>} : vector<8x16xf32>, vector<16x384xf32>, vector<8x384xf32> -> vector<8x384xf32>
    %10 = arith.addf %9, %6 : vector<8x384xf32>
    %c0_7 = arith.constant 0 : index
    %c0_8 = arith.constant 0 : index
    %c0_9 = arith.constant 0 : index
    %11 = vector.load %arg9[%c0_7, %c0_8, %c0_9] : memref<8x8x384xf32, #tpu.memory_space<vmem>>, vector<1x8x384xf32>
    %12 = vector.shape_cast %11 : vector<1x8x384xf32> to vector<8x384xf32>
    %13 = vector.shape_cast %10 : vector<8x384xf32> to vector<1x8x384xf32>
    tpu.vector_store %arg9[%c0_7, %c0_8, %c0_9], %13 {strides = array<i32>} : memref<8x8x384xf32, #tpu.memory_space<vmem>>, vector<1x8x384xf32>,
    %c1 = arith.constant 1 : index
    %c0_10 = arith.constant 0 : index
    %c0_11 = arith.constant 0 : index
    %14 = vector.load %arg2[%c1, %c0_10, %c0_11] : memref<8x8x16xf32, #tpu.memory_space<vmem>>, vector<1x8x16xf32>
    %15 = vector.shape_cast %14 : vector<1x8x16xf32> to vector<8x16xf32>
    %cst_12 = arith.constant dense<0.000000e+00> : vector<8x384xf32>
    %16 = tpu.matmul %15, %3, %cst_12 {dimension_numbers = #tpu.dot_dimension_numbers<[1], [0], [0], [1], [0, 0, 1, 1], [], []>} : vector<8x16xf32>, vector<16x384xf32>, vector<8x384xf32> -> vector<8x384xf32>
    %17 = arith.addf %16, %6 : vector<8x384xf32>
    %c1_13 = arith.constant 1 : index
    %c0_14 = arith.constant 0 : index
    %c0_15 = arith.constant 0 : index
    %18 = vector.load %arg9[%c1_13, %c0_14, %c0_15] : memref<8x8x384xf32, #tpu.memory_space<vmem>>, vector<1x8x384xf32>
    %19 = vector.shape_cast %18 : vector<1x8x384xf32> to vector<8x384xf32>
    %20 = vector.shape_cast %17 : vector<8x384xf32> to vector<1x8x384xf32>
    tpu.vector_store %arg9[%c1_13, %c0_14, %c0_15], %20 {strides = array<i32>} : memref<8x8x384xf32, #tpu.memory_space<vmem>>, vector<1x8x384xf32>,
    %c2 = arith.constant 2 : index
    %c0_16 = arith.constant 0 : index
    %c0_17 = arith.constant 0 : index
    %21 = vector.load %arg2[%c2, %c0_16, %c0_17] : memref<8x8x16xf32, #tpu.memory_space<vmem>>, vector<1x8x16xf32>
    %22 = vector.shape_cast %21 : vector<1x8x16xf32> to vector<8x16xf32>
    %cst_18 = arith.constant dense<0.000000e+00> : vector<8x384xf32>
    %23 = tpu.matmul %22, %3, %cst_18 {dimension_numbers = #tpu.dot_dimension_numbers<[1], [0], [0], [1], [0, 0, 1, 1], [], []>} : vector<8x16xf32>, vector<16x384xf32>, vector<8x384xf32> -> vector<8x384xf32>
    %24 = arith.addf %23, %6 : vector<8x384xf32>
    %c2_19 = arith.constant 2 : index
    %c0_20 = arith.constant 0 : index
    %c0_21 = arith.constant 0 : index
    %25 = vector.load %arg9[%c2_19, %c0_20, %c0_21] : memref<8x8x384xf32, #tpu.memory_space<vmem>>, vector<1x8x384xf32>
    %26 = vector.shape_cast %25 : vector<1x8x384xf32> to vector<8x384xf32>
    %27 = vector.shape_cast %24 : vector<8x384xf32> to vector<1x8x384xf32>
    tpu.vector_store %arg9[%c2_19, %c0_20, %c0_21], %27 {strides = array<i32>} : memref<8x8x384xf32, #tpu.memory_space<vmem>>, vector<1x8x384xf32>,
    %c3 = arith.constant 3 : index
    %c0_22 = arith.constant 0 : index
    %c0_23 = arith.constant 0 : index
    %28 = vector.load %arg2[%c3, %c0_22, %c0_23] : memref<8x8x16xf32, #tpu.memory_space<vmem>>, vector<1x8x16xf32>
    %29 = vector.shape_cast %28 : vector<1x8x16xf32> to vector<8x16xf32>
    %cst_24 = arith.constant dense<0.000000e+00> : vector<8x384xf32>
    %30 = tpu.matmul %29, %3, %cst_24 {dimension_numbers = #tpu.dot_dimension_numbers<[1], [0], [0], [1], [0, 0, 1, 1], [], []>} : vector<8x16xf32>, vector<16x384xf32>, vector<8x384xf32> -> vector<8x384xf32>
    %31 = arith.addf %30, %6 : vector<8x384xf32>
    %c3_25 = arith.constant 3 : index
    %c0_26 = arith.constant 0 : index
    %c0_27 = arith.constant 0 : index
    %32 = vector.load %arg9[%c3_25, %c0_26, %c0_27] : memref<8x8x384xf32, #tpu.memory_space<vmem>>, vector<1x8x384xf32>
    %33 = vector.shape_cast %32 : vector<1x8x384xf32> to vector<8x384xf32>
    %34 = vector.shape_cast %31 : vector<8x384xf32> to vector<1x8x384xf32>
    tpu.vector_store %arg9[%c3_25, %c0_26, %c0_27], %34 {strides = array<i32>} : memref<8x8x384xf32, #tpu.memory_space<vmem>>, vector<1x8x384xf32>,
    %c4 = arith.constant 4 : index
    %c0_28 = arith.constant 0 : index
    %c0_29 = arith.constant 0 : index
    %35 = vector.load %arg2[%c4, %c0_28, %c0_29] : memref<8x8x16xf32, #tpu.memory_space<vmem>>, vector<1x8x16xf32>
    %36 = vector.shape_cast %35 : vector<1x8x16xf32> to vector<8x16xf32>
    %cst_30 = arith.constant dense<0.000000e+00> : vector<8x384xf32>
    %37 = tpu.matmul %36, %3, %cst_30 {dimension_numbers = #tpu.dot_dimension_numbers<[1], [0], [0], [1], [0, 0, 1, 1], [], []>} : vector<8x16xf32>, vector<16x384xf32>, vector<8x384xf32> -> vector<8x384xf32>
    %38 = arith.addf %37, %6 : vector<8x384xf32>
    %c4_31 = arith.constant 4 : index
    %c0_32 = arith.constant 0 : index
    %c0_33 = arith.constant 0 : index
    %39 = vector.load %arg9[%c4_31, %c0_32, %c0_33] : memref<8x8x384xf32, #tpu.memory_space<vmem>>, vector<1x8x384xf32>
    %40 = vector.shape_cast %39 : vector<1x8x384xf32> to vector<8x384xf32>
    %41 = vector.shape_cast %38 : vector<8x384xf32> to vector<1x8x384xf32>
    tpu.vector_store %arg9[%c4_31, %c0_32, %c0_33], %41 {strides = array<i32>} : memref<8x8x384xf32, #tpu.memory_space<vmem>>, vector<1x8x384xf32>,
    %c5 = arith.constant 5 : index
    %c0_34 = arith.constant 0 : index
    %c0_35 = arith.constant 0 : index
    %42 = vector.load %arg2[%c5, %c0_34, %c0_35] : memref<8x8x16xf32, #tpu.memory_space<vmem>>, vector<1x8x16xf32>
    %43 = vector.shape_cast %42 : vector<1x8x16xf32> to vector<8x16xf32>
    %cst_36 = arith.constant dense<0.000000e+00> : vector<8x384xf32>
    %44 = tpu.matmul %43, %3, %cst_36 {dimension_numbers = #tpu.dot_dimension_numbers<[1], [0], [0], [1], [0, 0, 1, 1], [], []>} : vector<8x16xf32>, vector<16x384xf32>, vector<8x384xf32> -> vector<8x384xf32>
    %45 = arith.addf %44, %6 : vector<8x384xf32>
    %c5_37 = arith.constant 5 : index
    %c0_38 = arith.constant 0 : index
    %c0_39 = arith.constant 0 : index
    %46 = vector.load %arg9[%c5_37, %c0_38, %c0_39] : memref<8x8x384xf32, #tpu.memory_space<vmem>>, vector<1x8x384xf32>
    %47 = vector.shape_cast %46 : vector<1x8x384xf32> to vector<8x384xf32>
    %48 = vector.shape_cast %45 : vector<8x384xf32> to vector<1x8x384xf32>
    tpu.vector_store %arg9[%c5_37, %c0_38, %c0_39], %48 {strides = array<i32>} : memref<8x8x384xf32, #tpu.memory_space<vmem>>, vector<1x8x384xf32>,
    %c6 = arith.constant 6 : index
    %c0_40 = arith.constant 0 : index
    %c0_41 = arith.constant 0 : index
    %49 = vector.load %arg2[%c6, %c0_40, %c0_41] : memref<8x8x16xf32, #tpu.memory_space<vmem>>, vector<1x8x16xf32>
    %50 = vector.shape_cast %49 : vector<1x8x16xf32> to vector<8x16xf32>
    %cst_42 = arith.constant dense<0.000000e+00> : vector<8x384xf32>
    %51 = tpu.matmul %50, %3, %cst_42 {dimension_numbers = #tpu.dot_dimension_numbers<[1], [0], [0], [1], [0, 0, 1, 1], [], []>} : vector<8x16xf32>, vector<16x384xf32>, vector<8x384xf32> -> vector<8x384xf32>
    %52 = arith.addf %51, %6 : vector<8x384xf32>
    %c6_43 = arith.constant 6 : index
    %c0_44 = arith.constant 0 : index
    %c0_45 = arith.constant 0 : index
    %53 = vector.load %arg9[%c6_43, %c0_44, %c0_45] : memref<8x8x384xf32, #tpu.memory_space<vmem>>, vector<1x8x384xf32>
    %54 = vector.shape_cast %53 : vector<1x8x384xf32> to vector<8x384xf32>
    %55 = vector.shape_cast %52 : vector<8x384xf32> to vector<1x8x384xf32>
    tpu.vector_store %arg9[%c6_43, %c0_44, %c0_45], %55 {strides = array<i32>} : memref<8x8x384xf32, #tpu.memory_space<vmem>>, vector<1x8x384xf32>,
    %c7 = arith.constant 7 : index
    %c0_46 = arith.constant 0 : index
    %c0_47 = arith.constant 0 : index
    %56 = vector.load %arg2[%c7, %c0_46, %c0_47] : memref<8x8x16xf32, #tpu.memory_space<vmem>>, vector<1x8x16xf32>
    %57 = vector.shape_cast %56 : vector<1x8x16xf32> to vector<8x16xf32>
    %cst_48 = arith.constant dense<0.000000e+00> : vector<8x384xf32>
    %58 = tpu.matmul %57, %3, %cst_48 {dimension_numbers = #tpu.dot_dimension_numbers<[1], [0], [0], [1], [0, 0, 1, 1], [], []>} : vector<8x16xf32>, vector<16x384xf32>, vector<8x384xf32> -> vector<8x384xf32>
    %59 = arith.addf %58, %6 : vector<8x384xf32>
    %c7_49 = arith.constant 7 : index
    %c0_50 = arith.constant 0 : index
    %c0_51 = arith.constant 0 : index
    %60 = vector.load %arg9[%c7_49, %c0_50, %c0_51] : memref<8x8x384xf32, #tpu.memory_space<vmem>>, vector<1x8x384xf32>
    %61 = vector.shape_cast %60 : vector<1x8x384xf32> to vector<8x384xf32>
    %62 = vector.shape_cast %59 : vector<8x384xf32> to vector<1x8x384xf32>
    tpu.vector_store %arg9[%c7_49, %c0_50, %c0_51], %62 {strides = array<i32>} : memref<8x8x384xf32, #tpu.memory_space<vmem>>, vector<1x8x384xf32>,
    %c0_52 = arith.constant 0 : index
    %c0_53 = arith.constant 0 : index
    %63 = vector.load %arg5[%c0_52, %c0_53] : memref<128x256xf32, #tpu.memory_space<vmem>>, vector<128x256xf32>
    %c0_54 = arith.constant 0 : index
    %c0_55 = arith.constant 0 : index
    %64 = vector.load %arg6[%c0_54, %c0_55] : memref<128x128xf32, #tpu.memory_space<vmem>>, vector<128x128xf32>
    %c0_56 = arith.constant 0 : index
    %c0_57 = arith.constant 0 : index
    %65 = vector.load %arg8[%c0_56, %c0_57] : memref<8x128xf32, #tpu.memory_space<vmem>>, vector<8x128xf32>
    %c0_i32_58 = arith.constant 0 : i32
    %66 = arith.index_cast %c0_i32_58 : i32 to index
    %c0_59 = arith.constant 0 : index
    %c0_60 = arith.constant 0 : index
    %67 = vector.load %arg9[%66, %c0_59, %c0_60] : memref<8x8x384xf32, #tpu.memory_space<vmem>>, vector<1x8x384xf32>
    %68 = vector.shape_cast %67 : vector<1x8x384xf32> to vector<8x384xf32>
    %cst_61 = arith.constant dense<0.000000e+00> : vector<8x256xf32>
    %69 = tpu.matmul %65, %63, %cst_61 {dimension_numbers = #tpu.dot_dimension_numbers<[1], [0], [0], [1], [0, 0, 1, 1], [], []>} : vector<8x128xf32>, vector<128x256xf32>, vector<8x256xf32> -> vector<8x256xf32>
    %70 = vector.extract_strided_slice %68 {offsets = [0, 0], sizes = [8, 256], strides = [1, 1]} : vector<8x384xf32> to vector<8x256xf32>
    %71 = arith.addf %70, %69 : vector<8x256xf32>
    %72 = arith.negf %71 : vector<8x256xf32>
    %73 = math.exp %72 : vector<8x256xf32>
    %cst_62 = arith.constant 1.000000e+00 : f32
    %74 = vector.broadcast %cst_62 : f32 to vector<8x256xf32>
    %75 = arith.addf %74, %73 : vector<8x256xf32>
    %76 = arith.divf %74, %75 : vector<8x256xf32>
    %77 = vector.extract_strided_slice %76 {offsets = [0, 0], sizes = [8, 128], strides = [1, 1]} : vector<8x256xf32> to vector<8x128xf32>
    %78 = vector.extract_strided_slice %76 {offsets = [0, 128], sizes = [8, 128], strides = [1, 1]} : vector<8x256xf32> to vector<8x128xf32>
    %79 = vector.extract_strided_slice %68 {offsets = [0, 256], sizes = [8, 128], strides = [1, 1]} : vector<8x384xf32> to vector<8x128xf32>
    %80 = arith.mulf %78, %65 : vector<8x128xf32>
    %cst_63 = arith.constant dense<0.000000e+00> : vector<8x128xf32>
    %81 = tpu.matmul %80, %64, %cst_63 {dimension_numbers = #tpu.dot_dimension_numbers<[1], [0], [0], [1], [0, 0, 1, 1], [], []>} : vector<8x128xf32>, vector<128x128xf32>, vector<8x128xf32> -> vector<8x128xf32>
    %82 = arith.addf %79, %81 : vector<8x128xf32>
    %83 = math.tanh %82 : vector<8x128xf32>
    %84 = arith.subf %65, %83 : vector<8x128xf32>
    %85 = arith.mulf %77, %84 : vector<8x128xf32>
    %86 = arith.addf %83, %85 : vector<8x128xf32>
    %87 = arith.index_cast %c0_i32_58 : i32 to index
    %c0_64 = arith.constant 0 : index
    %c0_65 = arith.constant 0 : index
    %88 = vector.load %arg7[%87, %c0_64, %c0_65] : memref<8x8x128xf32, #tpu.memory_space<vmem>>, vector<1x8x128xf32>
    %89 = vector.shape_cast %88 : vector<1x8x128xf32> to vector<8x128xf32>
    %90 = vector.shape_cast %86 : vector<8x128xf32> to vector<1x8x128xf32>
    tpu.vector_store %arg7[%87, %c0_64, %c0_65], %90 {strides = array<i32>} : memref<8x8x128xf32, #tpu.memory_space<vmem>>, vector<1x8x128xf32>,
    %c1_i32 = arith.constant 1 : i32
    %91 = arith.index_cast %c1_i32 : i32 to index
    %c0_66 = arith.constant 0 : index
    %c0_67 = arith.constant 0 : index
    %92 = vector.load %arg9[%91, %c0_66, %c0_67] : memref<8x8x384xf32, #tpu.memory_space<vmem>>, vector<1x8x384xf32>
    %93 = vector.shape_cast %92 : vector<1x8x384xf32> to vector<8x384xf32>
    %cst_68 = arith.constant dense<0.000000e+00> : vector<8x256xf32>
    %94 = tpu.matmul %86, %63, %cst_68 {dimension_numbers = #tpu.dot_dimension_numbers<[1], [0], [0], [1], [0, 0, 1, 1], [], []>} : vector<8x128xf32>, vector<128x256xf32>, vector<8x256xf32> -> vector<8x256xf32>
    %95 = vector.extract_strided_slice %93 {offsets = [0, 0], sizes = [8, 256], strides = [1, 1]} : vector<8x384xf32> to vector<8x256xf32>
    %96 = arith.addf %95, %94 : vector<8x256xf32>
    %97 = arith.negf %96 : vector<8x256xf32>
    %98 = math.exp %97 : vector<8x256xf32>
    %cst_69 = arith.constant 1.000000e+00 : f32
    %99 = vector.broadcast %cst_69 : f32 to vector<8x256xf32>
    %100 = arith.addf %99, %98 : vector<8x256xf32>
    %101 = arith.divf %99, %100 : vector<8x256xf32>
    %102 = vector.extract_strided_slice %101 {offsets = [0, 0], sizes = [8, 128], strides = [1, 1]} : vector<8x256xf32> to vector<8x128xf32>
    %103 = vector.extract_strided_slice %101 {offsets = [0, 128], sizes = [8, 128], strides = [1, 1]} : vector<8x256xf32> to vector<8x128xf32>
    %104 = vector.extract_strided_slice %93 {offsets = [0, 256], sizes = [8, 128], strides = [1, 1]} : vector<8x384xf32> to vector<8x128xf32>
    %105 = arith.mulf %103, %86 : vector<8x128xf32>
    %cst_70 = arith.constant dense<0.000000e+00> : vector<8x128xf32>
    %106 = tpu.matmul %105, %64, %cst_70 {dimension_numbers = #tpu.dot_dimension_numbers<[1], [0], [0], [1], [0, 0, 1, 1], [], []>} : vector<8x128xf32>, vector<128x128xf32>, vector<8x128xf32> -> vector<8x128xf32>
    %107 = arith.addf %104, %106 : vector<8x128xf32>
    %108 = math.tanh %107 : vector<8x128xf32>
    %109 = arith.subf %86, %108 : vector<8x128xf32>
    %110 = arith.mulf %102, %109 : vector<8x128xf32>
    %111 = arith.addf %108, %110 : vector<8x128xf32>
    %112 = arith.index_cast %c1_i32 : i32 to index
    %c0_71 = arith.constant 0 : index
    %c0_72 = arith.constant 0 : index
    %113 = vector.load %arg7[%112, %c0_71, %c0_72] : memref<8x8x128xf32, #tpu.memory_space<vmem>>, vector<1x8x128xf32>
    %114 = vector.shape_cast %113 : vector<1x8x128xf32> to vector<8x128xf32>
    %115 = vector.shape_cast %111 : vector<8x128xf32> to vector<1x8x128xf32>
    tpu.vector_store %arg7[%112, %c0_71, %c0_72], %115 {strides = array<i32>} : memref<8x8x128xf32, #tpu.memory_space<vmem>>, vector<1x8x128xf32>,
    %c2_i32 = arith.constant 2 : i32
    %116 = arith.index_cast %c2_i32 : i32 to index
    %c0_73 = arith.constant 0 : index
    %c0_74 = arith.constant 0 : index
    %117 = vector.load %arg9[%116, %c0_73, %c0_74] : memref<8x8x384xf32, #tpu.memory_space<vmem>>, vector<1x8x384xf32>
    %118 = vector.shape_cast %117 : vector<1x8x384xf32> to vector<8x384xf32>
    %cst_75 = arith.constant dense<0.000000e+00> : vector<8x256xf32>
    %119 = tpu.matmul %111, %63, %cst_75 {dimension_numbers = #tpu.dot_dimension_numbers<[1], [0], [0], [1], [0, 0, 1, 1], [], []>} : vector<8x128xf32>, vector<128x256xf32>, vector<8x256xf32> -> vector<8x256xf32>
    %120 = vector.extract_strided_slice %118 {offsets = [0, 0], sizes = [8, 256], strides = [1, 1]} : vector<8x384xf32> to vector<8x256xf32>
    %121 = arith.addf %120, %119 : vector<8x256xf32>
    %122 = arith.negf %121 : vector<8x256xf32>
    %123 = math.exp %122 : vector<8x256xf32>
    %cst_76 = arith.constant 1.000000e+00 : f32
    %124 = vector.broadcast %cst_76 : f32 to vector<8x256xf32>
    %125 = arith.addf %124, %123 : vector<8x256xf32>
    %126 = arith.divf %124, %125 : vector<8x256xf32>
    %127 = vector.extract_strided_slice %126 {offsets = [0, 0], sizes = [8, 128], strides = [1, 1]} : vector<8x256xf32> to vector<8x128xf32>
    %128 = vector.extract_strided_slice %126 {offsets = [0, 128], sizes = [8, 128], strides = [1, 1]} : vector<8x256xf32> to vector<8x128xf32>
    %129 = vector.extract_strided_slice %118 {offsets = [0, 256], sizes = [8, 128], strides = [1, 1]} : vector<8x384xf32> to vector<8x128xf32>
    %130 = arith.mulf %128, %111 : vector<8x128xf32>
    %cst_77 = arith.constant dense<0.000000e+00> : vector<8x128xf32>
    %131 = tpu.matmul %130, %64, %cst_77 {dimension_numbers = #tpu.dot_dimension_numbers<[1], [0], [0], [1], [0, 0, 1, 1], [], []>} : vector<8x128xf32>, vector<128x128xf32>, vector<8x128xf32> -> vector<8x128xf32>
    %132 = arith.addf %129, %131 : vector<8x128xf32>
    %133 = math.tanh %132 : vector<8x128xf32>
    %134 = arith.subf %111, %133 : vector<8x128xf32>
    %135 = arith.mulf %127, %134 : vector<8x128xf32>
    %136 = arith.addf %133, %135 : vector<8x128xf32>
    %137 = arith.index_cast %c2_i32 : i32 to index
    %c0_78 = arith.constant 0 : index
    %c0_79 = arith.constant 0 : index
    %138 = vector.load %arg7[%137, %c0_78, %c0_79] : memref<8x8x128xf32, #tpu.memory_space<vmem>>, vector<1x8x128xf32>
    %139 = vector.shape_cast %138 : vector<1x8x128xf32> to vector<8x128xf32>
    %140 = vector.shape_cast %136 : vector<8x128xf32> to vector<1x8x128xf32>
    tpu.vector_store %arg7[%137, %c0_78, %c0_79], %140 {strides = array<i32>} : memref<8x8x128xf32, #tpu.memory_space<vmem>>, vector<1x8x128xf32>,
    %c3_i32 = arith.constant 3 : i32
    %141 = arith.index_cast %c3_i32 : i32 to index
    %c0_80 = arith.constant 0 : index
    %c0_81 = arith.constant 0 : index
    %142 = vector.load %arg9[%141, %c0_80, %c0_81] : memref<8x8x384xf32, #tpu.memory_space<vmem>>, vector<1x8x384xf32>
    %143 = vector.shape_cast %142 : vector<1x8x384xf32> to vector<8x384xf32>
    %cst_82 = arith.constant dense<0.000000e+00> : vector<8x256xf32>
    %144 = tpu.matmul %136, %63, %cst_82 {dimension_numbers = #tpu.dot_dimension_numbers<[1], [0], [0], [1], [0, 0, 1, 1], [], []>} : vector<8x128xf32>, vector<128x256xf32>, vector<8x256xf32> -> vector<8x256xf32>
    %145 = vector.extract_strided_slice %143 {offsets = [0, 0], sizes = [8, 256], strides = [1, 1]} : vector<8x384xf32> to vector<8x256xf32>
    %146 = arith.addf %145, %144 : vector<8x256xf32>
    %147 = arith.negf %146 : vector<8x256xf32>
    %148 = math.exp %147 : vector<8x256xf32>
    %cst_83 = arith.constant 1.000000e+00 : f32
    %149 = vector.broadcast %cst_83 : f32 to vector<8x256xf32>
    %150 = arith.addf %149, %148 : vector<8x256xf32>
    %151 = arith.divf %149, %150 : vector<8x256xf32>
    %152 = vector.extract_strided_slice %151 {offsets = [0, 0], sizes = [8, 128], strides = [1, 1]} : vector<8x256xf32> to vector<8x128xf32>
    %153 = vector.extract_strided_slice %151 {offsets = [0, 128], sizes = [8, 128], strides = [1, 1]} : vector<8x256xf32> to vector<8x128xf32>
    %154 = vector.extract_strided_slice %143 {offsets = [0, 256], sizes = [8, 128], strides = [1, 1]} : vector<8x384xf32> to vector<8x128xf32>
    %155 = arith.mulf %153, %136 : vector<8x128xf32>
    %cst_84 = arith.constant dense<0.000000e+00> : vector<8x128xf32>
    %156 = tpu.matmul %155, %64, %cst_84 {dimension_numbers = #tpu.dot_dimension_numbers<[1], [0], [0], [1], [0, 0, 1, 1], [], []>} : vector<8x128xf32>, vector<128x128xf32>, vector<8x128xf32> -> vector<8x128xf32>
    %157 = arith.addf %154, %156 : vector<8x128xf32>
    %158 = math.tanh %157 : vector<8x128xf32>
    %159 = arith.subf %136, %158 : vector<8x128xf32>
    %160 = arith.mulf %152, %159 : vector<8x128xf32>
    %161 = arith.addf %158, %160 : vector<8x128xf32>
    %162 = arith.index_cast %c3_i32 : i32 to index
    %c0_85 = arith.constant 0 : index
    %c0_86 = arith.constant 0 : index
    %163 = vector.load %arg7[%162, %c0_85, %c0_86] : memref<8x8x128xf32, #tpu.memory_space<vmem>>, vector<1x8x128xf32>
    %164 = vector.shape_cast %163 : vector<1x8x128xf32> to vector<8x128xf32>
    %165 = vector.shape_cast %161 : vector<8x128xf32> to vector<1x8x128xf32>
    tpu.vector_store %arg7[%162, %c0_85, %c0_86], %165 {strides = array<i32>} : memref<8x8x128xf32, #tpu.memory_space<vmem>>, vector<1x8x128xf32>,
    %c4_i32 = arith.constant 4 : i32
    %166 = arith.index_cast %c4_i32 : i32 to index
    %c0_87 = arith.constant 0 : index
    %c0_88 = arith.constant 0 : index
    %167 = vector.load %arg9[%166, %c0_87, %c0_88] : memref<8x8x384xf32, #tpu.memory_space<vmem>>, vector<1x8x384xf32>
    %168 = vector.shape_cast %167 : vector<1x8x384xf32> to vector<8x384xf32>
    %cst_89 = arith.constant dense<0.000000e+00> : vector<8x256xf32>
    %169 = tpu.matmul %161, %63, %cst_89 {dimension_numbers = #tpu.dot_dimension_numbers<[1], [0], [0], [1], [0, 0, 1, 1], [], []>} : vector<8x128xf32>, vector<128x256xf32>, vector<8x256xf32> -> vector<8x256xf32>
    %170 = vector.extract_strided_slice %168 {offsets = [0, 0], sizes = [8, 256], strides = [1, 1]} : vector<8x384xf32> to vector<8x256xf32>
    %171 = arith.addf %170, %169 : vector<8x256xf32>
    %172 = arith.negf %171 : vector<8x256xf32>
    %173 = math.exp %172 : vector<8x256xf32>
    %cst_90 = arith.constant 1.000000e+00 : f32
    %174 = vector.broadcast %cst_90 : f32 to vector<8x256xf32>
    %175 = arith.addf %174, %173 : vector<8x256xf32>
    %176 = arith.divf %174, %175 : vector<8x256xf32>
    %177 = vector.extract_strided_slice %176 {offsets = [0, 0], sizes = [8, 128], strides = [1, 1]} : vector<8x256xf32> to vector<8x128xf32>
    %178 = vector.extract_strided_slice %176 {offsets = [0, 128], sizes = [8, 128], strides = [1, 1]} : vector<8x256xf32> to vector<8x128xf32>
    %179 = vector.extract_strided_slice %168 {offsets = [0, 256], sizes = [8, 128], strides = [1, 1]} : vector<8x384xf32> to vector<8x128xf32>
    %180 = arith.mulf %178, %161 : vector<8x128xf32>
    %cst_91 = arith.constant dense<0.000000e+00> : vector<8x128xf32>
    %181 = tpu.matmul %180, %64, %cst_91 {dimension_numbers = #tpu.dot_dimension_numbers<[1], [0], [0], [1], [0, 0, 1, 1], [], []>} : vector<8x128xf32>, vector<128x128xf32>, vector<8x128xf32> -> vector<8x128xf32>
    %182 = arith.addf %179, %181 : vector<8x128xf32>
    %183 = math.tanh %182 : vector<8x128xf32>
    %184 = arith.subf %161, %183 : vector<8x128xf32>
    %185 = arith.mulf %177, %184 : vector<8x128xf32>
    %186 = arith.addf %183, %185 : vector<8x128xf32>
    %187 = arith.index_cast %c4_i32 : i32 to index
    %c0_92 = arith.constant 0 : index
    %c0_93 = arith.constant 0 : index
    %188 = vector.load %arg7[%187, %c0_92, %c0_93] : memref<8x8x128xf32, #tpu.memory_space<vmem>>, vector<1x8x128xf32>
    %189 = vector.shape_cast %188 : vector<1x8x128xf32> to vector<8x128xf32>
    %190 = vector.shape_cast %186 : vector<8x128xf32> to vector<1x8x128xf32>
    tpu.vector_store %arg7[%187, %c0_92, %c0_93], %190 {strides = array<i32>} : memref<8x8x128xf32, #tpu.memory_space<vmem>>, vector<1x8x128xf32>,
    %c5_i32 = arith.constant 5 : i32
    %191 = arith.index_cast %c5_i32 : i32 to index
    %c0_94 = arith.constant 0 : index
    %c0_95 = arith.constant 0 : index
    %192 = vector.load %arg9[%191, %c0_94, %c0_95] : memref<8x8x384xf32, #tpu.memory_space<vmem>>, vector<1x8x384xf32>
    %193 = vector.shape_cast %192 : vector<1x8x384xf32> to vector<8x384xf32>
    %cst_96 = arith.constant dense<0.000000e+00> : vector<8x256xf32>
    %194 = tpu.matmul %186, %63, %cst_96 {dimension_numbers = #tpu.dot_dimension_numbers<[1], [0], [0], [1], [0, 0, 1, 1], [], []>} : vector<8x128xf32>, vector<128x256xf32>, vector<8x256xf32> -> vector<8x256xf32>
    %195 = vector.extract_strided_slice %193 {offsets = [0, 0], sizes = [8, 256], strides = [1, 1]} : vector<8x384xf32> to vector<8x256xf32>
    %196 = arith.addf %195, %194 : vector<8x256xf32>
    %197 = arith.negf %196 : vector<8x256xf32>
    %198 = math.exp %197 : vector<8x256xf32>
    %cst_97 = arith.constant 1.000000e+00 : f32
    %199 = vector.broadcast %cst_97 : f32 to vector<8x256xf32>
    %200 = arith.addf %199, %198 : vector<8x256xf32>
    %201 = arith.divf %199, %200 : vector<8x256xf32>
    %202 = vector.extract_strided_slice %201 {offsets = [0, 0], sizes = [8, 128], strides = [1, 1]} : vector<8x256xf32> to vector<8x128xf32>
    %203 = vector.extract_strided_slice %201 {offsets = [0, 128], sizes = [8, 128], strides = [1, 1]} : vector<8x256xf32> to vector<8x128xf32>
    %204 = vector.extract_strided_slice %193 {offsets = [0, 256], sizes = [8, 128], strides = [1, 1]} : vector<8x384xf32> to vector<8x128xf32>
    %205 = arith.mulf %203, %186 : vector<8x128xf32>
    %cst_98 = arith.constant dense<0.000000e+00> : vector<8x128xf32>
    %206 = tpu.matmul %205, %64, %cst_98 {dimension_numbers = #tpu.dot_dimension_numbers<[1], [0], [0], [1], [0, 0, 1, 1], [], []>} : vector<8x128xf32>, vector<128x128xf32>, vector<8x128xf32> -> vector<8x128xf32>
    %207 = arith.addf %204, %206 : vector<8x128xf32>
    %208 = math.tanh %207 : vector<8x128xf32>
    %209 = arith.subf %186, %208 : vector<8x128xf32>
    %210 = arith.mulf %202, %209 : vector<8x128xf32>
    %211 = arith.addf %208, %210 : vector<8x128xf32>
    %212 = arith.index_cast %c5_i32 : i32 to index
    %c0_99 = arith.constant 0 : index
    %c0_100 = arith.constant 0 : index
    %213 = vector.load %arg7[%212, %c0_99, %c0_100] : memref<8x8x128xf32, #tpu.memory_space<vmem>>, vector<1x8x128xf32>
    %214 = vector.shape_cast %213 : vector<1x8x128xf32> to vector<8x128xf32>
    %215 = vector.shape_cast %211 : vector<8x128xf32> to vector<1x8x128xf32>
    tpu.vector_store %arg7[%212, %c0_99, %c0_100], %215 {strides = array<i32>} : memref<8x8x128xf32, #tpu.memory_space<vmem>>, vector<1x8x128xf32>,
    %c6_i32 = arith.constant 6 : i32
    %216 = arith.index_cast %c6_i32 : i32 to index
    %c0_101 = arith.constant 0 : index
    %c0_102 = arith.constant 0 : index
    %217 = vector.load %arg9[%216, %c0_101, %c0_102] : memref<8x8x384xf32, #tpu.memory_space<vmem>>, vector<1x8x384xf32>
    %218 = vector.shape_cast %217 : vector<1x8x384xf32> to vector<8x384xf32>
    %cst_103 = arith.constant dense<0.000000e+00> : vector<8x256xf32>
    %219 = tpu.matmul %211, %63, %cst_103 {dimension_numbers = #tpu.dot_dimension_numbers<[1], [0], [0], [1], [0, 0, 1, 1], [], []>} : vector<8x128xf32>, vector<128x256xf32>, vector<8x256xf32> -> vector<8x256xf32>
    %220 = vector.extract_strided_slice %218 {offsets = [0, 0], sizes = [8, 256], strides = [1, 1]} : vector<8x384xf32> to vector<8x256xf32>
    %221 = arith.addf %220, %219 : vector<8x256xf32>
    %222 = arith.negf %221 : vector<8x256xf32>
    %223 = math.exp %222 : vector<8x256xf32>
    %cst_104 = arith.constant 1.000000e+00 : f32
    %224 = vector.broadcast %cst_104 : f32 to vector<8x256xf32>
    %225 = arith.addf %224, %223 : vector<8x256xf32>
    %226 = arith.divf %224, %225 : vector<8x256xf32>
    %227 = vector.extract_strided_slice %226 {offsets = [0, 0], sizes = [8, 128], strides = [1, 1]} : vector<8x256xf32> to vector<8x128xf32>
    %228 = vector.extract_strided_slice %226 {offsets = [0, 128], sizes = [8, 128], strides = [1, 1]} : vector<8x256xf32> to vector<8x128xf32>
    %229 = vector.extract_strided_slice %218 {offsets = [0, 256], sizes = [8, 128], strides = [1, 1]} : vector<8x384xf32> to vector<8x128xf32>
    %230 = arith.mulf %228, %211 : vector<8x128xf32>
    %cst_105 = arith.constant dense<0.000000e+00> : vector<8x128xf32>
    %231 = tpu.matmul %230, %64, %cst_105 {dimension_numbers = #tpu.dot_dimension_numbers<[1], [0], [0], [1], [0, 0, 1, 1], [], []>} : vector<8x128xf32>, vector<128x128xf32>, vector<8x128xf32> -> vector<8x128xf32>
    %232 = arith.addf %229, %231 : vector<8x128xf32>
    %233 = math.tanh %232 : vector<8x128xf32>
    %234 = arith.subf %211, %233 : vector<8x128xf32>
    %235 = arith.mulf %227, %234 : vector<8x128xf32>
    %236 = arith.addf %233, %235 : vector<8x128xf32>
    %237 = arith.index_cast %c6_i32 : i32 to index
    %c0_106 = arith.constant 0 : index
    %c0_107 = arith.constant 0 : index
    %238 = vector.load %arg7[%237, %c0_106, %c0_107] : memref<8x8x128xf32, #tpu.memory_space<vmem>>, vector<1x8x128xf32>
    %239 = vector.shape_cast %238 : vector<1x8x128xf32> to vector<8x128xf32>
    %240 = vector.shape_cast %236 : vector<8x128xf32> to vector<1x8x128xf32>
    tpu.vector_store %arg7[%237, %c0_106, %c0_107], %240 {strides = array<i32>} : memref<8x8x128xf32, #tpu.memory_space<vmem>>, vector<1x8x128xf32>,
    %c7_i32 = arith.constant 7 : i32
    %241 = arith.index_cast %c7_i32 : i32 to index
    %c0_108 = arith.constant 0 : index
    %c0_109 = arith.constant 0 : index
    %242 = vector.load %arg9[%241, %c0_108, %c0_109] : memref<8x8x384xf32, #tpu.memory_space<vmem>>, vector<1x8x384xf32>
    %243 = vector.shape_cast %242 : vector<1x8x384xf32> to vector<8x384xf32>
    %cst_110 = arith.constant dense<0.000000e+00> : vector<8x256xf32>
    %244 = tpu.matmul %236, %63, %cst_110 {dimension_numbers = #tpu.dot_dimension_numbers<[1], [0], [0], [1], [0, 0, 1, 1], [], []>} : vector<8x128xf32>, vector<128x256xf32>, vector<8x256xf32> -> vector<8x256xf32>
    %245 = vector.extract_strided_slice %243 {offsets = [0, 0], sizes = [8, 256], strides = [1, 1]} : vector<8x384xf32> to vector<8x256xf32>
    %246 = arith.addf %245, %244 : vector<8x256xf32>
    %247 = arith.negf %246 : vector<8x256xf32>
    %248 = math.exp %247 : vector<8x256xf32>
    %cst_111 = arith.constant 1.000000e+00 : f32
    %249 = vector.broadcast %cst_111 : f32 to vector<8x256xf32>
    %250 = arith.addf %249, %248 : vector<8x256xf32>
    %251 = arith.divf %249, %250 : vector<8x256xf32>
    %252 = vector.extract_strided_slice %251 {offsets = [0, 0], sizes = [8, 128], strides = [1, 1]} : vector<8x256xf32> to vector<8x128xf32>
    %253 = vector.extract_strided_slice %251 {offsets = [0, 128], sizes = [8, 128], strides = [1, 1]} : vector<8x256xf32> to vector<8x128xf32>
    %254 = vector.extract_strided_slice %243 {offsets = [0, 256], sizes = [8, 128], strides = [1, 1]} : vector<8x384xf32> to vector<8x128xf32>
    %255 = arith.mulf %253, %236 : vector<8x128xf32>
    %cst_112 = arith.constant dense<0.000000e+00> : vector<8x128xf32>
    %256 = tpu.matmul %255, %64, %cst_112 {dimension_numbers = #tpu.dot_dimension_numbers<[1], [0], [0], [1], [0, 0, 1, 1], [], []>} : vector<8x128xf32>, vector<128x128xf32>, vector<8x128xf32> -> vector<8x128xf32>
    %257 = arith.addf %254, %256 : vector<8x128xf32>
    %258 = math.tanh %257 : vector<8x128xf32>
    %259 = arith.subf %236, %258 : vector<8x128xf32>
    %260 = arith.mulf %252, %259 : vector<8x128xf32>
    %261 = arith.addf %258, %260 : vector<8x128xf32>
    %262 = arith.index_cast %c7_i32 : i32 to index
    %c0_113 = arith.constant 0 : index
    %c0_114 = arith.constant 0 : index
    %263 = vector.load %arg7[%262, %c0_113, %c0_114] : memref<8x8x128xf32, #tpu.memory_space<vmem>>, vector<1x8x128xf32>
    %264 = vector.shape_cast %263 : vector<1x8x128xf32> to vector<8x128xf32>
    %265 = vector.shape_cast %261 : vector<8x128xf32> to vector<1x8x128xf32>
    tpu.vector_store %arg7[%262, %c0_113, %c0_114], %265 {strides = array<i32>} : memref<8x8x128xf32, #tpu.memory_space<vmem>>, vector<1x8x128xf32>,
    %c8_i32 = arith.constant 8 : i32
    %c0_115 = arith.constant 0 : index
    %c0_116 = arith.constant 0 : index
    %266 = vector.load %arg8[%c0_115, %c0_116] : memref<8x128xf32, #tpu.memory_space<vmem>>, vector<8x128xf32>
    tpu.vector_store %arg8[%c0_115, %c0_116], %261 {strides = array<i32>} : memref<8x128xf32, #tpu.memory_space<vmem>>, vector<8x128xf32>,
    return
  }
  func.func @transform_0(%arg0: i32, %arg1: i32) -> (i32, i32, i32) {
    %c0_i32 = arith.constant 0 : i32
    %c0_i32_0 = arith.constant 0 : i32
    return %arg1, %arg0, %c0_i32 : i32, i32, i32
  }
  func.func @transform_1(%arg0: i32, %arg1: i32) -> (i32, i32) {
    %c0_i32 = arith.constant 0 : i32
    %c0_i32_0 = arith.constant 0 : i32
    %c0_i32_1 = arith.constant 0 : i32
    return %c0_i32, %c0_i32_0 : i32, i32
  }
  func.func @transform_2(%arg0: i32, %arg1: i32) -> (i32, i32) {
    %c0_i32 = arith.constant 0 : i32
    %c0_i32_0 = arith.constant 0 : i32
    %c0_i32_1 = arith.constant 0 : i32
    return %c0_i32, %c0_i32_0 : i32, i32
  }
  func.func @transform_3(%arg0: i32, %arg1: i32) -> (i32, i32) {
    %c0_i32 = arith.constant 0 : i32
    %c0_i32_0 = arith.constant 0 : i32
    %c0_i32_1 = arith.constant 0 : i32
    return %c0_i32, %c0_i32_0 : i32, i32
  }
  func.func @transform_4(%arg0: i32, %arg1: i32) -> (i32, i32) {
    %c0_i32 = arith.constant 0 : i32
    %c0_i32_0 = arith.constant 0 : i32
    %c0_i32_1 = arith.constant 0 : i32
    return %c0_i32, %c0_i32_0 : i32, i32
  }
  func.func @transform_5(%arg0: i32, %arg1: i32) -> (i32, i32, i32) {
    %c0_i32 = arith.constant 0 : i32
    %c0_i32_0 = arith.constant 0 : i32
    return %arg1, %arg0, %c0_i32 : i32, i32, i32
  }
}

module attributes {stable_mosaic.version = 11 : i64} {
  func.func @_gru_kernel(%arg0: i32, %arg1: i32, %arg2: memref<8x8x16xf32, #tpu.memory_space<vmem>>, %arg3: memref<16x384xf32, #tpu.memory_space<vmem>>, %arg4: memref<1x384xf32, #tpu.memory_space<vmem>>, %arg5: memref<128x256xf32, #tpu.memory_space<vmem>>, %arg6: memref<128x128xf32, #tpu.memory_space<vmem>>, %arg7: memref<8x8x128xf32, #tpu.memory_space<vmem>>, %arg8: memref<8x128xf32, #tpu.memory_space<vmem>>, %arg9: memref<8x8x384xf32, #tpu.memory_space<vmem>>) attributes {dimension_semantics = [#tpu.dimension_semantics<parallel>, #tpu.dimension_semantics<arbitrary>], iteration_bounds = array<i64: 1, 1>, scalar_prefetch = 0 : i64, scratch_operands = 2 : i64, tpu.core_type = #tpu.core_type<tc>, window_params = [{transform_indices = @transform_0, window_bounds = array<i64: 8, 8, 16>}, {pipeline_mode = #tpu.pipeline_mode<synchronous>, transform_indices = @transform_1, window_bounds = array<i64: 16, 384>}, {pipeline_mode = #tpu.pipeline_mode<synchronous>, transform_indices = @transform_2, window_bounds = array<i64: 1, 384>}, {pipeline_mode = #tpu.pipeline_mode<synchronous>, transform_indices = @transform_3, window_bounds = array<i64: 128, 256>}, {pipeline_mode = #tpu.pipeline_mode<synchronous>, transform_indices = @transform_4, window_bounds = array<i64: 128, 128>}, {transform_indices = @transform_5, window_bounds = array<i64: 8, 8, 128>}]} {
    %c0_i32 = arith.constant 0 : i32
    %0 = arith.cmpi eq, %arg1, %c0_i32 : i32
    %1 = arith.extui %0 : i1 to i32
    %c0_i32_0 = arith.constant 0 : i32
    %2 = arith.cmpi ne, %1, %c0_i32_0 : i32
    scf.if %2 {
      %cst_117 = arith.constant 0.000000e+00 : f32
      %267 = vector.broadcast %cst_117 : f32 to vector<8x128xf32>
      %c0_118 = arith.constant 0 : index
      %c0_119 = arith.constant 0 : index
      %268 = vector.load %arg8[%c0_118, %c0_119] : memref<8x128xf32, #tpu.memory_space<vmem>>, vector<8x128xf32>
      tpu.vector_store %arg8[%c0_118, %c0_119], %267 {strides = array<i32>} : memref<8x128xf32, #tpu.memory_space<vmem>>, vector<8x128xf32>,
    } else {
    }
    %c0 = arith.constant 0 : index
    %c0_1 = arith.constant 0 : index
    %3 = vector.load %arg3[%c0, %c0_1] : memref<16x384xf32, #tpu.memory_space<vmem>>, vector<16x384xf32>
    %c0_2 = arith.constant 0 : index
    %c0_3 = arith.constant 0 : index
    %4 = vector.load %arg4[%c0_2, %c0_3] : memref<1x384xf32, #tpu.memory_space<vmem>>, vector<1x384xf32>
    %5 = vector.shape_cast %4 : vector<1x384xf32> to vector<1x384xf32>
    %6 = vector.broadcast %5 : vector<1x384xf32> to vector<8x384xf32>
    %c0_4 = arith.constant 0 : index
    %c0_5 = arith.constant 0 : index
    %c0_6 = arith.constant 0 : index
    %7 = vector.load %arg2[%c0_4, %c0_5, %c0_6] : memref<8x8x16xf32, #tpu.memory_space<vmem>>, vector<1x8x16xf32>
    %8 = vector.shape_cast %7 : vector<1x8x16xf32> to vector<8x16xf32>
    %cst = arith.constant dense<0.000000e+00> : vector<8x384xf32>
    %9 = tpu.matmul %8, %3, %cst {dimension_numbers = #tpu.dot_dimension_numbers<[1], [0], [0], [1], [0, 0, 1, 1], [], []>} : vector<8x16xf32>, vector<16x384xf32>, vector<8x384xf32> -> vector<8x384xf32>
    %10 = arith.addf %9, %6 : vector<8x384xf32>
    %c0_7 = arith.constant 0 : index
    %c0_8 = arith.constant 0 : index
    %c0_9 = arith.constant 0 : index
    %11 = vector.load %arg9[%c0_7, %c0_8, %c0_9] : memref<8x8x384xf32, #tpu.memory_space<vmem>>, vector<1x8x384xf32>
    %12 = vector.shape_cast %11 : vector<1x8x384xf32> to vector<8x384xf32>
    %13 = vector.shape_cast %10 : vector<8x384xf32> to vector<1x8x384xf32>
    tpu.vector_store %arg9[%c0_7, %c0_8, %c0_9], %13 {strides = array<i32>} : memref<8x8x384xf32, #tpu.memory_space<vmem>>, vector<1x8x384xf32>,
    %c1 = arith.constant 1 : index
    %c0_10 = arith.constant 0 : index
    %c0_11 = arith.constant 0 : index
    %14 = vector.load %arg2[%c1, %c0_10, %c0_11] : memref<8x8x16xf32, #tpu.memory_space<vmem>>, vector<1x8x16xf32>
    %15 = vector.shape_cast %14 : vector<1x8x16xf32> to vector<8x16xf32>
    %cst_12 = arith.constant dense<0.000000e+00> : vector<8x384xf32>
    %16 = tpu.matmul %15, %3, %cst_12 {dimension_numbers = #tpu.dot_dimension_numbers<[1], [0], [0], [1], [0, 0, 1, 1], [], []>} : vector<8x16xf32>, vector<16x384xf32>, vector<8x384xf32> -> vector<8x384xf32>
    %17 = arith.addf %16, %6 : vector<8x384xf32>
    %c1_13 = arith.constant 1 : index
    %c0_14 = arith.constant 0 : index
    %c0_15 = arith.constant 0 : index
    %18 = vector.load %arg9[%c1_13, %c0_14, %c0_15] : memref<8x8x384xf32, #tpu.memory_space<vmem>>, vector<1x8x384xf32>
    %19 = vector.shape_cast %18 : vector<1x8x384xf32> to vector<8x384xf32>
    %20 = vector.shape_cast %17 : vector<8x384xf32> to vector<1x8x384xf32>
    tpu.vector_store %arg9[%c1_13, %c0_14, %c0_15], %20 {strides = array<i32>} : memref<8x8x384xf32, #tpu.memory_space<vmem>>, vector<1x8x384xf32>,
    %c2 = arith.constant 2 : index
    %c0_16 = arith.constant 0 : index
    %c0_17 = arith.constant 0 : index
    %21 = vector.load %arg2[%c2, %c0_16, %c0_17] : memref<8x8x16xf32, #tpu.memory_space<vmem>>, vector<1x8x16xf32>
    %22 = vector.shape_cast %21 : vector<1x8x16xf32> to vector<8x16xf32>
    %cst_18 = arith.constant dense<0.000000e+00> : vector<8x384xf32>
    %23 = tpu.matmul %22, %3, %cst_18 {dimension_numbers = #tpu.dot_dimension_numbers<[1], [0], [0], [1], [0, 0, 1, 1], [], []>} : vector<8x16xf32>, vector<16x384xf32>, vector<8x384xf32> -> vector<8x384xf32>
    %24 = arith.addf %23, %6 : vector<8x384xf32>
    %c2_19 = arith.constant 2 : index
    %c0_20 = arith.constant 0 : index
    %c0_21 = arith.constant 0 : index
    %25 = vector.load %arg9[%c2_19, %c0_20, %c0_21] : memref<8x8x384xf32, #tpu.memory_space<vmem>>, vector<1x8x384xf32>
    %26 = vector.shape_cast %25 : vector<1x8x384xf32> to vector<8x384xf32>
    %27 = vector.shape_cast %24 : vector<8x384xf32> to vector<1x8x384xf32>
    tpu.vector_store %arg9[%c2_19, %c0_20, %c0_21], %27 {strides = array<i32>} : memref<8x8x384xf32, #tpu.memory_space<vmem>>, vector<1x8x384xf32>,
    %c3 = arith.constant 3 : index
    %c0_22 = arith.constant 0 : index
    %c0_23 = arith.constant 0 : index
    %28 = vector.load %arg2[%c3, %c0_22, %c0_23] : memref<8x8x16xf32, #tpu.memory_space<vmem>>, vector<1x8x16xf32>
    %29 = vector.shape_cast %28 : vector<1x8x16xf32> to vector<8x16xf32>
    %cst_24 = arith.constant dense<0.000000e+00> : vector<8x384xf32>
    %30 = tpu.matmul %29, %3, %cst_24 {dimension_numbers = #tpu.dot_dimension_numbers<[1], [0], [0], [1], [0, 0, 1, 1], [], []>} : vector<8x16xf32>, vector<16x384xf32>, vector<8x384xf32> -> vector<8x384xf32>
    %31 = arith.addf %30, %6 : vector<8x384xf32>
    %c3_25 = arith.constant 3 : index
    %c0_26 = arith.constant 0 : index
    %c0_27 = arith.constant 0 : index
    %32 = vector.load %arg9[%c3_25, %c0_26, %c0_27] : memref<8x8x384xf32, #tpu.memory_space<vmem>>, vector<1x8x384xf32>
    %33 = vector.shape_cast %32 : vector<1x8x384xf32> to vector<8x384xf32>
    %34 = vector.shape_cast %31 : vector<8x384xf32> to vector<1x8x384xf32>
    tpu.vector_store %arg9[%c3_25, %c0_26, %c0_27], %34 {strides = array<i32>} : memref<8x8x384xf32, #tpu.memory_space<vmem>>, vector<1x8x384xf32>,
    %c4 = arith.constant 4 : index
    %c0_28 = arith.constant 0 : index
    %c0_29 = arith.constant 0 : index
    %35 = vector.load %arg2[%c4, %c0_28, %c0_29] : memref<8x8x16xf32, #tpu.memory_space<vmem>>, vector<1x8x16xf32>
    %36 = vector.shape_cast %35 : vector<1x8x16xf32> to vector<8x16xf32>
    %cst_30 = arith.constant dense<0.000000e+00> : vector<8x384xf32>
    %37 = tpu.matmul %36, %3, %cst_30 {dimension_numbers = #tpu.dot_dimension_numbers<[1], [0], [0], [1], [0, 0, 1, 1], [], []>} : vector<8x16xf32>, vector<16x384xf32>, vector<8x384xf32> -> vector<8x384xf32>
    %38 = arith.addf %37, %6 : vector<8x384xf32>
    %c4_31 = arith.constant 4 : index
    %c0_32 = arith.constant 0 : index
    %c0_33 = arith.constant 0 : index
    %39 = vector.load %arg9[%c4_31, %c0_32, %c0_33] : memref<8x8x384xf32, #tpu.memory_space<vmem>>, vector<1x8x384xf32>
    %40 = vector.shape_cast %39 : vector<1x8x384xf32> to vector<8x384xf32>
    %41 = vector.shape_cast %38 : vector<8x384xf32> to vector<1x8x384xf32>
    tpu.vector_store %arg9[%c4_31, %c0_32, %c0_33], %41 {strides = array<i32>} : memref<8x8x384xf32, #tpu.memory_space<vmem>>, vector<1x8x384xf32>,
    %c5 = arith.constant 5 : index
    %c0_34 = arith.constant 0 : index
    %c0_35 = arith.constant 0 : index
    %42 = vector.load %arg2[%c5, %c0_34, %c0_35] : memref<8x8x16xf32, #tpu.memory_space<vmem>>, vector<1x8x16xf32>
    %43 = vector.shape_cast %42 : vector<1x8x16xf32> to vector<8x16xf32>
    %cst_36 = arith.constant dense<0.000000e+00> : vector<8x384xf32>
    %44 = tpu.matmul %43, %3, %cst_36 {dimension_numbers = #tpu.dot_dimension_numbers<[1], [0], [0], [1], [0, 0, 1, 1], [], []>} : vector<8x16xf32>, vector<16x384xf32>, vector<8x384xf32> -> vector<8x384xf32>
    %45 = arith.addf %44, %6 : vector<8x384xf32>
    %c5_37 = arith.constant 5 : index
    %c0_38 = arith.constant 0 : index
    %c0_39 = arith.constant 0 : index
    %46 = vector.load %arg9[%c5_37, %c0_38, %c0_39] : memref<8x8x384xf32, #tpu.memory_space<vmem>>, vector<1x8x384xf32>
    %47 = vector.shape_cast %46 : vector<1x8x384xf32> to vector<8x384xf32>
    %48 = vector.shape_cast %45 : vector<8x384xf32> to vector<1x8x384xf32>
    tpu.vector_store %arg9[%c5_37, %c0_38, %c0_39], %48 {strides = array<i32>} : memref<8x8x384xf32, #tpu.memory_space<vmem>>, vector<1x8x384xf32>,
    %c6 = arith.constant 6 : index
    %c0_40 = arith.constant 0 : index
    %c0_41 = arith.constant 0 : index
    %49 = vector.load %arg2[%c6, %c0_40, %c0_41] : memref<8x8x16xf32, #tpu.memory_space<vmem>>, vector<1x8x16xf32>
    %50 = vector.shape_cast %49 : vector<1x8x16xf32> to vector<8x16xf32>
    %cst_42 = arith.constant dense<0.000000e+00> : vector<8x384xf32>
    %51 = tpu.matmul %50, %3, %cst_42 {dimension_numbers = #tpu.dot_dimension_numbers<[1], [0], [0], [1], [0, 0, 1, 1], [], []>} : vector<8x16xf32>, vector<16x384xf32>, vector<8x384xf32> -> vector<8x384xf32>
    %52 = arith.addf %51, %6 : vector<8x384xf32>
    %c6_43 = arith.constant 6 : index
    %c0_44 = arith.constant 0 : index
    %c0_45 = arith.constant 0 : index
    %53 = vector.load %arg9[%c6_43, %c0_44, %c0_45] : memref<8x8x384xf32, #tpu.memory_space<vmem>>, vector<1x8x384xf32>
    %54 = vector.shape_cast %53 : vector<1x8x384xf32> to vector<8x384xf32>
    %55 = vector.shape_cast %52 : vector<8x384xf32> to vector<1x8x384xf32>
    tpu.vector_store %arg9[%c6_43, %c0_44, %c0_45], %55 {strides = array<i32>} : memref<8x8x384xf32, #tpu.memory_space<vmem>>, vector<1x8x384xf32>,
    %c7 = arith.constant 7 : index
    %c0_46 = arith.constant 0 : index
    %c0_47 = arith.constant 0 : index
    %56 = vector.load %arg2[%c7, %c0_46, %c0_47] : memref<8x8x16xf32, #tpu.memory_space<vmem>>, vector<1x8x16xf32>
    %57 = vector.shape_cast %56 : vector<1x8x16xf32> to vector<8x16xf32>
    %cst_48 = arith.constant dense<0.000000e+00> : vector<8x384xf32>
    %58 = tpu.matmul %57, %3, %cst_48 {dimension_numbers = #tpu.dot_dimension_numbers<[1], [0], [0], [1], [0, 0, 1, 1], [], []>} : vector<8x16xf32>, vector<16x384xf32>, vector<8x384xf32> -> vector<8x384xf32>
    %59 = arith.addf %58, %6 : vector<8x384xf32>
    %c7_49 = arith.constant 7 : index
    %c0_50 = arith.constant 0 : index
    %c0_51 = arith.constant 0 : index
    %60 = vector.load %arg9[%c7_49, %c0_50, %c0_51] : memref<8x8x384xf32, #tpu.memory_space<vmem>>, vector<1x8x384xf32>
    %61 = vector.shape_cast %60 : vector<1x8x384xf32> to vector<8x384xf32>
    %62 = vector.shape_cast %59 : vector<8x384xf32> to vector<1x8x384xf32>
    tpu.vector_store %arg9[%c7_49, %c0_50, %c0_51], %62 {strides = array<i32>} : memref<8x8x384xf32, #tpu.memory_space<vmem>>, vector<1x8x384xf32>,
    %c0_52 = arith.constant 0 : index
    %c0_53 = arith.constant 0 : index
    %63 = vector.load %arg5[%c0_52, %c0_53] : memref<128x256xf32, #tpu.memory_space<vmem>>, vector<128x256xf32>
    %c0_54 = arith.constant 0 : index
    %c0_55 = arith.constant 0 : index
    %64 = vector.load %arg6[%c0_54, %c0_55] : memref<128x128xf32, #tpu.memory_space<vmem>>, vector<128x128xf32>
    %c0_56 = arith.constant 0 : index
    %c0_57 = arith.constant 0 : index
    %65 = vector.load %arg8[%c0_56, %c0_57] : memref<8x128xf32, #tpu.memory_space<vmem>>, vector<8x128xf32>
    %c0_i32_58 = arith.constant 0 : i32
    %66 = arith.index_cast %c0_i32_58 : i32 to index
    %c0_59 = arith.constant 0 : index
    %c0_60 = arith.constant 0 : index
    %67 = vector.load %arg9[%66, %c0_59, %c0_60] : memref<8x8x384xf32, #tpu.memory_space<vmem>>, vector<1x8x384xf32>
    %68 = vector.shape_cast %67 : vector<1x8x384xf32> to vector<8x384xf32>
    %cst_61 = arith.constant dense<0.000000e+00> : vector<8x256xf32>
    %69 = tpu.matmul %65, %63, %cst_61 {dimension_numbers = #tpu.dot_dimension_numbers<[1], [0], [0], [1], [0, 0, 1, 1], [], []>} : vector<8x128xf32>, vector<128x256xf32>, vector<8x256xf32> -> vector<8x256xf32>
    %70 = vector.extract_strided_slice %68 {offsets = [0, 0], sizes = [8, 256], strides = [1, 1]} : vector<8x384xf32> to vector<8x256xf32>
    %71 = arith.addf %70, %69 : vector<8x256xf32>
    %72 = arith.negf %71 : vector<8x256xf32>
    %73 = math.exp %72 : vector<8x256xf32>
    %cst_62 = arith.constant 1.000000e+00 : f32
    %74 = vector.broadcast %cst_62 : f32 to vector<8x256xf32>
    %75 = arith.addf %74, %73 : vector<8x256xf32>
    %76 = arith.divf %74, %75 : vector<8x256xf32>
    %77 = vector.extract_strided_slice %76 {offsets = [0, 0], sizes = [8, 128], strides = [1, 1]} : vector<8x256xf32> to vector<8x128xf32>
    %78 = vector.extract_strided_slice %76 {offsets = [0, 128], sizes = [8, 128], strides = [1, 1]} : vector<8x256xf32> to vector<8x128xf32>
    %79 = vector.extract_strided_slice %68 {offsets = [0, 256], sizes = [8, 128], strides = [1, 1]} : vector<8x384xf32> to vector<8x128xf32>
    %80 = arith.mulf %78, %65 : vector<8x128xf32>
    %cst_63 = arith.constant dense<0.000000e+00> : vector<8x128xf32>
    %81 = tpu.matmul %80, %64, %cst_63 {dimension_numbers = #tpu.dot_dimension_numbers<[1], [0], [0], [1], [0, 0, 1, 1], [], []>} : vector<8x128xf32>, vector<128x128xf32>, vector<8x128xf32> -> vector<8x128xf32>
    %82 = arith.addf %79, %81 : vector<8x128xf32>
    %83 = math.tanh %82 : vector<8x128xf32>
    %84 = arith.subf %65, %83 : vector<8x128xf32>
    %85 = arith.mulf %77, %84 : vector<8x128xf32>
    %86 = arith.addf %83, %85 : vector<8x128xf32>
    %87 = arith.index_cast %c0_i32_58 : i32 to index
    %c0_64 = arith.constant 0 : index
    %c0_65 = arith.constant 0 : index
    %88 = vector.load %arg7[%87, %c0_64, %c0_65] : memref<8x8x128xf32, #tpu.memory_space<vmem>>, vector<1x8x128xf32>
    %89 = vector.shape_cast %88 : vector<1x8x128xf32> to vector<8x128xf32>
    %90 = vector.shape_cast %86 : vector<8x128xf32> to vector<1x8x128xf32>
    tpu.vector_store %arg7[%87, %c0_64, %c0_65], %90 {strides = array<i32>} : memref<8x8x128xf32, #tpu.memory_space<vmem>>, vector<1x8x128xf32>,
    %c1_i32 = arith.constant 1 : i32
    %91 = arith.index_cast %c1_i32 : i32 to index
    %c0_66 = arith.constant 0 : index
    %c0_67 = arith.constant 0 : index
    %92 = vector.load %arg9[%91, %c0_66, %c0_67] : memref<8x8x384xf32, #tpu.memory_space<vmem>>, vector<1x8x384xf32>
    %93 = vector.shape_cast %92 : vector<1x8x384xf32> to vector<8x384xf32>
    %cst_68 = arith.constant dense<0.000000e+00> : vector<8x256xf32>
    %94 = tpu.matmul %86, %63, %cst_68 {dimension_numbers = #tpu.dot_dimension_numbers<[1], [0], [0], [1], [0, 0, 1, 1], [], []>} : vector<8x128xf32>, vector<128x256xf32>, vector<8x256xf32> -> vector<8x256xf32>
    %95 = vector.extract_strided_slice %93 {offsets = [0, 0], sizes = [8, 256], strides = [1, 1]} : vector<8x384xf32> to vector<8x256xf32>
    %96 = arith.addf %95, %94 : vector<8x256xf32>
    %97 = arith.negf %96 : vector<8x256xf32>
    %98 = math.exp %97 : vector<8x256xf32>
    %cst_69 = arith.constant 1.000000e+00 : f32
    %99 = vector.broadcast %cst_69 : f32 to vector<8x256xf32>
    %100 = arith.addf %99, %98 : vector<8x256xf32>
    %101 = arith.divf %99, %100 : vector<8x256xf32>
    %102 = vector.extract_strided_slice %101 {offsets = [0, 0], sizes = [8, 128], strides = [1, 1]} : vector<8x256xf32> to vector<8x128xf32>
    %103 = vector.extract_strided_slice %101 {offsets = [0, 128], sizes = [8, 128], strides = [1, 1]} : vector<8x256xf32> to vector<8x128xf32>
    %104 = vector.extract_strided_slice %93 {offsets = [0, 256], sizes = [8, 128], strides = [1, 1]} : vector<8x384xf32> to vector<8x128xf32>
    %105 = arith.mulf %103, %86 : vector<8x128xf32>
    %cst_70 = arith.constant dense<0.000000e+00> : vector<8x128xf32>
    %106 = tpu.matmul %105, %64, %cst_70 {dimension_numbers = #tpu.dot_dimension_numbers<[1], [0], [0], [1], [0, 0, 1, 1], [], []>} : vector<8x128xf32>, vector<128x128xf32>, vector<8x128xf32> -> vector<8x128xf32>
    %107 = arith.addf %104, %106 : vector<8x128xf32>
    %108 = math.tanh %107 : vector<8x128xf32>
    %109 = arith.subf %86, %108 : vector<8x128xf32>
    %110 = arith.mulf %102, %109 : vector<8x128xf32>
    %111 = arith.addf %108, %110 : vector<8x128xf32>
    %112 = arith.index_cast %c1_i32 : i32 to index
    %c0_71 = arith.constant 0 : index
    %c0_72 = arith.constant 0 : index
    %113 = vector.load %arg7[%112, %c0_71, %c0_72] : memref<8x8x128xf32, #tpu.memory_space<vmem>>, vector<1x8x128xf32>
    %114 = vector.shape_cast %113 : vector<1x8x128xf32> to vector<8x128xf32>
    %115 = vector.shape_cast %111 : vector<8x128xf32> to vector<1x8x128xf32>
    tpu.vector_store %arg7[%112, %c0_71, %c0_72], %115 {strides = array<i32>} : memref<8x8x128xf32, #tpu.memory_space<vmem>>, vector<1x8x128xf32>,
    %c2_i32 = arith.constant 2 : i32
    %116 = arith.index_cast %c2_i32 : i32 to index
    %c0_73 = arith.constant 0 : index
    %c0_74 = arith.constant 0 : index
    %117 = vector.load %arg9[%116, %c0_73, %c0_74] : memref<8x8x384xf32, #tpu.memory_space<vmem>>, vector<1x8x384xf32>
    %118 = vector.shape_cast %117 : vector<1x8x384xf32> to vector<8x384xf32>
    %cst_75 = arith.constant dense<0.000000e+00> : vector<8x256xf32>
    %119 = tpu.matmul %111, %63, %cst_75 {dimension_numbers = #tpu.dot_dimension_numbers<[1], [0], [0], [1], [0, 0, 1, 1], [], []>} : vector<8x128xf32>, vector<128x256xf32>, vector<8x256xf32> -> vector<8x256xf32>
    %120 = vector.extract_strided_slice %118 {offsets = [0, 0], sizes = [8, 256], strides = [1, 1]} : vector<8x384xf32> to vector<8x256xf32>
    %121 = arith.addf %120, %119 : vector<8x256xf32>
    %122 = arith.negf %121 : vector<8x256xf32>
    %123 = math.exp %122 : vector<8x256xf32>
    %cst_76 = arith.constant 1.000000e+00 : f32
    %124 = vector.broadcast %cst_76 : f32 to vector<8x256xf32>
    %125 = arith.addf %124, %123 : vector<8x256xf32>
    %126 = arith.divf %124, %125 : vector<8x256xf32>
    %127 = vector.extract_strided_slice %126 {offsets = [0, 0], sizes = [8, 128], strides = [1, 1]} : vector<8x256xf32> to vector<8x128xf32>
    %128 = vector.extract_strided_slice %126 {offsets = [0, 128], sizes = [8, 128], strides = [1, 1]} : vector<8x256xf32> to vector<8x128xf32>
    %129 = vector.extract_strided_slice %118 {offsets = [0, 256], sizes = [8, 128], strides = [1, 1]} : vector<8x384xf32> to vector<8x128xf32>
    %130 = arith.mulf %128, %111 : vector<8x128xf32>
    %cst_77 = arith.constant dense<0.000000e+00> : vector<8x128xf32>
    %131 = tpu.matmul %130, %64, %cst_77 {dimension_numbers = #tpu.dot_dimension_numbers<[1], [0], [0], [1], [0, 0, 1, 1], [], []>} : vector<8x128xf32>, vector<128x128xf32>, vector<8x128xf32> -> vector<8x128xf32>
    %132 = arith.addf %129, %131 : vector<8x128xf32>
    %133 = math.tanh %132 : vector<8x128xf32>
    %134 = arith.subf %111, %133 : vector<8x128xf32>
    %135 = arith.mulf %127, %134 : vector<8x128xf32>
    %136 = arith.addf %133, %135 : vector<8x128xf32>
    %137 = arith.index_cast %c2_i32 : i32 to index
    %c0_78 = arith.constant 0 : index
    %c0_79 = arith.constant 0 : index
    %138 = vector.load %arg7[%137, %c0_78, %c0_79] : memref<8x8x128xf32, #tpu.memory_space<vmem>>, vector<1x8x128xf32>
    %139 = vector.shape_cast %138 : vector<1x8x128xf32> to vector<8x128xf32>
    %140 = vector.shape_cast %136 : vector<8x128xf32> to vector<1x8x128xf32>
    tpu.vector_store %arg7[%137, %c0_78, %c0_79], %140 {strides = array<i32>} : memref<8x8x128xf32, #tpu.memory_space<vmem>>, vector<1x8x128xf32>,
    %c3_i32 = arith.constant 3 : i32
    %141 = arith.index_cast %c3_i32 : i32 to index
    %c0_80 = arith.constant 0 : index
    %c0_81 = arith.constant 0 : index
    %142 = vector.load %arg9[%141, %c0_80, %c0_81] : memref<8x8x384xf32, #tpu.memory_space<vmem>>, vector<1x8x384xf32>
    %143 = vector.shape_cast %142 : vector<1x8x384xf32> to vector<8x384xf32>
    %cst_82 = arith.constant dense<0.000000e+00> : vector<8x256xf32>
    %144 = tpu.matmul %136, %63, %cst_82 {dimension_numbers = #tpu.dot_dimension_numbers<[1], [0], [0], [1], [0, 0, 1, 1], [], []>} : vector<8x128xf32>, vector<128x256xf32>, vector<8x256xf32> -> vector<8x256xf32>
    %145 = vector.extract_strided_slice %143 {offsets = [0, 0], sizes = [8, 256], strides = [1, 1]} : vector<8x384xf32> to vector<8x256xf32>
    %146 = arith.addf %145, %144 : vector<8x256xf32>
    %147 = arith.negf %146 : vector<8x256xf32>
    %148 = math.exp %147 : vector<8x256xf32>
    %cst_83 = arith.constant 1.000000e+00 : f32
    %149 = vector.broadcast %cst_83 : f32 to vector<8x256xf32>
    %150 = arith.addf %149, %148 : vector<8x256xf32>
    %151 = arith.divf %149, %150 : vector<8x256xf32>
    %152 = vector.extract_strided_slice %151 {offsets = [0, 0], sizes = [8, 128], strides = [1, 1]} : vector<8x256xf32> to vector<8x128xf32>
    %153 = vector.extract_strided_slice %151 {offsets = [0, 128], sizes = [8, 128], strides = [1, 1]} : vector<8x256xf32> to vector<8x128xf32>
    %154 = vector.extract_strided_slice %143 {offsets = [0, 256], sizes = [8, 128], strides = [1, 1]} : vector<8x384xf32> to vector<8x128xf32>
    %155 = arith.mulf %153, %136 : vector<8x128xf32>
    %cst_84 = arith.constant dense<0.000000e+00> : vector<8x128xf32>
    %156 = tpu.matmul %155, %64, %cst_84 {dimension_numbers = #tpu.dot_dimension_numbers<[1], [0], [0], [1], [0, 0, 1, 1], [], []>} : vector<8x128xf32>, vector<128x128xf32>, vector<8x128xf32> -> vector<8x128xf32>
    %157 = arith.addf %154, %156 : vector<8x128xf32>
    %158 = math.tanh %157 : vector<8x128xf32>
    %159 = arith.subf %136, %158 : vector<8x128xf32>
    %160 = arith.mulf %152, %159 : vector<8x128xf32>
    %161 = arith.addf %158, %160 : vector<8x128xf32>
    %162 = arith.index_cast %c3_i32 : i32 to index
    %c0_85 = arith.constant 0 : index
    %c0_86 = arith.constant 0 : index
    %163 = vector.load %arg7[%162, %c0_85, %c0_86] : memref<8x8x128xf32, #tpu.memory_space<vmem>>, vector<1x8x128xf32>
    %164 = vector.shape_cast %163 : vector<1x8x128xf32> to vector<8x128xf32>
    %165 = vector.shape_cast %161 : vector<8x128xf32> to vector<1x8x128xf32>
    tpu.vector_store %arg7[%162, %c0_85, %c0_86], %165 {strides = array<i32>} : memref<8x8x128xf32, #tpu.memory_space<vmem>>, vector<1x8x128xf32>,
    %c4_i32 = arith.constant 4 : i32
    %166 = arith.index_cast %c4_i32 : i32 to index
    %c0_87 = arith.constant 0 : index
    %c0_88 = arith.constant 0 : index
    %167 = vector.load %arg9[%166, %c0_87, %c0_88] : memref<8x8x384xf32, #tpu.memory_space<vmem>>, vector<1x8x384xf32>
    %168 = vector.shape_cast %167 : vector<1x8x384xf32> to vector<8x384xf32>
    %cst_89 = arith.constant dense<0.000000e+00> : vector<8x256xf32>
    %169 = tpu.matmul %161, %63, %cst_89 {dimension_numbers = #tpu.dot_dimension_numbers<[1], [0], [0], [1], [0, 0, 1, 1], [], []>} : vector<8x128xf32>, vector<128x256xf32>, vector<8x256xf32> -> vector<8x256xf32>
    %170 = vector.extract_strided_slice %168 {offsets = [0, 0], sizes = [8, 256], strides = [1, 1]} : vector<8x384xf32> to vector<8x256xf32>
    %171 = arith.addf %170, %169 : vector<8x256xf32>
    %172 = arith.negf %171 : vector<8x256xf32>
    %173 = math.exp %172 : vector<8x256xf32>
    %cst_90 = arith.constant 1.000000e+00 : f32
    %174 = vector.broadcast %cst_90 : f32 to vector<8x256xf32>
    %175 = arith.addf %174, %173 : vector<8x256xf32>
    %176 = arith.divf %174, %175 : vector<8x256xf32>
    %177 = vector.extract_strided_slice %176 {offsets = [0, 0], sizes = [8, 128], strides = [1, 1]} : vector<8x256xf32> to vector<8x128xf32>
    %178 = vector.extract_strided_slice %176 {offsets = [0, 128], sizes = [8, 128], strides = [1, 1]} : vector<8x256xf32> to vector<8x128xf32>
    %179 = vector.extract_strided_slice %168 {offsets = [0, 256], sizes = [8, 128], strides = [1, 1]} : vector<8x384xf32> to vector<8x128xf32>
    %180 = arith.mulf %178, %161 : vector<8x128xf32>
    %cst_91 = arith.constant dense<0.000000e+00> : vector<8x128xf32>
    %181 = tpu.matmul %180, %64, %cst_91 {dimension_numbers = #tpu.dot_dimension_numbers<[1], [0], [0], [1], [0, 0, 1, 1], [], []>} : vector<8x128xf32>, vector<128x128xf32>, vector<8x128xf32> -> vector<8x128xf32>
    %182 = arith.addf %179, %181 : vector<8x128xf32>
    %183 = math.tanh %182 : vector<8x128xf32>
    %184 = arith.subf %161, %183 : vector<8x128xf32>
    %185 = arith.mulf %177, %184 : vector<8x128xf32>
    %186 = arith.addf %183, %185 : vector<8x128xf32>
    %187 = arith.index_cast %c4_i32 : i32 to index
    %c0_92 = arith.constant 0 : index
    %c0_93 = arith.constant 0 : index
    %188 = vector.load %arg7[%187, %c0_92, %c0_93] : memref<8x8x128xf32, #tpu.memory_space<vmem>>, vector<1x8x128xf32>
    %189 = vector.shape_cast %188 : vector<1x8x128xf32> to vector<8x128xf32>
    %190 = vector.shape_cast %186 : vector<8x128xf32> to vector<1x8x128xf32>
    tpu.vector_store %arg7[%187, %c0_92, %c0_93], %190 {strides = array<i32>} : memref<8x8x128xf32, #tpu.memory_space<vmem>>, vector<1x8x128xf32>,
    %c5_i32 = arith.constant 5 : i32
    %191 = arith.index_cast %c5_i32 : i32 to index
    %c0_94 = arith.constant 0 : index
    %c0_95 = arith.constant 0 : index
    %192 = vector.load %arg9[%191, %c0_94, %c0_95] : memref<8x8x384xf32, #tpu.memory_space<vmem>>, vector<1x8x384xf32>
    %193 = vector.shape_cast %192 : vector<1x8x384xf32> to vector<8x384xf32>
    %cst_96 = arith.constant dense<0.000000e+00> : vector<8x256xf32>
    %194 = tpu.matmul %186, %63, %cst_96 {dimension_numbers = #tpu.dot_dimension_numbers<[1], [0], [0], [1], [0, 0, 1, 1], [], []>} : vector<8x128xf32>, vector<128x256xf32>, vector<8x256xf32> -> vector<8x256xf32>
    %195 = vector.extract_strided_slice %193 {offsets = [0, 0], sizes = [8, 256], strides = [1, 1]} : vector<8x384xf32> to vector<8x256xf32>
    %196 = arith.addf %195, %194 : vector<8x256xf32>
    %197 = arith.negf %196 : vector<8x256xf32>
    %198 = math.exp %197 : vector<8x256xf32>
    %cst_97 = arith.constant 1.000000e+00 : f32
    %199 = vector.broadcast %cst_97 : f32 to vector<8x256xf32>
    %200 = arith.addf %199, %198 : vector<8x256xf32>
    %201 = arith.divf %199, %200 : vector<8x256xf32>
    %202 = vector.extract_strided_slice %201 {offsets = [0, 0], sizes = [8, 128], strides = [1, 1]} : vector<8x256xf32> to vector<8x128xf32>
    %203 = vector.extract_strided_slice %201 {offsets = [0, 128], sizes = [8, 128], strides = [1, 1]} : vector<8x256xf32> to vector<8x128xf32>
    %204 = vector.extract_strided_slice %193 {offsets = [0, 256], sizes = [8, 128], strides = [1, 1]} : vector<8x384xf32> to vector<8x128xf32>
    %205 = arith.mulf %203, %186 : vector<8x128xf32>
    %cst_98 = arith.constant dense<0.000000e+00> : vector<8x128xf32>
    %206 = tpu.matmul %205, %64, %cst_98 {dimension_numbers = #tpu.dot_dimension_numbers<[1], [0], [0], [1], [0, 0, 1, 1], [], []>} : vector<8x128xf32>, vector<128x128xf32>, vector<8x128xf32> -> vector<8x128xf32>
    %207 = arith.addf %204, %206 : vector<8x128xf32>
    %208 = math.tanh %207 : vector<8x128xf32>
    %209 = arith.subf %186, %208 : vector<8x128xf32>
    %210 = arith.mulf %202, %209 : vector<8x128xf32>
    %211 = arith.addf %208, %210 : vector<8x128xf32>
    %212 = arith.index_cast %c5_i32 : i32 to index
    %c0_99 = arith.constant 0 : index
    %c0_100 = arith.constant 0 : index
    %213 = vector.load %arg7[%212, %c0_99, %c0_100] : memref<8x8x128xf32, #tpu.memory_space<vmem>>, vector<1x8x128xf32>
    %214 = vector.shape_cast %213 : vector<1x8x128xf32> to vector<8x128xf32>
    %215 = vector.shape_cast %211 : vector<8x128xf32> to vector<1x8x128xf32>
    tpu.vector_store %arg7[%212, %c0_99, %c0_100], %215 {strides = array<i32>} : memref<8x8x128xf32, #tpu.memory_space<vmem>>, vector<1x8x128xf32>,
    %c6_i32 = arith.constant 6 : i32
    %216 = arith.index_cast %c6_i32 : i32 to index
    %c0_101 = arith.constant 0 : index
    %c0_102 = arith.constant 0 : index
    %217 = vector.load %arg9[%216, %c0_101, %c0_102] : memref<8x8x384xf32, #tpu.memory_space<vmem>>, vector<1x8x384xf32>
    %218 = vector.shape_cast %217 : vector<1x8x384xf32> to vector<8x384xf32>
    %cst_103 = arith.constant dense<0.000000e+00> : vector<8x256xf32>
    %219 = tpu.matmul %211, %63, %cst_103 {dimension_numbers = #tpu.dot_dimension_numbers<[1], [0], [0], [1], [0, 0, 1, 1], [], []>} : vector<8x128xf32>, vector<128x256xf32>, vector<8x256xf32> -> vector<8x256xf32>
    %220 = vector.extract_strided_slice %218 {offsets = [0, 0], sizes = [8, 256], strides = [1, 1]} : vector<8x384xf32> to vector<8x256xf32>
    %221 = arith.addf %220, %219 : vector<8x256xf32>
    %222 = arith.negf %221 : vector<8x256xf32>
    %223 = math.exp %222 : vector<8x256xf32>
    %cst_104 = arith.constant 1.000000e+00 : f32
    %224 = vector.broadcast %cst_104 : f32 to vector<8x256xf32>
    %225 = arith.addf %224, %223 : vector<8x256xf32>
    %226 = arith.divf %224, %225 : vector<8x256xf32>
    %227 = vector.extract_strided_slice %226 {offsets = [0, 0], sizes = [8, 128], strides = [1, 1]} : vector<8x256xf32> to vector<8x128xf32>
    %228 = vector.extract_strided_slice %226 {offsets = [0, 128], sizes = [8, 128], strides = [1, 1]} : vector<8x256xf32> to vector<8x128xf32>
    %229 = vector.extract_strided_slice %218 {offsets = [0, 256], sizes = [8, 128], strides = [1, 1]} : vector<8x384xf32> to vector<8x128xf32>
    %230 = arith.mulf %228, %211 : vector<8x128xf32>
    %cst_105 = arith.constant dense<0.000000e+00> : vector<8x128xf32>
    %231 = tpu.matmul %230, %64, %cst_105 {dimension_numbers = #tpu.dot_dimension_numbers<[1], [0], [0], [1], [0, 0, 1, 1], [], []>} : vector<8x128xf32>, vector<128x128xf32>, vector<8x128xf32> -> vector<8x128xf32>
    %232 = arith.addf %229, %231 : vector<8x128xf32>
    %233 = math.tanh %232 : vector<8x128xf32>
    %234 = arith.subf %211, %233 : vector<8x128xf32>
    %235 = arith.mulf %227, %234 : vector<8x128xf32>
    %236 = arith.addf %233, %235 : vector<8x128xf32>
    %237 = arith.index_cast %c6_i32 : i32 to index
    %c0_106 = arith.constant 0 : index
    %c0_107 = arith.constant 0 : index
    %238 = vector.load %arg7[%237, %c0_106, %c0_107] : memref<8x8x128xf32, #tpu.memory_space<vmem>>, vector<1x8x128xf32>
    %239 = vector.shape_cast %238 : vector<1x8x128xf32> to vector<8x128xf32>
    %240 = vector.shape_cast %236 : vector<8x128xf32> to vector<1x8x128xf32>
    tpu.vector_store %arg7[%237, %c0_106, %c0_107], %240 {strides = array<i32>} : memref<8x8x128xf32, #tpu.memory_space<vmem>>, vector<1x8x128xf32>,
    %c7_i32 = arith.constant 7 : i32
    %241 = arith.index_cast %c7_i32 : i32 to index
    %c0_108 = arith.constant 0 : index
    %c0_109 = arith.constant 0 : index
    %242 = vector.load %arg9[%241, %c0_108, %c0_109] : memref<8x8x384xf32, #tpu.memory_space<vmem>>, vector<1x8x384xf32>
    %243 = vector.shape_cast %242 : vector<1x8x384xf32> to vector<8x384xf32>
    %cst_110 = arith.constant dense<0.000000e+00> : vector<8x256xf32>
    %244 = tpu.matmul %236, %63, %cst_110 {dimension_numbers = #tpu.dot_dimension_numbers<[1], [0], [0], [1], [0, 0, 1, 1], [], []>} : vector<8x128xf32>, vector<128x256xf32>, vector<8x256xf32> -> vector<8x256xf32>
    %245 = vector.extract_strided_slice %243 {offsets = [0, 0], sizes = [8, 256], strides = [1, 1]} : vector<8x384xf32> to vector<8x256xf32>
    %246 = arith.addf %245, %244 : vector<8x256xf32>
    %247 = arith.negf %246 : vector<8x256xf32>
    %248 = math.exp %247 : vector<8x256xf32>
    %cst_111 = arith.constant 1.000000e+00 : f32
    %249 = vector.broadcast %cst_111 : f32 to vector<8x256xf32>
    %250 = arith.addf %249, %248 : vector<8x256xf32>
    %251 = arith.divf %249, %250 : vector<8x256xf32>
    %252 = vector.extract_strided_slice %251 {offsets = [0, 0], sizes = [8, 128], strides = [1, 1]} : vector<8x256xf32> to vector<8x128xf32>
    %253 = vector.extract_strided_slice %251 {offsets = [0, 128], sizes = [8, 128], strides = [1, 1]} : vector<8x256xf32> to vector<8x128xf32>
    %254 = vector.extract_strided_slice %243 {offsets = [0, 256], sizes = [8, 128], strides = [1, 1]} : vector<8x384xf32> to vector<8x128xf32>
    %255 = arith.mulf %253, %236 : vector<8x128xf32>
    %cst_112 = arith.constant dense<0.000000e+00> : vector<8x128xf32>
    %256 = tpu.matmul %255, %64, %cst_112 {dimension_numbers = #tpu.dot_dimension_numbers<[1], [0], [0], [1], [0, 0, 1, 1], [], []>} : vector<8x128xf32>, vector<128x128xf32>, vector<8x128xf32> -> vector<8x128xf32>
    %257 = arith.addf %254, %256 : vector<8x128xf32>
    %258 = math.tanh %257 : vector<8x128xf32>
    %259 = arith.subf %236, %258 : vector<8x128xf32>
    %260 = arith.mulf %252, %259 : vector<8x128xf32>
    %261 = arith.addf %258, %260 : vector<8x128xf32>
    %262 = arith.index_cast %c7_i32 : i32 to index
    %c0_113 = arith.constant 0 : index
    %c0_114 = arith.constant 0 : index
    %263 = vector.load %arg7[%262, %c0_113, %c0_114] : memref<8x8x128xf32, #tpu.memory_space<vmem>>, vector<1x8x128xf32>
    %264 = vector.shape_cast %263 : vector<1x8x128xf32> to vector<8x128xf32>
    %265 = vector.shape_cast %261 : vector<8x128xf32> to vector<1x8x128xf32>
    tpu.vector_store %arg7[%262, %c0_113, %c0_114], %265 {strides = array<i32>} : memref<8x8x128xf32, #tpu.memory_space<vmem>>, vector<1x8x128xf32>,
    %c8_i32 = arith.constant 8 : i32
    %c0_115 = arith.constant 0 : index
    %c0_116 = arith.constant 0 : index
    %266 = vector.load %arg8[%c0_115, %c0_116] : memref<8x128xf32, #tpu.memory_space<vmem>>, vector<8x128xf32>
    tpu.vector_store %arg8[%c0_115, %c0_116], %261 {strides = array<i32>} : memref<8x128xf32, #tpu.memory_space<vmem>>, vector<8x128xf32>,
    return
  }
  func.func @transform_0(%arg0: i32, %arg1: i32) -> (i32, i32, i32) {
    %c0_i32 = arith.constant 0 : i32
    %c0_i32_0 = arith.constant 0 : i32
    return %arg1, %arg0, %c0_i32 : i32, i32, i32
  }
  func.func @transform_1(%arg0: i32, %arg1: i32) -> (i32, i32) {
    %c0_i32 = arith.constant 0 : i32
    %c0_i32_0 = arith.constant 0 : i32
    %c0_i32_1 = arith.constant 0 : i32
    return %c0_i32, %c0_i32_0 : i32, i32
  }
  func.func @transform_2(%arg0: i32, %arg1: i32) -> (i32, i32) {
    %c0_i32 = arith.constant 0 : i32
    %c0_i32_0 = arith.constant 0 : i32
    %c0_i32_1 = arith.constant 0 : i32
    return %c0_i32, %c0_i32_0 : i32, i32
  }
  func.func @transform_3(%arg0: i32, %arg1: i32) -> (i32, i32) {
    %c0_i32 = arith.constant 0 : i32
    %c0_i32_0 = arith.constant 0 : i32
    %c0_i32_1 = arith.constant 0 : i32
    return %c0_i32, %c0_i32_0 : i32, i32
  }
  func.func @transform_4(%arg0: i32, %arg1: i32) -> (i32, i32) {
    %c0_i32 = arith.constant 0 : i32
    %c0_i32_0 = arith.constant 0 : i32
    %c0_i32_1 = arith.constant 0 : i32
    return %c0_i32, %c0_i32_0 : i32, i32
  }
  func.func @transform_5(%arg0: i32, %arg1: i32) -> (i32, i32, i32) {
    %c0_i32 = arith.constant 0 : i32
    %c0_i32_0 = arith.constant 0 : i32
    return %arg1, %arg0, %c0_i32 : i32, i32, i32
  }
}

</mosaic_0001>

<bundles_post_ra>
// kernel: tpu_custom_call.1
= control target key start
LH: loop header
LB: loop body
LE: loop exit
PB: predicated region body
PF: predicated region fallthrough
CT: control target
= control target key end

     0   :  { %10 = vsyncpa [#allocation5], 0  ;;  %s4465_s0 = inlined_call_operand.hbm [shape: f32[8,8,16], index: 0, kind: input, shape index: {}]   ;;  %s4466_s1 = inlined_call_operand.hbm [shape: f32[16,384], index: 1, kind: input, shape index: {}]   ;;  %s4467_s2 = inlined_call_operand.vmem [shape: f32[1,384], index: 2, kind: input, shape index: {}]   ;;  %s4468_s3 = inlined_call_operand.hbm [shape: f32[128,256], index: 3, kind: input, shape index: {}]   ;;  %s4469_s4 = inlined_call_operand.hbm [shape: f32[128,128], index: 4, kind: input, shape index: {}]   ;;  %s4470_s5 = inlined_call_operand.hbm [shape: f32[8,8,128], index: 5, kind: output, shape index: {}]  }
   0x1   :  { %11 = vsyncpa [#allocation8], 0 }
   0x2   :  { %12 = vsyncpa [#allocation11], 0 }
   0x3   :  { %13 = vsyncpa [#allocation6], 0  ;;  %s3476_s18 = smov [#allocation7]  }
   0x4   :  { %s31_s19 = sshll.u32 %s3476_s18, 4  ;;  %s32_s19 = int_to_ptr.vmem [resolvable:$true] %s31_s19 }
   0x5   :  { %s3376_s20 = scalar_lea.vmem %s32_s19, 768  ;;  %p3381_p1 = scmp.lt.s32.totalorder %s32_s19, %s32_s19 }
   0x6   :  { %p3377_p0 = scmp.ne.s32.totalorder %s32_s19, %s3376_s20  ;;  %p3382_p2 = scmp.lt.s32.totalorder %s3376_s20, %s3376_s20 }
   0x8   :  { %p3383_p3 = por %p3382_p2, %p3381_p1 }
   0xa   :  { %p3384_p4 = pnand %p3383_p3, %p3377_p0 }
   0xc   :  { %3387 = shalt.err (!%p3384_p4)
}
   0xd   :  { %s3477_s21 = smov 384   ;;  %s3478_s22 = smov 24  }
   0xe   :  { %37 = dma.hbm_to_vmem [thread:$0]  %s4466_s1, 768, %s32_s19, [#allocation8], %s3477_s21, %s3477_s21, %s3478_s22  }
   0xf   :  { %s3479_s25 = smov [#allocation4]  }
  0x10   :  { %s19_s26 = sshll.u32 %s3479_s25, 4  ;;  %s20_s26 = int_to_ptr.vmem [resolvable:$true] %s19_s26 }
  0x11   :  { %s3396_s27 = scalar_lea.vmem %s20_s26, 1024  ;;  %p3401_p6 = scmp.lt.s32.totalorder %s20_s26, %s20_s26 }
  0x12   :  { %p3397_p5 = scmp.ne.s32.totalorder %s20_s26, %s3396_s27  ;;  %p3402_p7 = scmp.lt.s32.totalorder %s3396_s27, %s3396_s27 }
  0x14   :  { %p3403_p8 = por %p3402_p7, %p3401_p6 }
  0x16   :  { %p3404_p9 = pnand %p3403_p8, %p3397_p5 }
  0x18   :  { %3407 = shalt.err (!%p3404_p9)
}
  0x19   :  { %s3480_s28 = smov 128   ;;  %s3481_s29 = smov 8  }
  0x1a   :  { %25 = dma.hbm_to_vmem [thread:$0]  %s4465_s0, 1024, %s20_s26, [#allocation5], %s3480_s28, %s3480_s28, %s3481_s29  }
  0x1b   :  { %s3482_s1 = smov [#allocation9]  }
  0x1c   :  { %s45_s7 = sshll.u32 %s3482_s1, 4  ;;  %s46_s7 = int_to_ptr.vmem [resolvable:$true] %s45_s7 }
  0x1d   :  { %s3416_s8 = scalar_lea.vmem %s46_s7, 4096  ;;  %p3421_p11 = scmp.lt.s32.totalorder %s46_s7, %s46_s7 }
  0x1e   :  { %p3417_p10 = scmp.ne.s32.totalorder %s46_s7, %s3416_s8  ;;  %p3422_p12 = scmp.lt.s32.totalorder %s3416_s8, %s3416_s8 }
  0x20   :  { %p3423_p13 = por %p3422_p12, %p3421_p11 }
  0x22   :  { %p3424_p0 = pnand %p3423_p13, %p3417_p10 }
  0x24   :  { %3427 = shalt.err (!%p3424_p0)
}
  0x25   :  { %s3483_s9 = smov 256   ;;  %s3484_s10 = smov 16  }
  0x26   :  { %51 = dma.hbm_to_vmem [thread:$0]  %s4468_s3, 4096, %s46_s7, [#allocation8], %s3483_s9, %s3483_s9, %s3484_s10  }
  0x27   :  { %s3485_s13 = smov [#allocation10]  }
  0x28   :  { %s57_s14 = sshll.u32 %s3485_s13, 4  ;;  %s58_s14 = int_to_ptr.vmem [resolvable:$true] %s57_s14 }
  0x29   :  { %s3436_s0 = scalar_lea.vmem %s58_s14, 2048  ;;  %p3441_p2 = scmp.lt.s32.totalorder %s58_s14, %s58_s14 }
  0x2a   :  { %p3437_p1 = scmp.ne.s32.totalorder %s58_s14, %s3436_s0  ;;  %p3442_p3 = scmp.lt.s32.totalorder %s3436_s0, %s3436_s0 }
  0x2c   :  { %p3443_p4 = por %p3442_p3, %p3441_p2 }
  0x2e   :  { %p3444_p5 = pnand %p3443_p4, %p3437_p1 }
  0x30   :  { %3447 = shalt.err (!%p3444_p5)
}
  0x31   :  { %63 = dma.hbm_to_vmem [thread:$0]  %s4469_s4, 2048, %s58_s14, [#allocation11], %s3480_s28, %s3480_s28, %s3481_s29  }
  0x32   :  { %3468 = dma.done.wait [#allocation5], 1024  }
  0x33   :  { %3469 = vsyncadd [#allocation5], 4294966272 }
  0x34   :  { %3470 = dma.done.wait [#allocation8], 4864  }
  0x35   :  { %3471 = vsyncadd [#allocation8], 4294962432 }
  0x36   :  { %3472 = dma.done.wait [#allocation11], 2048  }
  0x37   :  { %3473 = vsyncadd [#allocation11], 4294965248  ;;  %v4471_v0 = vmov 0.0   ;;  %v85_v1 = vld [vmem:[#allocation7 + $0x20] sm:$0xff]  ;;  %v84_v2 = vld [vmem:[#allocation7 + $0x18] sm:$0xff]  ;;  %vm105_vm0 = vcmask 130048   ;;  %v89_v63 = vlaneseq }
  0x38   :  { %173 = vmatprep.mubr.f32.mxu0 %v4471_v0  ;;  %2891 = vmatprep.subr.mxu1 %v4471_v0  ;;  %v82_v3 = vld [vmem:[#allocation7 + $0x8] sm:$0xff]  ;;  %v81_v4 = vld [vmem:[#allocation7] sm:$0xff]  ;;  %v3549_v7 = vld [vmem:[#allocation4 + $0x10] sm:$0xff]  ;;  %vm3487_vm1 = vmmov 0  }
  0x39   :  { %137 = vmatprep.subr.mxu0 %v85_v1  ;;  %v3539_v5 = vld [vmem:[#allocation4] sm:$0xff]  ;;  %v3544_v6 = vld [vmem:[#allocation4 + $0x8] sm:$0xff]  ;;  %v3554_v8 = vld [vmem:[#allocation4 + $0x18] sm:$0xff]  ;;  %2895 = vmatprep.mubr.msk.f32.mxu1 %vm3487_vm1, %v4471_v0 }
  0x3a   :  { %138 = vmatpush1.msra.mxu0 %v84_v2  ;;  %v3559_v9 = vld [vmem:[#allocation4 + $0x20] sm:$0xff]  ;;  %v3564_v10 = vld [vmem:[#allocation4 + $0x28] sm:$0xff]  ;;  %v3569_v11 = vld [vmem:[#allocation4 + $0x30] sm:$0xff] }
  0x3b   :  { %139 = vmatprep.subr.mxu0 %v82_v3  ;;  %v3574_v12 = vld [vmem:[#allocation4 + $0x38] sm:$0xff]  ;;  %v3576_v13 = vld [vmem:[#allocation9 + $0xf8] sm:$0xff]  ;;  %v3578_v14 = vld [vmem:[#allocation9 + $0xf0] sm:$0xff] }
  0x3c   :  { %140 = vmatpush1.msra.mxu0 %v81_v4  ;;  %4485 = vst [vmem:[#allocation17_spill] sm:$0xff] %v3576_v13  ;;  %v3580_v15 = vld [vmem:[#allocation9 + $0xe8] sm:$0xff]  ;;  %v3585_v16 = vld [vmem:[#allocation9 + $0xe0] sm:$0xff]  ;;  %v3588_v17 = vld [vmem:[#allocation9 + $0xd8] sm:$0xff] }
  0x3d   :  { %2699 = vmatmul.mubr.msk.f32.vlgmr.msra.gmra.mxu0 %vm105_vm0, %v3539_v5  ;;  %286 = vmatprep.subr.mxu0 %v85_v1  ;;  %v3592_v18 = vld [vmem:[#allocation9 + $0xd0] sm:$0xff]  ;;  %v3595_v19 = vld [vmem:[#allocation9 + $0xc8] sm:$0xff]  ;;  %v3598_v20 = vld [vmem:[#allocation9 + $0xc0] sm:$0xff] }
  0x3e   :  { %287 = vmatpush1.msra.mxu0 %v84_v2  ;;  %322 = vmatprep.mubr.f32.mxu0 %v4471_v0  ;;  %v3601_v21 = vld [vmem:[#allocation9 + $0xb8] sm:$0xff]  ;;  %v3604_v22 = vld [vmem:[#allocation9 + $0xb0] sm:$0xff]  ;;  %v3607_v23 = vld [vmem:[#allocation9 + $0xa8] sm:$0xff] }
  0x3f   :  { %288 = vmatprep.subr.mxu0 %v82_v3  ;;  %v3610_v24 = vld [vmem:[#allocation9 + $0xa0] sm:$0xff]  ;;  %v3613_v25 = vld [vmem:[#allocation9 + $0x98] sm:$0xff]  ;;  %v3616_v26 = vld [vmem:[#allocation9 + $0x90] sm:$0xff] }
  0x40   :  { %289 = vmatpush1.msra.mxu0 %v81_v4  ;;  %v3619_v27 = vld [vmem:[#allocation9 + $0x88] sm:$0xff]  ;;  %v3622_v28 = vld [vmem:[#allocation9 + $0x80] sm:$0xff]  ;;  %v3625_v29 = vld [vmem:[#allocation9 + $0x78] sm:$0xff] }
  0x41   :  { %2701 = vmatmul.mubr.msk.f32.vlgmr.msra.gmra.mxu0 %vm105_vm0, %v3544_v6  ;;  %436 = vmatprep.subr.mxu0 %v85_v1  ;;  %v3628_v30 = vld [vmem:[#allocation9 + $0x70] sm:$0xff]  ;;  %v3631_v31 = vld [vmem:[#allocation9 + $0x68] sm:$0xff]  ;;  %v3634_v32 = vld [vmem:[#allocation9 + $0x60] sm:$0xff] }
  0x42   :  { %437 = vmatpush1.msra.mxu0 %v84_v2  ;;  %472 = vmatprep.mubr.f32.mxu0 %v4471_v0  ;;  %v3637_v33 = vld [vmem:[#allocation9 + $0x58] sm:$0xff]  ;;  %v3640_v34 = vld [vmem:[#allocation9 + $0x50] sm:$0xff]  ;;  %v3643_v35 = vld [vmem:[#allocation9 + $0x48] sm:$0xff] }
  0x43   :  { %438 = vmatprep.subr.mxu0 %v82_v3  ;;  %v3646_v36 = vld [vmem:[#allocation9 + $0x40] sm:$0xff]  ;;  %v3649_v37 = vld [vmem:[#allocation9 + $0x38] sm:$0xff]  ;;  %v3652_v38 = vld [vmem:[#allocation9 + $0x30] sm:$0xff] }
  0x44   :  { %439 = vmatpush1.msra.mxu0 %v81_v4  ;;  %v3655_v39 = vld [vmem:[#allocation9 + $0x28] sm:$0xff]  ;;  %v3658_v40 = vld [vmem:[#allocation9 + $0x20] sm:$0xff]  ;;  %v3661_v41 = vld [vmem:[#allocation9 + $0x18] sm:$0xff] }
  0x45   :  { %2703 = vmatmul.mubr.msk.f32.vlgmr.msra.gmra.mxu0 %vm105_vm0, %v3549_v7  ;;  %586 = vmatprep.subr.mxu0 %v85_v1  ;;  %4486 = vst [vmem:[#allocation18_spill] sm:$0xff] %v3658_v40  ;;  %4487 = vst [vmem:[#allocation19_spill] sm:$0xff] %v3661_v41  ;;  %v3664_v42 = vld [vmem:[#allocation9 + $0x10] sm:$0xff]  ;;  %v3667_v43 = vld [vmem:[#allocation9 + $0x8] sm:$0xff] }
  0x46   :  { %587 = vmatpush1.msra.mxu0 %v84_v2  ;;  %622 = vmatprep.mubr.f32.mxu0 %v4471_v0  ;;  %4488 = vst [vmem:[#allocation20_spill] sm:$0xff] %v3664_v42  ;;  %4489 = vst [vmem:[#allocation21_spill] sm:$0xff] %v3667_v43  ;;  %v3670_v44 = vld [vmem:[#allocation9] sm:$0xff]  ;;  %v86_v45 = vld [vmem:[#allocation7 + $0x28] sm:$0xff] }
  0x47   :  { %588 = vmatprep.subr.mxu0 %v82_v3  ;;  %4490 = vst [vmem:[#allocation22_spill] sm:$0xff] %v3670_v44  ;;  %v83_v46 = vld [vmem:[#allocation7 + $0x10] sm:$0xff]  ;;  %2892 = vmatpush3.msra.mxu1 %v86_v45  ;;  %v3760_v47 = vld [vmem:[#allocation10 + $0x78] sm:$0xff]  ;;  %v3764_v48 = vld [vmem:[#allocation10 + $0x70] sm:$0xff] }
  0x48   :  { %589 = vmatpush1.msra.mxu0 %v81_v4  ;;  %2893 = vmatprep.subr.mxu1 %v4471_v0  ;;  %v3768_v49 = vld [vmem:[#allocation10 + $0x68] sm:$0xff]  ;;  %v3772_v50 = vld [vmem:[#allocation10 + $0x60] sm:$0xff]  ;;  %v3776_v51 = vld [vmem:[#allocation10 + $0x58] sm:$0xff] }
  0x49   :  { %2705 = vmatmul.mubr.msk.f32.vlgmr.msra.gmra.mxu0 %vm105_vm0, %v3554_v8  ;;  %736 = vmatprep.subr.mxu0 %v85_v1  ;;  %v3780_v52 = vld [vmem:[#allocation10 + $0x50] sm:$0xff]  ;;  %v3784_v53 = vld [vmem:[#allocation10 + $0x48] sm:$0xff]  ;;  %v3788_v54 = vld [vmem:[#allocation10 + $0x40] sm:$0xff] }
  0x4a   :  { %737 = vmatpush1.msra.mxu0 %v84_v2  ;;  %772 = vmatprep.mubr.f32.mxu0 %v4471_v0  ;;  %v3792_v55 = vld [vmem:[#allocation10 + $0x38] sm:$0xff]  ;;  %v3794_v56 = vld [vmem:[#allocation10 + $0x30] sm:$0xff]  ;;  %v3798_v57 = vld [vmem:[#allocation10 + $0x28] sm:$0xff] }
  0x4b   :  { %738 = vmatprep.subr.mxu0 %v82_v3  ;;  %2894 = vmatpush3.msra.mxu1 %v83_v46  ;;  %v3802_v58 = vld [vmem:[#allocation10 + $0x20] sm:$0xff]  ;;  %v3806_v59 = vld [vmem:[#allocation10 + $0x18] sm:$0xff]  ;;  %v3810_v60 = vld [vmem:[#allocation10 + $0x10] sm:$0xff] }
  0x4c   :  { %739 = vmatpush1.msra.mxu0 %v81_v4  ;;  %2896 = vmatmul.mubr.msk.f32.vlgmr.msra.gmra.mxu1 %vm105_vm0, %v3539_v5  ;;  %v3814_v61 = vld [vmem:[#allocation10 + $0x8] sm:$0xff]  ;;  %v3818_v62 = vld [vmem:[#allocation10] sm:$0xff] }
  0x4d   :  { %2707 = vmatmul.mubr.msk.f32.vlgmr.msra.gmra.mxu0 %vm105_vm0, %v3559_v9  ;;  %886 = vmatprep.subr.mxu0 %v85_v1 }
  0x4e   :  { %887 = vmatpush1.msra.mxu0 %v84_v2  ;;  %922 = vmatprep.mubr.f32.mxu0 %v4471_v0 }
  0x4f   :  { %888 = vmatprep.subr.mxu0 %v82_v3  ;;  %2898 = vmatprep.subr.mxu1 %v4471_v0 }
  0x50   :  { %889 = vmatpush1.msra.mxu0 %v81_v4  ;;  %2899 = vmatpush3.msra.mxu1 %v86_v45 }
  0x51   :  { %2709 = vmatmul.mubr.msk.f32.vlgmr.msra.gmra.mxu0 %vm105_vm0, %v3564_v10  ;;  %1036 = vmatprep.subr.mxu0 %v85_v1 }
  0x52   :  { %1037 = vmatpush1.msra.mxu0 %v84_v2  ;;  %1072 = vmatprep.mubr.f32.mxu0 %v4471_v0 }
  0x53   :  { %1038 = vmatprep.subr.mxu0 %v82_v3  ;;  %2902 = vmatprep.mubr.msk.f32.mxu1 %vm3487_vm1, %v4471_v0 }
  0x54   :  { %1039 = vmatpush1.msra.mxu0 %v81_v4  ;;  %2900 = vmatprep.subr.mxu1 %v4471_v0 }
  0x55   :  { %2711 = vmatmul.mubr.msk.f32.vlgmr.msra.gmra.mxu0 %vm105_vm0, %v3569_v11  ;;  %1186 = vmatprep.subr.mxu0 %v85_v1  ;;  %v90_v1 = vshrl.u32 %v89_v63, 7 }
  0x56   :  { %1187 = vmatpush1.msra.mxu0 %v84_v2  ;;  %1222 = vmatprep.mubr.f32.mxu0 %v4471_v0 }
  0x57   :  { %1188 = vmatprep.subr.mxu0 %v82_v3  ;;  %2901 = vmatpush3.msra.mxu1 %v83_v46  ;;  %v91_v2 = vsub.s32 0, %v90_v1  ;;  %v87_v3 = vld [vmem:[%s4467_s2] sm:$0x7]  ;;  %v95_v5 = vsub.s32 1, %v90_v1  ;;  %s3488_s2 = smov [#allocation12]  }
  0x58   :  { %1189 = vmatpush1.msra.mxu0 %v81_v4  ;;  %2903 = vmatmul.mubr.msk.f32.vlgmr.msra.gmra.mxu1 %vm105_vm0, %v3544_v6  ;;  %s2685_s17 = sshll.u32 %s3488_s2, 4  ;;  %s2686_s17 = int_to_ptr.vmem [resolvable:$true] %s2685_s17 }
  0x59   :  { %2713 = vmatmul.mubr.msk.f32.vlgmr.msra.gmra.mxu0 %vm105_vm0, %v3574_v12  ;;  %1355 = vmatprep.subr.mxu0 %v3576_v13  ;;  %s3448_s18 = scalar_lea.vmem %s2686_s17, 1024  ;;  %p3453_p7 = scmp.lt.s32.totalorder %s2686_s17, %s2686_s17 }
  0x5a   :  { %1356 = vmatpush1.msra.mxu0 %v3578_v14  ;;  %1419 = vmatprep.mubr.f32.mxu0 %v4471_v0  ;;  %p3449_p6 = scmp.ne.s32.totalorder %s2686_s17, %s3448_s18  ;;  %p3454_p8 = scmp.lt.s32.totalorder %s3448_s18, %s3448_s18 }
  0x5b   :  { %1357 = vmatprep.subr.mxu0 %v3580_v15  ;;  %2905 = vmatprep.subr.mxu1 %v4471_v0 }
  0x5c   :  { %1358 = vmatpush1.msra.mxu0 %v3585_v16  ;;  %2906 = vmatpush3.msra.mxu1 %v86_v45  ;;  %p3455_p9 = por %p3454_p8, %p3453_p7 }
  0x5d   :  { %1359 = vmatprep.subr.mxu0 %v3588_v17  ;;  %2909 = vmatprep.mubr.msk.f32.mxu1 %vm3487_vm1, %v4471_v0 }
  0x5e   :  { %1360 = vmatpush1.msra.mxu0 %v3592_v18  ;;  %2907 = vmatprep.subr.mxu1 %v4471_v0  ;;  %p3456_p10 = pnand %p3455_p9, %p3449_p6 }
  0x5f   :  { %1361 = vmatprep.subr.mxu0 %v3595_v19  ;;  %2908 = vmatpush3.msra.mxu1 %v83_v46 }
  0x60   :  { %1362 = vmatpush1.msra.mxu0 %v3598_v20  ;;  %2910 = vmatmul.mubr.msk.f32.vlgmr.msra.gmra.mxu1 %vm105_vm0, %v3549_v7  ;;  %v92_v7 = vrot.slane %v87_v3, %v91_v2 }
  0x61   :  { %1363 = vmatprep.subr.mxu0 %v3601_v21  ;;  %2912 = vmatprep.subr.mxu1 %v4471_v0 }
  0x62   :  { %1364 = vmatpush1.msra.mxu0 %v3604_v22  ;;  %2913 = vmatpush3.msra.mxu1 %v86_v45 }
  0x63   :  { %1365 = vmatprep.subr.mxu0 %v3607_v23  ;;  %2916 = vmatprep.mubr.msk.f32.mxu1 %vm3487_vm1, %v4471_v0 }
  0x64   :  { %1366 = vmatpush1.msra.mxu0 %v3610_v24  ;;  %2914 = vmatprep.subr.mxu1 %v4471_v0 }
  0x65   :  { %1367 = vmatprep.subr.mxu0 %v3613_v25  ;;  %2915 = vmatpush3.msra.mxu1 %v83_v46 }
  0x66   :  { %1368 = vmatpush1.msra.mxu0 %v3616_v26  ;;  %2917 = vmatmul.mubr.msk.f32.vlgmr.msra.gmra.mxu1 %vm105_vm0, %v3554_v8 }
  0x67   :  { %1369 = vmatprep.subr.mxu0 %v3619_v27  ;;  %2919 = vmatprep.subr.mxu1 %v4471_v0 }
  0x68   :  { %1370 = vmatpush1.msra.mxu0 %v3622_v28  ;;  %2920 = vmatpush3.msra.mxu1 %v86_v45 }
  0x69   :  { %1371 = vmatprep.subr.mxu0 %v3625_v29  ;;  %2923 = vmatprep.mubr.msk.f32.mxu1 %vm3487_vm1, %v4471_v0 }
  0x6a   :  { %1372 = vmatpush1.msra.mxu0 %v3628_v30  ;;  %2921 = vmatprep.subr.mxu1 %v4471_v0 }
  0x6b   :  { %1373 = vmatprep.subr.mxu0 %v3631_v31  ;;  %2922 = vmatpush3.msra.mxu1 %v83_v46 }
  0x6c   :  { %1374 = vmatpush1.msra.mxu0 %v3634_v32  ;;  %2924 = vmatmul.mubr.msk.f32.vlgmr.msra.gmra.mxu1 %vm105_vm0, %v3559_v9  ;;  %v96_v9 = vrot.slane %v87_v3, %v95_v5 }
  0x6d   :  { %1375 = vmatprep.subr.mxu0 %v3637_v33  ;;  %2926 = vmatprep.subr.mxu1 %v4471_v0 }
  0x6e   :  { %1376 = vmatpush1.msra.mxu0 %v3640_v34  ;;  %2927 = vmatpush3.msra.mxu1 %v86_v45 }
  0x6f   :  { %1377 = vmatprep.subr.mxu0 %v3643_v35  ;;  %2930 = vmatprep.mubr.msk.f32.mxu1 %vm3487_vm1, %v4471_v0 }
  0x70   :  { %1378 = vmatpush1.msra.mxu0 %v3646_v36  ;;  %2928 = vmatprep.subr.mxu1 %v4471_v0 }
  0x71   :  { %1379 = vmatprep.subr.mxu0 %v3649_v37  ;;  %2929 = vmatpush3.msra.mxu1 %v83_v46 }
  0x72   :  { %1380 = vmatpush1.msra.mxu0 %v3652_v38  ;;  %2931 = vmatmul.mubr.msk.f32.vlgmr.msra.gmra.mxu1 %vm105_vm0, %v3564_v10 }
  0x73   :  { %1381 = vmatprep.subr.mxu0 %v3655_v39  ;;  %2933 = vmatprep.subr.mxu1 %v4471_v0 }
  0x74   :  { %1382 = vmatpush1.msra.mxu0 %v3658_v40  ;;  %2934 = vmatpush3.msra.mxu1 %v86_v45 }
  0x75   :  { %1383 = vmatprep.subr.mxu0 %v3661_v41  ;;  %2937 = vmatprep.mubr.msk.f32.mxu1 %vm3487_vm1, %v4471_v0 }
  0x76   :  { %1384 = vmatpush1.msra.mxu0 %v3664_v42  ;;  %2935 = vmatprep.subr.mxu1 %v4471_v0 }
  0x77   :  { %1385 = vmatprep.subr.mxu0 %v3667_v43  ;;  %2936 = vmatpush3.msra.mxu1 %v83_v46 }
  0x78   :  { %1386 = vmatpush1.msra.mxu0 %v3670_v44  ;;  %2938 = vmatmul.mubr.msk.f32.vlgmr.msra.gmra.mxu1 %vm105_vm0, %v3569_v11 }
  0x79   :  { %1420 = vmatmul.mubr.f32.vlgmr.msra.gmra.mxu0 %v4471_v0  ;;  %1520 = vmatprep.subr.mxu0 %v3576_v13 }
  0x7a   :  { %1521 = vmatpush1.msra.mxu0 %v3578_v14  ;;  %1584 = vmatprep.mubr.f32.mxu0 %v4471_v0 }
  0x7b   :  { %1522 = vmatprep.subr.mxu0 %v3580_v15  ;;  %2940 = vmatprep.subr.mxu1 %v4471_v0 }
  0x7c   :  { %1523 = vmatpush1.msra.mxu0 %v3585_v16  ;;  %2941 = vmatpush3.msra.mxu1 %v86_v45 }
  0x7d   :  { %1524 = vmatprep.subr.mxu0 %v3588_v17  ;;  %2944 = vmatprep.mubr.msk.f32.mxu1 %vm3487_vm1, %v4471_v0 }
  0x7e   :  { %1525 = vmatpush1.msra.mxu0 %v3592_v18  ;;  %2942 = vmatprep.subr.mxu1 %v4471_v0 }
  0x7f   :  { %1526 = vmatprep.subr.mxu0 %v3595_v19  ;;  %2943 = vmatpush3.msra.mxu1 %v83_v46 }
  0x80   :  { %1527 = vmatpush1.msra.mxu0 %v3598_v20  ;;  %2945 = vmatmul.mubr.msk.f32.vlgmr.msra.gmra.mxu1 %vm105_vm0, %v3574_v12 }
  0x81   :  { %1528 = vmatprep.subr.mxu0 %v3601_v21  ;;  %2947 = vmatprep.subr.mxu1 %v4471_v0 }
  0x82   :  { %1529 = vmatpush1.msra.mxu0 %v3604_v22  ;;  %2979 = vmatprep.mubr.msk.f32.mxu1 %vm3487_vm1, %v4471_v0 }
  0x83   :  { %1530 = vmatprep.subr.mxu0 %v3607_v23  ;;  %2948 = vmatpush3.msra.mxu1 %v3760_v47 }
  0x84   :  { %1531 = vmatpush1.msra.mxu0 %v3610_v24  ;;  %2949 = vmatprep.subr.mxu1 %v4471_v0 }
  0x85   :  { %1532 = vmatprep.subr.mxu0 %v3613_v25  ;;  %2950 = vmatpush3.msra.mxu1 %v3764_v48 }
  0x86   :  { %1533 = vmatpush1.msra.mxu0 %v3616_v26  ;;  %2951 = vmatprep.subr.mxu1 %v4471_v0 }
  0x87   :  { %1534 = vmatprep.subr.mxu0 %v3619_v27  ;;  %2952 = vmatpush3.msra.mxu1 %v3768_v49 }
  0x88   :  { %1535 = vmatpush1.msra.mxu0 %v3622_v28  ;;  %2953 = vmatprep.subr.mxu1 %v4471_v0 }
  0x89   :  { %1536 = vmatprep.subr.mxu0 %v3625_v29  ;;  %2954 = vmatpush3.msra.mxu1 %v3772_v50 }
  0x8a   :  { %1537 = vmatpush1.msra.mxu0 %v3628_v30  ;;  %2955 = vmatprep.subr.mxu1 %v4471_v0 }
  0x8b   :  { %1538 = vmatprep.subr.mxu0 %v3631_v31  ;;  %2956 = vmatpush3.msra.mxu1 %v3776_v51 }
  0x8c   :  { %1539 = vmatpush1.msra.mxu0 %v3634_v32  ;;  %2957 = vmatprep.subr.mxu1 %v4471_v0 }
  0x8d   :  { %1540 = vmatprep.subr.mxu0 %v3637_v33  ;;  %2958 = vmatpush3.msra.mxu1 %v3780_v52 }
  0x8e   :  { %1541 = vmatpush1.msra.mxu0 %v3640_v34  ;;  %2959 = vmatprep.subr.mxu1 %v4471_v0 }
  0x8f   :  { %1542 = vmatprep.subr.mxu0 %v3643_v35  ;;  %2960 = vmatpush3.msra.mxu1 %v3784_v53 }
  0x90   :  { %1543 = vmatpush1.msra.mxu0 %v3646_v36  ;;  %2961 = vmatprep.subr.mxu1 %v4471_v0 }
  0x91   :  { %1544 = vmatprep.subr.mxu0 %v3649_v37  ;;  %2962 = vmatpush3.msra.mxu1 %v3788_v54 }
  0x92   :  { %1545 = vmatpush1.msra.mxu0 %v3652_v38  ;;  %2963 = vmatprep.subr.mxu1 %v4471_v0 }
  0x93   :  { %1546 = vmatprep.subr.mxu0 %v3655_v39  ;;  %2964 = vmatpush3.msra.mxu1 %v3792_v55 }
  0x94   :  { %1547 = vmatpush1.msra.mxu0 %v3658_v40  ;;  %2965 = vmatprep.subr.mxu1 %v4471_v0  ;;  %v99_v40 = vsub.s32 2, %v90_v1 }
  0x95   :  { %1548 = vmatprep.subr.mxu0 %v3661_v41  ;;  %2966 = vmatpush3.msra.mxu1 %v3794_v56 }
  0x96   :  { %1549 = vmatpush1.msra.mxu0 %v3664_v42  ;;  %2967 = vmatprep.subr.mxu1 %v4471_v0 }
  0x97   :  { %1550 = vmatprep.subr.mxu0 %v3667_v43  ;;  %2968 = vmatpush3.msra.mxu1 %v3798_v57 }
  0x98   :  { %1551 = vmatpush1.msra.mxu0 %v3670_v44  ;;  %2969 = vmatprep.subr.mxu1 %v4471_v0 }
  0x99   :  { %1686 = vmatprep.subr.mxu0 %v3576_v13  ;;  %2970 = vmatpush3.msra.mxu1 %v3802_v58 }
  0x9a   :  { %2971 = vmatprep.subr.mxu1 %v4471_v0 }
  0x9b   :  { %2972 = vmatpush3.msra.mxu1 %v3806_v59 }
  0x9c   :  { %2973 = vmatprep.subr.mxu1 %v4471_v0 }
  0x9d   :  { %2974 = vmatpush3.msra.mxu1 %v3810_v60 }
  0x9e   :  { %2975 = vmatprep.subr.mxu1 %v4471_v0 }
  0x9f   :  { %2976 = vmatpush3.msra.mxu1 %v3814_v61 }
  0xa0   :  { %2977 = vmatprep.subr.mxu1 %v4471_v0 }
  0xa1   :  { %2978 = vmatpush3.msra.mxu1 %v3818_v62 }
  0xa2   :  { %2982 = vmatprep.subr.mxu1 %v4471_v0 }
  0xfd   :  { %v175_v4 = vpop.f32.mrf.mxu0 }
  0xff   :  { %v177_v6 = vpop.f32.mrf.mxu0 }
 0x101   :  { %v324_v8 = vpop.f32.mrf.mxu0 }
 0x102   :  { %v3827_v10 = vadd.f32 %v324_v8, %v92_v7 }
 0x103   :  { %v326_v11 = vpop.f32.mrf.mxu0 }
 0x104   :  { %4491 = vst [vmem:[#allocation23_spill] sm:$0xff] %v3827_v10  ;;  %v3829_v12 = vadd.f32 %v326_v11, %v96_v9  ;;  %v178_v10 = vadd.f32 %v177_v6, %v96_v9  ;;  %v100_v6 = vrot.slane %v87_v3, %v99_v40 }
 0x105   :  { %v474_v45 = vpop.f32.mrf.mxu0 }
 0x106   :  { %4492 = vst [vmem:[#allocation24_spill] sm:$0xff] %v3829_v12  ;;  %v3831_v46 = vadd.f32 %v474_v45, %v92_v7 }
 0x107   :  { %v476_v63 = vpop.f32.mrf.mxu0 }
 0x108   :  { %4493 = vst [vmem:[#allocation25_spill] sm:$0xff] %v3831_v46  ;;  %v3833_v0 = vadd.f32 %v476_v63, %v96_v9 }
 0x109   :  { %v624_v13 = vpop.f32.mrf.mxu0 }
 0x10a   :  { %4494 = vst [vmem:[#allocation26_spill] sm:$0xff] %v3833_v0  ;;  %v3835_v44 = vadd.f32 %v624_v13, %v92_v7 }
 0x10b   :  { %v626_v43 = vpop.f32.mrf.mxu0 }
 0x10c   :  { %4495 = vst [vmem:[#allocation27_spill] sm:$0xff] %v3835_v44  ;;  %v3837_v42 = vadd.f32 %v626_v43, %v96_v9 }
 0x10d   :  { %v774_v2 = vpop.f32.mrf.mxu0 }
 0x10e   :  { %4496 = vst [vmem:[#allocation28_spill] sm:$0xff] %v3837_v42  ;;  %v3839_v41 = vadd.f32 %v774_v2, %v92_v7 }
 0x10f   :  { %v776_v5 = vpop.f32.mrf.mxu0 }
 0x110   :  { %4497 = vst [vmem:[#allocation29_spill] sm:$0xff] %v3839_v41  ;;  %v3841_v8 = vadd.f32 %v776_v5, %v96_v9  ;;  %v176_v5 = vadd.f32 %v175_v4, %v92_v7 }
 0x111   :  { %v924_v11 = vpop.f32.mrf.mxu0 }
 0x112   :  { %4498 = vst [vmem:[#allocation30_spill] sm:$0xff] %v3841_v8  ;;  %v3843_v12 = vadd.f32 %v924_v11, %v92_v7 }
 0x113   :  { %v926_v45 = vpop.f32.mrf.mxu0 }
 0x114   :  { %4499 = vst [vmem:[#allocation31_spill] sm:$0xff] %v3843_v12  ;;  %v3845_v46 = vadd.f32 %v926_v45, %v96_v9 }
 0x115   :  { %v1074_v63 = vpop.f32.mrf.mxu0 }
 0x116   :  { %4500 = vst [vmem:[#allocation32_spill] sm:$0xff] %v3845_v46  ;;  %v3847_v0 = vadd.f32 %v1074_v63, %v92_v7 }
 0x117   :  { %v1076_v13 = vpop.f32.mrf.mxu0 }
 0x118   :  { %4501 = vst [vmem:[#allocation33_spill] sm:$0xff] %v3847_v0  ;;  %v3849_v44 = vadd.f32 %v1076_v13, %v96_v9 }
 0x119   :  { %v1224_v43 = vpop.f32.mrf.mxu0 }
 0x11a   :  { %4502 = vst [vmem:[#allocation34_spill] sm:$0xff] %v3849_v44  ;;  %v3851_v42 = vadd.f32 %v1224_v43, %v92_v7  ;;  %v246_v43 = vpop.f32.mrf.mxu1 }
 0x11b   :  { %v1226_v2 = vpop.f32.mrf.mxu0 }
 0x11c   :  { %4503 = vst [vmem:[#allocation35_spill] sm:$0xff] %v3851_v42  ;;  %v3853_v41 = vadd.f32 %v1226_v2, %v96_v9  ;;  %v4505_v2 = vmov 0.0   ;;  %v2897_v4 = vpop.f32.mrf.mxu1 }
 0x11e   :  { %4504 = vst [vmem:[#allocation36_spill] sm:$0xff] %v3853_v41  ;;  %v395_v7 = vpop.f32.mrf.mxu1 }
 0x139   :  { %v1421_v8 = vpop.f32.mrf.mxu0 }
 0x13a   :  { %v3855_v11 = vadd.f32 %v1421_v8, %v176_v5 }
 0x13b   :  { %v1423_v12 = vpop.f32.mrf.mxu0 }
 0x13c   :  { %v1427_v45 = vadd.f32 %v1423_v12, %v178_v10 }
 0x13e   :  { %v2716_v46 = vmul.f32 -1.442695, %v1427_v45 }
 0x140   :  { %3240 = vpow2.f32 %v2716_v46 }
 0x14d   :  { %v3241_v63 = vpop.eup %3240 }
 0x14e   :  { %v1435_v0 = vadd.f32 1.0, %v3241_v63 }
 0x150   :  { %3242 = vrcp.f32 %v1435_v0  ;;  %v3863_v0 = vadd.f32 %v395_v7, %v100_v6 }
 0x15d   :  { %v3243_v13 = vpop.eup %3242 }
 0x15e   :  { %v1440_v44 = vmul.f32 0.0, %v3243_v13 }
 0x160   :  { %2980 = vmatmul.mubr.f32.vlgmr.msra.gmra.mxu1 %v1440_v44  ;;  %v2904_v44 = vpop.f32.mrf.mxu1 }
 0x161   :  { %2983 = vmatpush3.msra.mxu1 %v3760_v47  ;;  %3014 = vmatprep.mubr.msk.f32.mxu1 %vm3487_vm1, %v4505_v2 }
 0x162   :  { %2984 = vmatprep.subr.mxu1 %v4505_v2  ;;  %v545_v1 = vpop.f32.mrf.mxu1 }
 0x163   :  { %2985 = vmatpush3.msra.mxu1 %v3764_v48  ;;  %v3869_v9 = vadd.f32 %v545_v1, %v100_v6 }
 0x164   :  { %2986 = vmatprep.subr.mxu1 %v4505_v2  ;;  %v2911_v40 = vpop.f32.mrf.mxu1 }
 0x165   :  { %2987 = vmatpush3.msra.mxu1 %v3768_v49 }
 0x166   :  { %2988 = vmatprep.subr.mxu1 %v4505_v2  ;;  %v695_v3 = vpop.f32.mrf.mxu1 }
 0x167   :  { %2989 = vmatpush3.msra.mxu1 %v3772_v50  ;;  %v3875_v10 = vadd.f32 %v695_v3, %v100_v6 }
 0x168   :  { %2990 = vmatprep.subr.mxu1 %v4505_v2  ;;  %v2918_v12 = vpop.f32.mrf.mxu1 }
 0x169   :  { %2991 = vmatpush3.msra.mxu1 %v3776_v51  ;;  %4506 = vst [vmem:[#allocation37_spill] sm:$0xff] %v3875_v10  ;;  %v2715_v12 = vmul.f32 -1.442695, %v3855_v11  ;;  %v4512_v11 = vld [vmem:[#allocation19_spill] sm:$0xff] }
 0x16a   :  { %2992 = vmatprep.subr.mxu1 %v4505_v2  ;;  %v845_v46 = vpop.f32.mrf.mxu1 }
 0x16b   :  { %2993 = vmatpush3.msra.mxu1 %v3780_v52  ;;  %v3881_v8 = vadd.f32 %v845_v46, %v100_v6  ;;  %3244 = vpow2.f32 %v2715_v12  ;;  %v4516_v12 = vld [vmem:[#allocation17_spill] sm:$0xff] }
 0x16c   :  { %2994 = vmatprep.subr.mxu1 %v4505_v2  ;;  %v2925_v5 = vpop.f32.mrf.mxu1 }
 0x16d   :  { %2995 = vmatpush3.msra.mxu1 %v3784_v53  ;;  %4507 = vst [vmem:[#allocation38_spill] sm:$0xff] %v3881_v8  ;;  %v247_v5 = vadd.f32 %v246_v43, %v100_v6  ;;  %v4513_v43 = vld [vmem:[#allocation20_spill] sm:$0xff] }
 0x16e   :  { %2996 = vmatprep.subr.mxu1 %v4505_v2  ;;  %v995_v45 = vpop.f32.mrf.mxu1 }
 0x16f   :  { %2997 = vmatpush3.msra.mxu1 %v3788_v54  ;;  %v3887_v63 = vadd.f32 %v995_v45, %v100_v6 }
 0x170   :  { %2998 = vmatprep.subr.mxu1 %v4505_v2  ;;  %v2932_v13 = vpop.f32.mrf.mxu1 }
 0x171   :  { %2999 = vmatpush3.msra.mxu1 %v3792_v55  ;;  %4508 = vst [vmem:[#allocation39_spill] sm:$0xff] %v3887_v63 }
 0x172   :  { %3000 = vmatprep.subr.mxu1 %v4505_v2  ;;  %v1145_v4 = vpop.f32.mrf.mxu1 }
 0x173   :  { %3001 = vmatpush3.msra.mxu1 %v3794_v56  ;;  %v3893_v7 = vadd.f32 %v1145_v4, %v100_v6 }
 0x174   :  { %3002 = vmatprep.subr.mxu1 %v4505_v2  ;;  %v2939_v44 = vpop.f32.mrf.mxu1 }
 0x175   :  { %3003 = vmatpush3.msra.mxu1 %v3798_v57  ;;  %4509 = vst [vmem:[#allocation40_spill] sm:$0xff] %v3893_v7 }
 0x176   :  { %3004 = vmatprep.subr.mxu1 %v4505_v2  ;;  %v1295_v1 = vpop.f32.mrf.mxu1 }
 0x177   :  { %3005 = vmatpush3.msra.mxu1 %v3802_v58  ;;  %v3899_v40 = vadd.f32 %v1295_v1, %v100_v6  ;;  %v4514_v6 = vld [vmem:[#allocation21_spill] sm:$0xff] }
 0x178   :  { %3006 = vmatprep.subr.mxu1 %v4505_v2  ;;  %v2946_v3 = vpop.f32.mrf.mxu1  ;;  %v3245_v46 = vpop.eup %3244 }
 0x179   :  { %3007 = vmatpush3.msra.mxu1 %v3806_v59  ;;  %4510 = vst [vmem:[#allocation41_spill] sm:$0xff] %v3899_v40  ;;  %v1434_v13 = vadd.f32 1.0, %v3245_v46 }
 0x17a   :  { %3008 = vmatprep.subr.mxu1 %v4505_v2 }
 0x17b   :  { %3009 = vmatpush3.msra.mxu1 %v3810_v60 }
 0x17c   :  { %3010 = vmatprep.subr.mxu1 %v4505_v2 }
 0x17d   :  { %3011 = vmatpush3.msra.mxu1 %v3814_v61 }
 0x17e   :  { %3012 = vmatprep.subr.mxu1 %v4505_v2 }
 0x17f   :  { %3013 = vmatpush3.msra.mxu1 %v3818_v62 }
 0x180   :  { %3017 = vmatprep.subr.mxu1 %v4505_v2 }
 0x220   :  { %v1507_v45 = vpop.f32.mrf.mxu1 }
 0x221   :  { %v1511_v4 = vadd.f32 %v1507_v45, %v247_v5  ;;  %v4517_v5 = vld [vmem:[#allocation23_spill] sm:$0xff] }
 0x222   :  { %v2981_v44 = vpop.f32.mrf.mxu1 }
 0x223   :  { %3246 = vtanh.f32 %v1511_v4  ;;  %v4518_v4 = vld [vmem:[#allocation24_spill] sm:$0xff] }
 0x224   :  { %3248 = vrcp.f32 %v1434_v13 }
 0x230   :  { %v3247_v1 = vpop.eup %3246 }
 0x231   :  { %v1513_v40 = vsub.f32 0.0, %v3247_v1  ;;  %v3249_v3 = vpop.eup %3248 }
 0x233   :  { %v1514_v41 = vmul.f32 %v3249_v3, %v1513_v40  ;;  %v4515_v40 = vld [vmem:[#allocation22_spill] sm:$0xff] }
 0x235   :  { %v3906_v42 = vadd.f32 %v3247_v1, %v1514_v41  ;;  %v4511_v41 = vld [vmem:[#allocation18_spill] sm:$0xff] }
 0x237   :  { %1516 = vst [vmem:[#allocation12] sm:$0xff] %v3906_v42  ;;  %1585 = vmatmul.mubr.f32.vlgmr.msra.gmra.mxu0 %v3906_v42 }
 0x238   :  { %1687 = vmatpush1.msra.mxu0 %v3578_v14  ;;  %1750 = vmatprep.mubr.f32.mxu0 %v4505_v2 }
 0x239   :  { %1688 = vmatprep.subr.mxu0 %v3580_v15 }
 0x23a   :  { %1689 = vmatpush1.msra.mxu0 %v3585_v16 }
 0x23b   :  { %1690 = vmatprep.subr.mxu0 %v3588_v17 }
 0x23c   :  { %1691 = vmatpush1.msra.mxu0 %v3592_v18 }
 0x23d   :  { %1692 = vmatprep.subr.mxu0 %v3595_v19 }
 0x23e   :  { %1693 = vmatpush1.msra.mxu0 %v3598_v20 }
 0x23f   :  { %1694 = vmatprep.subr.mxu0 %v3601_v21 }
 0x240   :  { %1695 = vmatpush1.msra.mxu0 %v3604_v22 }
 0x241   :  { %1696 = vmatprep.subr.mxu0 %v3607_v23 }
 0x242   :  { %1697 = vmatpush1.msra.mxu0 %v3610_v24 }
 0x243   :  { %1698 = vmatprep.subr.mxu0 %v3613_v25 }
 0x244   :  { %1699 = vmatpush1.msra.mxu0 %v3616_v26 }
 0x245   :  { %1700 = vmatprep.subr.mxu0 %v3619_v27 }
 0x246   :  { %1701 = vmatpush1.msra.mxu0 %v3622_v28 }
 0x247   :  { %1702 = vmatprep.subr.mxu0 %v3625_v29 }
 0x248   :  { %1703 = vmatpush1.msra.mxu0 %v3628_v30 }
 0x249   :  { %1704 = vmatprep.subr.mxu0 %v3631_v31 }
 0x24a   :  { %1705 = vmatpush1.msra.mxu0 %v3634_v32 }
 0x24b   :  { %1706 = vmatprep.subr.mxu0 %v3637_v33 }
 0x24c   :  { %1707 = vmatpush1.msra.mxu0 %v3640_v34 }
 0x24d   :  { %1708 = vmatprep.subr.mxu0 %v3643_v35 }
 0x24e   :  { %1709 = vmatpush1.msra.mxu0 %v3646_v36 }
 0x24f   :  { %1710 = vmatprep.subr.mxu0 %v3649_v37 }
 0x250   :  { %1711 = vmatpush1.msra.mxu0 %v3652_v38 }
 0x251   :  { %1712 = vmatprep.subr.mxu0 %v3655_v39 }
 0x252   :  { %1713 = vmatpush1.msra.mxu0 %v4511_v41 }
 0x253   :  { %1714 = vmatprep.subr.mxu0 %v4512_v11 }
 0x254   :  { %1715 = vmatpush1.msra.mxu0 %v4513_v43 }
 0x255   :  { %1716 = vmatprep.subr.mxu0 %v4514_v6 }
 0x256   :  { %1717 = vmatpush1.msra.mxu0 %v4515_v40 }
 0x257   :  { %1852 = vmatprep.subr.mxu0 %v4516_v12 }
 0x2f7   :  { %v1586_v46 = vpop.f32.mrf.mxu0 }
 0x2f8   :  { %v1591_v45 = vadd.f32 %v1586_v46, %v4517_v5 }
 0x2f9   :  { %v1588_v13 = vpop.f32.mrf.mxu0 }
 0x2fa   :  { %v1592_v44 = vadd.f32 %v1588_v13, %v4518_v4 }
 0x2fc   :  { %v2718_v1 = vmul.f32 -1.442695, %v1592_v44 }
 0x2fe   :  { %3250 = vpow2.f32 %v2718_v1 }
 0x30b   :  { %v3251_v3 = vpop.eup %3250 }
 0x30c   :  { %v1600_v7 = vadd.f32 1.0, %v3251_v3 }
 0x30e   :  { %3252 = vrcp.f32 %v1600_v7 }
 0x31b   :  { %v3253_v63 = vpop.eup %3252 }
 0x31c   :  { %v1605_v8 = vmul.f32 %v3253_v63, %v3906_v42 }
 0x31e   :  { %3015 = vmatmul.mubr.f32.vlgmr.msra.gmra.mxu1 %v1605_v8  ;;  %v2717_v8 = vmul.f32 -1.442695, %v1591_v45 }
 0x31f   :  { %3018 = vmatpush3.msra.mxu1 %v3760_v47  ;;  %3049 = vmatprep.mubr.msk.f32.mxu1 %vm3487_vm1, %v4505_v2 }
 0x320   :  { %3019 = vmatprep.subr.mxu1 %v4505_v2  ;;  %3254 = vpow2.f32 %v2717_v8 }
 0x321   :  { %3020 = vmatpush3.msra.mxu1 %v3764_v48 }
 0x322   :  { %3021 = vmatprep.subr.mxu1 %v4505_v2 }
 0x323   :  { %3022 = vmatpush3.msra.mxu1 %v3768_v49 }
 0x324   :  { %3023 = vmatprep.subr.mxu1 %v4505_v2 }
 0x325   :  { %3024 = vmatpush3.msra.mxu1 %v3772_v50 }
 0x326   :  { %3025 = vmatprep.subr.mxu1 %v4505_v2 }
 0x327   :  { %3026 = vmatpush3.msra.mxu1 %v3776_v51 }
 0x328   :  { %3027 = vmatprep.subr.mxu1 %v4505_v2 }
 0x329   :  { %3028 = vmatpush3.msra.mxu1 %v3780_v52 }
 0x32a   :  { %3029 = vmatprep.subr.mxu1 %v4505_v2 }
 0x32b   :  { %3030 = vmatpush3.msra.mxu1 %v3784_v53 }
 0x32c   :  { %3031 = vmatprep.subr.mxu1 %v4505_v2 }
 0x32d   :  { %3032 = vmatpush3.msra.mxu1 %v3788_v54  ;;  %v3255_v63 = vpop.eup %3254 }
 0x32e   :  { %3033 = vmatprep.subr.mxu1 %v4505_v2  ;;  %v1599_v46 = vadd.f32 1.0, %v3255_v63 }
 0x32f   :  { %3034 = vmatpush3.msra.mxu1 %v3792_v55 }
 0x330   :  { %3035 = vmatprep.subr.mxu1 %v4505_v2 }
 0x331   :  { %3036 = vmatpush3.msra.mxu1 %v3794_v56 }
 0x332   :  { %3037 = vmatprep.subr.mxu1 %v4505_v2 }
 0x333   :  { %3038 = vmatpush3.msra.mxu1 %v3798_v57 }
 0x334   :  { %3039 = vmatprep.subr.mxu1 %v4505_v2 }
 0x335   :  { %3040 = vmatpush3.msra.mxu1 %v3802_v58 }
 0x336   :  { %3041 = vmatprep.subr.mxu1 %v4505_v2 }
 0x337   :  { %3042 = vmatpush3.msra.mxu1 %v3806_v59 }
 0x338   :  { %3043 = vmatprep.subr.mxu1 %v4505_v2 }
 0x339   :  { %3044 = vmatpush3.msra.mxu1 %v3810_v60 }
 0x33a   :  { %3045 = vmatprep.subr.mxu1 %v4505_v2 }
 0x33b   :  { %3046 = vmatpush3.msra.mxu1 %v3814_v61 }
 0x33c   :  { %3047 = vmatprep.subr.mxu1 %v4505_v2 }
 0x33d   :  { %3048 = vmatpush3.msra.mxu1 %v3818_v62 }
 0x33e   :  { %3052 = vmatprep.subr.mxu1 %v4505_v2 }
 0x3de   :  { %v1672_v7 = vpop.f32.mrf.mxu1 }
 0x3df   :  { %v1676_v5 = vadd.f32 %v1672_v7, %v3863_v0 }
 0x3e0   :  { %v3016_v13 = vpop.f32.mrf.mxu1 }
 0x3e1   :  { %3256 = vtanh.f32 %v1676_v5 }
 0x3e2   :  { %3258 = vrcp.f32 %v1599_v46 }
 0x3ee   :  { %v3257_v4 = vpop.eup %3256 }
 0x3ef   :  { %v1678_v44 = vsub.f32 %v3906_v42, %v3257_v4  ;;  %v3259_v1 = vpop.eup %3258  ;;  %v4520_v42 = vld [vmem:[#allocation26_spill] sm:$0xff] }
 0x3f1   :  { %v1679_v3 = vmul.f32 %v3259_v1, %v1678_v44 }
 0x3f3   :  { %v3982_v10 = vadd.f32 %v3257_v4, %v1679_v3 }
 0x3f5   :  { %1682 = vst [vmem:[#allocation12 + $0x8] sm:$0xff] %v3982_v10  ;;  %1751 = vmatmul.mubr.f32.vlgmr.msra.gmra.mxu0 %v3982_v10 }
 0x3f6   :  { %1853 = vmatpush1.msra.mxu0 %v3578_v14  ;;  %1916 = vmatprep.mubr.f32.mxu0 %v4505_v2 }
 0x3f7   :  { %1854 = vmatprep.subr.mxu0 %v3580_v15  ;;  %v4519_v15 = vld [vmem:[#allocation25_spill] sm:$0xff] }
 0x3f8   :  { %1855 = vmatpush1.msra.mxu0 %v3585_v16 }
 0x3f9   :  { %1856 = vmatprep.subr.mxu0 %v3588_v17 }
 0x3fa   :  { %1857 = vmatpush1.msra.mxu0 %v3592_v18 }
 0x3fb   :  { %1858 = vmatprep.subr.mxu0 %v3595_v19 }
 0x3fc   :  { %1859 = vmatpush1.msra.mxu0 %v3598_v20 }
 0x3fd   :  { %1860 = vmatprep.subr.mxu0 %v3601_v21 }
 0x3fe   :  { %1861 = vmatpush1.msra.mxu0 %v3604_v22 }
 0x3ff   :  { %1862 = vmatprep.subr.mxu0 %v3607_v23 }
 0x400   :  { %1863 = vmatpush1.msra.mxu0 %v3610_v24 }
 0x401   :  { %1864 = vmatprep.subr.mxu0 %v3613_v25 }
 0x402   :  { %1865 = vmatpush1.msra.mxu0 %v3616_v26 }
 0x403   :  { %1866 = vmatprep.subr.mxu0 %v3619_v27 }
 0x404   :  { %1867 = vmatpush1.msra.mxu0 %v3622_v28 }
 0x405   :  { %1868 = vmatprep.subr.mxu0 %v3625_v29 }
 0x406   :  { %1869 = vmatpush1.msra.mxu0 %v3628_v30 }
 0x407   :  { %1870 = vmatprep.subr.mxu0 %v3631_v31 }
 0x408   :  { %1871 = vmatpush1.msra.mxu0 %v3634_v32 }
 0x409   :  { %1872 = vmatprep.subr.mxu0 %v3637_v33 }
 0x40a   :  { %1873 = vmatpush1.msra.mxu0 %v3640_v34 }
 0x40b   :  { %1874 = vmatprep.subr.mxu0 %v3643_v35 }
 0x40c   :  { %1875 = vmatpush1.msra.mxu0 %v3646_v36 }
 0x40d   :  { %1876 = vmatprep.subr.mxu0 %v3649_v37 }
 0x40e   :  { %1877 = vmatpush1.msra.mxu0 %v3652_v38 }
 0x40f   :  { %1878 = vmatprep.subr.mxu0 %v3655_v39 }
 0x410   :  { %1879 = vmatpush1.msra.mxu0 %v4511_v41 }
 0x411   :  { %1880 = vmatprep.subr.mxu0 %v4512_v11 }
 0x412   :  { %1881 = vmatpush1.msra.mxu0 %v4513_v43 }
 0x413   :  { %1882 = vmatprep.subr.mxu0 %v4514_v6 }
 0x414   :  { %1883 = vmatpush1.msra.mxu0 %v4515_v40 }
 0x415   :  { %2018 = vmatprep.subr.mxu0 %v4516_v12 }
 0x4b5   :  { %v1752_v14 = vpop.f32.mrf.mxu0 }
 0x4b6   :  { %v1757_v16 = vadd.f32 %v1752_v14, %v4519_v15 }
 0x4b7   :  { %v1754_v17 = vpop.f32.mrf.mxu0 }
 0x4b8   :  { %v1758_v0 = vadd.f32 %v1754_v17, %v4520_v42  ;;  %v2719_v12 = vmul.f32 -1.442695, %v1757_v16  ;;  %v4062_v16 = vld [vmem:[#allocation9 + $0xf0] sm:$0xff] }
 0x4ba   :  { %v2720_v45 = vmul.f32 -1.442695, %v1758_v0  ;;  %v4069_v0 = vld [vmem:[#allocation9 + $0xe0] sm:$0xff] }
 0x4bc   :  { %3260 = vpow2.f32 %v2720_v45  ;;  %v4162_v45 = vld [vmem:[#allocation9 + $0xb8] sm:$0xff] }
 0x4c9   :  { %v3261_v8 = vpop.eup %3260 }
 0x4ca   :  { %v1766_v63 = vadd.f32 1.0, %v3261_v8  ;;  %v4165_v8 = vld [vmem:[#allocation9 + $0xb0] sm:$0xff] }
 0x4cc   :  { %3262 = vrcp.f32 %v1766_v63  ;;  %v4168_v63 = vld [vmem:[#allocation9 + $0xa8] sm:$0xff] }
 0x4cd   :  { %3264 = vpow2.f32 %v2719_v12  ;;  %v4177_v12 = vld [vmem:[#allocation9 + $0x90] sm:$0xff] }
 0x4d9   :  { %v3263_v7 = vpop.eup %3262 }
 0x4da   :  { %v1771_v46 = vmul.f32 %v3263_v7, %v3982_v10  ;;  %v3265_v5 = vpop.eup %3264  ;;  %v4171_v7 = vld [vmem:[#allocation9 + $0xa0] sm:$0xff] }
 0x4db   :  { %v1765_v4 = vadd.f32 1.0, %v3265_v5  ;;  %v4180_v5 = vld [vmem:[#allocation9 + $0x88] sm:$0xff] }
 0x4dc   :  { %3050 = vmatmul.mubr.f32.vlgmr.msra.gmra.mxu1 %v1771_v46  ;;  %v4174_v46 = vld [vmem:[#allocation9 + $0x98] sm:$0xff] }
 0x4dd   :  { %3053 = vmatpush3.msra.mxu1 %v3760_v47  ;;  %3084 = vmatprep.mubr.msk.f32.mxu1 %vm3487_vm1, %v4505_v2 }
 0x4de   :  { %3054 = vmatprep.subr.mxu1 %v4505_v2 }
 0x4df   :  { %3055 = vmatpush3.msra.mxu1 %v3764_v48 }
 0x4e0   :  { %3056 = vmatprep.subr.mxu1 %v4505_v2 }
 0x4e1   :  { %3057 = vmatpush3.msra.mxu1 %v3768_v49 }
 0x4e2   :  { %3058 = vmatprep.subr.mxu1 %v4505_v2 }
 0x4e3   :  { %3059 = vmatpush3.msra.mxu1 %v3772_v50 }
 0x4e4   :  { %3060 = vmatprep.subr.mxu1 %v4505_v2 }
 0x4e5   :  { %3061 = vmatpush3.msra.mxu1 %v3776_v51 }
 0x4e6   :  { %3062 = vmatprep.subr.mxu1 %v4505_v2 }
 0x4e7   :  { %3063 = vmatpush3.msra.mxu1 %v3780_v52 }
 0x4e8   :  { %3064 = vmatprep.subr.mxu1 %v4505_v2 }
 0x4e9   :  { %3065 = vmatpush3.msra.mxu1 %v3784_v53 }
 0x4ea   :  { %3066 = vmatprep.subr.mxu1 %v4505_v2 }
 0x4eb   :  { %3067 = vmatpush3.msra.mxu1 %v3788_v54 }
 0x4ec   :  { %3068 = vmatprep.subr.mxu1 %v4505_v2 }
 0x4ed   :  { %3069 = vmatpush3.msra.mxu1 %v3792_v55 }
 0x4ee   :  { %3070 = vmatprep.subr.mxu1 %v4505_v2 }
 0x4ef   :  { %3071 = vmatpush3.msra.mxu1 %v3794_v56 }
 0x4f0   :  { %3072 = vmatprep.subr.mxu1 %v4505_v2 }
 0x4f1   :  { %3073 = vmatpush3.msra.mxu1 %v3798_v57 }
 0x4f2   :  { %3074 = vmatprep.subr.mxu1 %v4505_v2 }
 0x4f3   :  { %3075 = vmatpush3.msra.mxu1 %v3802_v58 }
 0x4f4   :  { %3076 = vmatprep.subr.mxu1 %v4505_v2 }
 0x4f5   :  { %3077 = vmatpush3.msra.mxu1 %v3806_v59 }
 0x4f6   :  { %3078 = vmatprep.subr.mxu1 %v4505_v2 }
 0x4f7   :  { %3079 = vmatpush3.msra.mxu1 %v3810_v60 }
 0x4f8   :  { %3080 = vmatprep.subr.mxu1 %v4505_v2 }
 0x4f9   :  { %3081 = vmatpush3.msra.mxu1 %v3814_v61 }
 0x4fa   :  { %3082 = vmatprep.subr.mxu1 %v4505_v2 }
 0x4fb   :  { %3083 = vmatpush3.msra.mxu1 %v3818_v62 }
 0x4fc   :  { %3087 = vmatprep.subr.mxu1 %v4505_v2 }
 0x59c   :  { %v1838_v13 = vpop.f32.mrf.mxu1 }
 0x59d   :  { %v1842_v44 = vadd.f32 %v1838_v13, %v3869_v9  ;;  %v4066_v9 = vld [vmem:[#allocation9 + $0xe8] sm:$0xff]  ;;  %v4183_v13 = vld [vmem:[#allocation9 + $0x80] sm:$0xff] }
 0x59e   :  { %v3051_v1 = vpop.f32.mrf.mxu1 }
 0x59f   :  { %3266 = vtanh.f32 %v1842_v44  ;;  %v4189_v44 = vld [vmem:[#allocation9 + $0x70] sm:$0xff]  ;;  %v4192_v1 = vld [vmem:[#allocation9 + $0x68] sm:$0xff] }
 0x5a0   :  { %3268 = vrcp.f32 %v1765_v4  ;;  %v4186_v4 = vld [vmem:[#allocation9 + $0x78] sm:$0xff] }
 0x5ac   :  { %v3267_v3 = vpop.eup %3266 }
 0x5ad   :  { %v1844_v14 = vsub.f32 %v3982_v10, %v3267_v3  ;;  %v3269_v15 = vpop.eup %3268  ;;  %v4072_v10 = vld [vmem:[#allocation9 + $0xd8] sm:$0xff] }
 0x5af   :  { %v1845_v17 = vmul.f32 %v3269_v15, %v1844_v14  ;;  %v4198_v14 = vld [vmem:[#allocation9 + $0x58] sm:$0xff]  ;;  %v4201_v15 = vld [vmem:[#allocation9 + $0x50] sm:$0xff] }
 0x5b1   :  { %v4058_v42 = vadd.f32 %v3267_v3, %v1845_v17  ;;  %v4195_v3 = vld [vmem:[#allocation9 + $0x60] sm:$0xff]  ;;  %v4204_v17 = vld [vmem:[#allocation9 + $0x48] sm:$0xff] }
 0x5b3   :  { %1848 = vst [vmem:[#allocation12 + $0x10] sm:$0xff] %v4058_v42  ;;  %1917 = vmatmul.mubr.f32.vlgmr.msra.gmra.mxu0 %v4058_v42 }
 0x5b4   :  { %2019 = vmatpush1.msra.mxu0 %v4062_v16  ;;  %2082 = vmatprep.mubr.f32.mxu0 %v4505_v2 }
 0x5b5   :  { %2020 = vmatprep.subr.mxu0 %v4066_v9 }
 0x5b6   :  { %2021 = vmatpush1.msra.mxu0 %v4069_v0 }
 0x5b7   :  { %2022 = vmatprep.subr.mxu0 %v4072_v10 }
 0x5b8   :  { %2023 = vmatpush1.msra.mxu0 %v3592_v18  ;;  %v4102_v18 = vld [vmem:[#allocation9 + $0xf8] sm:$0xff] }
 0x5b9   :  { %2024 = vmatprep.subr.mxu0 %v3595_v19 }
 0x5ba   :  { %2025 = vmatpush1.msra.mxu0 %v3598_v20  ;;  %v4521_v20 = vld [vmem:[#allocation27_spill] sm:$0xff] }
 0x5bb   :  { %2026 = vmatprep.subr.mxu0 %v3601_v21 }
 0x5bc   :  { %2027 = vmatpush1.msra.mxu0 %v3604_v22 }
 0x5bd   :  { %2028 = vmatprep.subr.mxu0 %v3607_v23  ;;  %v4522_v23 = vld [vmem:[#allocation28_spill] sm:$0xff] }
 0x5be   :  { %2029 = vmatpush1.msra.mxu0 %v3610_v24 }
 0x5bf   :  { %2030 = vmatprep.subr.mxu0 %v3613_v25 }
 0x5c0   :  { %2031 = vmatpush1.msra.mxu0 %v3616_v26 }
 0x5c1   :  { %2032 = vmatprep.subr.mxu0 %v3619_v27 }
 0x5c2   :  { %2033 = vmatpush1.msra.mxu0 %v3622_v28 }
 0x5c3   :  { %2034 = vmatprep.subr.mxu0 %v3625_v29 }
 0x5c4   :  { %2035 = vmatpush1.msra.mxu0 %v3628_v30 }
 0x5c5   :  { %2036 = vmatprep.subr.mxu0 %v3631_v31 }
 0x5c6   :  { %2037 = vmatpush1.msra.mxu0 %v3634_v32 }
 0x5c7   :  { %2038 = vmatprep.subr.mxu0 %v3637_v33 }
 0x5c8   :  { %2039 = vmatpush1.msra.mxu0 %v3640_v34  ;;  %v4523_v34 = vld [vmem:[#allocation37_spill] sm:$0xff] }
 0x5c9   :  { %2040 = vmatprep.subr.mxu0 %v3643_v35 }
 0x5ca   :  { %2041 = vmatpush1.msra.mxu0 %v3646_v36 }
 0x5cb   :  { %2042 = vmatprep.subr.mxu0 %v3649_v37 }
 0x5cc   :  { %2043 = vmatpush1.msra.mxu0 %v3652_v38 }
 0x5cd   :  { %2044 = vmatprep.subr.mxu0 %v3655_v39 }
 0x5ce   :  { %2045 = vmatpush1.msra.mxu0 %v4511_v41 }
 0x5cf   :  { %2046 = vmatprep.subr.mxu0 %v4512_v11 }
 0x5d0   :  { %2047 = vmatpush1.msra.mxu0 %v4513_v43  ;;  %v4153_v43 = vld [vmem:[#allocation9 + $0xd0] sm:$0xff] }
 0x5d1   :  { %2048 = vmatprep.subr.mxu0 %v4514_v6  ;;  %v4156_v6 = vld [vmem:[#allocation9 + $0xc8] sm:$0xff] }
 0x5d2   :  { %2049 = vmatpush1.msra.mxu0 %v4515_v40  ;;  %v4159_v40 = vld [vmem:[#allocation9 + $0xc0] sm:$0xff] }
 0x5d3   :  { %2184 = vmatprep.subr.mxu0 %v4102_v18 }
 0x673   :  { %v1918_v19 = vpop.f32.mrf.mxu0 }
 0x674   :  { %v1923_v21 = vadd.f32 %v1918_v19, %v4521_v20  ;;  %v4210_v19 = vld [vmem:[#allocation9 + $0x38] sm:$0xff]  ;;  %v4213_v20 = vld [vmem:[#allocation9 + $0x30] sm:$0xff] }
 0x675   :  { %v1920_v22 = vpop.f32.mrf.mxu0 }
 0x676   :  { %v1924_v24 = vadd.f32 %v1920_v22, %v4522_v23  ;;  %v2721_v30 = vmul.f32 -1.442695, %v1923_v21  ;;  %v4216_v21 = vld [vmem:[#allocation9 + $0x28] sm:$0xff]  ;;  %v4219_v22 = vld [vmem:[#allocation9 + $0x20] sm:$0xff]  ;;  %v4222_v23 = vld [vmem:[#allocation9 + $0x18] sm:$0xff] }
 0x678   :  { %v2722_v25 = vmul.f32 -1.442695, %v1924_v24  ;;  %v4225_v24 = vld [vmem:[#allocation9 + $0x10] sm:$0xff] }
 0x67a   :  { %3270 = vpow2.f32 %v2722_v25  ;;  %v4228_v25 = vld [vmem:[#allocation9 + $0x8] sm:$0xff] }
 0x687   :  { %v3271_v26 = vpop.eup %3270 }
 0x688   :  { %v1932_v27 = vadd.f32 1.0, %v3271_v26  ;;  %v4231_v26 = vld [vmem:[#allocation9] sm:$0xff] }
 0x68a   :  { %3272 = vrcp.f32 %v1932_v27 }
 0x68b   :  { %3274 = vpow2.f32 %v2721_v30 }
 0x697   :  { %v3273_v28 = vpop.eup %3272 }
 0x698   :  { %v1937_v29 = vmul.f32 %v3273_v28, %v4058_v42  ;;  %v3275_v31 = vpop.eup %3274  ;;  %v4524_v28 = vld [vmem:[#allocation29_spill] sm:$0xff] }
 0x699   :  { %v1931_v33 = vadd.f32 1.0, %v3275_v31  ;;  %v4525_v31 = vld [vmem:[#allocation30_spill] sm:$0xff] }
 0x69a   :  { %3085 = vmatmul.mubr.f32.vlgmr.msra.gmra.mxu1 %v1937_v29 }
 0x69b   :  { %3088 = vmatpush3.msra.mxu1 %v3760_v47  ;;  %3119 = vmatprep.mubr.msk.f32.mxu1 %vm3487_vm1, %v4505_v2 }
 0x69c   :  { %3089 = vmatprep.subr.mxu1 %v4505_v2 }
 0x69d   :  { %3090 = vmatpush3.msra.mxu1 %v3764_v48 }
 0x69e   :  { %3091 = vmatprep.subr.mxu1 %v4505_v2 }
 0x69f   :  { %3092 = vmatpush3.msra.mxu1 %v3768_v49 }
 0x6a0   :  { %3093 = vmatprep.subr.mxu1 %v4505_v2 }
 0x6a1   :  { %3094 = vmatpush3.msra.mxu1 %v3772_v50 }
 0x6a2   :  { %3095 = vmatprep.subr.mxu1 %v4505_v2 }
 0x6a3   :  { %3096 = vmatpush3.msra.mxu1 %v3776_v51 }
 0x6a4   :  { %3097 = vmatprep.subr.mxu1 %v4505_v2 }
 0x6a5   :  { %3098 = vmatpush3.msra.mxu1 %v3780_v52 }
 0x6a6   :  { %3099 = vmatprep.subr.mxu1 %v4505_v2 }
 0x6a7   :  { %3100 = vmatpush3.msra.mxu1 %v3784_v53 }
 0x6a8   :  { %3101 = vmatprep.subr.mxu1 %v4505_v2 }
 0x6a9   :  { %3102 = vmatpush3.msra.mxu1 %v3788_v54 }
 0x6aa   :  { %3103 = vmatprep.subr.mxu1 %v4505_v2 }
 0x6ab   :  { %3104 = vmatpush3.msra.mxu1 %v3792_v55 }
 0x6ac   :  { %3105 = vmatprep.subr.mxu1 %v4505_v2 }
 0x6ad   :  { %3106 = vmatpush3.msra.mxu1 %v3794_v56 }
 0x6ae   :  { %3107 = vmatprep.subr.mxu1 %v4505_v2 }
 0x6af   :  { %3108 = vmatpush3.msra.mxu1 %v3798_v57 }
 0x6b0   :  { %3109 = vmatprep.subr.mxu1 %v4505_v2 }
 0x6b1   :  { %3110 = vmatpush3.msra.mxu1 %v3802_v58 }
 0x6b2   :  { %3111 = vmatprep.subr.mxu1 %v4505_v2 }
 0x6b3   :  { %3112 = vmatpush3.msra.mxu1 %v3806_v59 }
 0x6b4   :  { %3113 = vmatprep.subr.mxu1 %v4505_v2 }
 0x6b5   :  { %3114 = vmatpush3.msra.mxu1 %v3810_v60 }
 0x6b6   :  { %3115 = vmatprep.subr.mxu1 %v4505_v2 }
 0x6b7   :  { %3116 = vmatpush3.msra.mxu1 %v3814_v61 }
 0x6b8   :  { %3117 = vmatprep.subr.mxu1 %v4505_v2 }
 0x6b9   :  { %3118 = vmatpush3.msra.mxu1 %v3818_v62 }
 0x6ba   :  { %3122 = vmatprep.subr.mxu1 %v4505_v2 }
 0x75a   :  { %v2004_v32 = vpop.f32.mrf.mxu1 }
 0x75b   :  { %v2008_v35 = vadd.f32 %v2004_v32, %v4523_v34 }
 0x75c   :  { %v3086_v36 = vpop.f32.mrf.mxu1 }
 0x75d   :  { %3276 = vtanh.f32 %v2008_v35 }
 0x75e   :  { %3278 = vrcp.f32 %v1931_v33 }
 0x76a   :  { %v3277_v37 = vpop.eup %3276 }
 0x76b   :  { %v2010_v38 = vsub.f32 %v4058_v42, %v3277_v37  ;;  %v3279_v39 = vpop.eup %3278  ;;  %v4207_v42 = vld [vmem:[#allocation9 + $0x40] sm:$0xff] }
 0x76d   :  { %v2011_v41 = vmul.f32 %v3279_v39, %v2010_v38  ;;  %v4528_v38 = vld [vmem:[#allocation32_spill] sm:$0xff] }
 0x76f   :  { %v4144_v11 = vadd.f32 %v3277_v37, %v2011_v41 }
 0x771   :  { %2014 = vst [vmem:[#allocation12 + $0x18] sm:$0xff] %v4144_v11  ;;  %2083 = vmatmul.mubr.f32.vlgmr.msra.gmra.mxu0 %v4144_v11 }
 0x772   :  { %2185 = vmatpush1.msra.mxu0 %v4062_v16  ;;  %2248 = vmatprep.mubr.f32.mxu0 %v4505_v2 }
 0x773   :  { %2186 = vmatprep.subr.mxu0 %v4066_v9 }
 0x774   :  { %2187 = vmatpush1.msra.mxu0 %v4069_v0 }
 0x775   :  { %2188 = vmatprep.subr.mxu0 %v4072_v10 }
 0x776   :  { %2189 = vmatpush1.msra.mxu0 %v4153_v43 }
 0x777   :  { %2190 = vmatprep.subr.mxu0 %v4156_v6 }
 0x778   :  { %2191 = vmatpush1.msra.mxu0 %v4159_v40 }
 0x779   :  { %2192 = vmatprep.subr.mxu0 %v4162_v45 }
 0x77a   :  { %2193 = vmatpush1.msra.mxu0 %v4165_v8 }
 0x77b   :  { %2194 = vmatprep.subr.mxu0 %v4168_v63 }
 0x77c   :  { %2195 = vmatpush1.msra.mxu0 %v4171_v7 }
 0x77d   :  { %2196 = vmatprep.subr.mxu0 %v4174_v46 }
 0x77e   :  { %2197 = vmatpush1.msra.mxu0 %v4177_v12 }
 0x77f   :  { %2198 = vmatprep.subr.mxu0 %v4180_v5 }
 0x780   :  { %2199 = vmatpush1.msra.mxu0 %v4183_v13 }
 0x781   :  { %2200 = vmatprep.subr.mxu0 %v4186_v4 }
 0x782   :  { %2201 = vmatpush1.msra.mxu0 %v4189_v44 }
 0x783   :  { %2202 = vmatprep.subr.mxu0 %v4192_v1 }
 0x784   :  { %2203 = vmatpush1.msra.mxu0 %v4195_v3 }
 0x785   :  { %2204 = vmatprep.subr.mxu0 %v4198_v14 }
 0x786   :  { %2205 = vmatpush1.msra.mxu0 %v4201_v15 }
 0x787   :  { %2206 = vmatprep.subr.mxu0 %v4204_v17 }
 0x788   :  { %2207 = vmatpush1.msra.mxu0 %v4207_v42 }
 0x789   :  { %2208 = vmatprep.subr.mxu0 %v4210_v19 }
 0x78a   :  { %2209 = vmatpush1.msra.mxu0 %v4213_v20 }
 0x78b   :  { %2210 = vmatprep.subr.mxu0 %v4216_v21 }
 0x78c   :  { %2211 = vmatpush1.msra.mxu0 %v4219_v22 }
 0x78d   :  { %2212 = vmatprep.subr.mxu0 %v4222_v23 }
 0x78e   :  { %2213 = vmatpush1.msra.mxu0 %v4225_v24 }
 0x78f   :  { %2214 = vmatprep.subr.mxu0 %v4228_v25 }
 0x790   :  { %2215 = vmatpush1.msra.mxu0 %v4231_v26 }
 0x791   :  { %2350 = vmatprep.subr.mxu0 %v4102_v18 }
 0x831   :  { %v2084_v27 = vpop.f32.mrf.mxu0 }
 0x832   :  { %v2089_v29 = vadd.f32 %v2084_v27, %v4524_v28 }
 0x833   :  { %v2086_v30 = vpop.f32.mrf.mxu0 }
 0x834   :  { %v2090_v32 = vadd.f32 %v2086_v30, %v4525_v31  ;;  %v4314_v30 = vld [vmem:[#allocation10 + $0x78] sm:$0xff]  ;;  %v4324_v31 = vld [vmem:[#allocation10 + $0x68] sm:$0xff] }
 0x836   :  { %v2724_v33 = vmul.f32 -1.442695, %v2090_v32  ;;  %v4328_v32 = vld [vmem:[#allocation10 + $0x60] sm:$0xff] }
 0x838   :  { %3280 = vpow2.f32 %v2724_v33  ;;  %v4332_v33 = vld [vmem:[#allocation10 + $0x58] sm:$0xff] }
 0x845   :  { %v3281_v34 = vpop.eup %3280 }
 0x846   :  { %v2098_v35 = vadd.f32 1.0, %v3281_v34  ;;  %v4336_v34 = vld [vmem:[#allocation10 + $0x50] sm:$0xff] }
 0x848   :  { %3282 = vrcp.f32 %v2098_v35  ;;  %v4340_v35 = vld [vmem:[#allocation10 + $0x48] sm:$0xff] }
 0x855   :  { %v3283_v36 = vpop.eup %3282 }
 0x856   :  { %v2103_v37 = vmul.f32 %v3283_v36, %v4144_v11  ;;  %v4344_v36 = vld [vmem:[#allocation10 + $0x40] sm:$0xff] }
 0x858   :  { %3120 = vmatmul.mubr.f32.vlgmr.msra.gmra.mxu1 %v2103_v37  ;;  %v4348_v37 = vld [vmem:[#allocation10 + $0x38] sm:$0xff] }
 0x859   :  { %3123 = vmatpush3.msra.mxu1 %v3760_v47  ;;  %3154 = vmatprep.mubr.msk.f32.mxu1 %vm3487_vm1, %v4505_v2  ;;  %v2723_v47 = vmul.f32 -1.442695, %v2089_v29 }
 0x85a   :  { %3124 = vmatprep.subr.mxu1 %v4505_v2 }
 0x85b   :  { %3125 = vmatpush3.msra.mxu1 %v3764_v48  ;;  %3284 = vpow2.f32 %v2723_v47  ;;  %v4352_v47 = vld [vmem:[#allocation10 + $0x30] sm:$0xff] }
 0x85c   :  { %3126 = vmatprep.subr.mxu1 %v4505_v2 }
 0x85d   :  { %3127 = vmatpush3.msra.mxu1 %v3768_v49 }
 0x85e   :  { %3128 = vmatprep.subr.mxu1 %v4505_v2 }
 0x85f   :  { %3129 = vmatpush3.msra.mxu1 %v3772_v50 }
 0x860   :  { %3130 = vmatprep.subr.mxu1 %v4505_v2 }
 0x861   :  { %3131 = vmatpush3.msra.mxu1 %v3776_v51  ;;  %v4526_v51 = vld [vmem:[#allocation38_spill] sm:$0xff] }
 0x862   :  { %3132 = vmatprep.subr.mxu1 %v4505_v2 }
 0x863   :  { %3133 = vmatpush3.msra.mxu1 %v3780_v52 }
 0x864   :  { %3134 = vmatprep.subr.mxu1 %v4505_v2 }
 0x865   :  { %3135 = vmatpush3.msra.mxu1 %v3784_v53 }
 0x866   :  { %3136 = vmatprep.subr.mxu1 %v4505_v2 }
 0x867   :  { %3137 = vmatpush3.msra.mxu1 %v3788_v54 }
 0x868   :  { %3138 = vmatprep.subr.mxu1 %v4505_v2  ;;  %v3285_v48 = vpop.eup %3284 }
 0x869   :  { %3139 = vmatpush3.msra.mxu1 %v3792_v55  ;;  %v2097_v50 = vadd.f32 1.0, %v3285_v48  ;;  %v4356_v48 = vld [vmem:[#allocation10 + $0x28] sm:$0xff] }
 0x86a   :  { %3140 = vmatprep.subr.mxu1 %v4505_v2 }
 0x86b   :  { %3141 = vmatpush3.msra.mxu1 %v3794_v56 }
 0x86c   :  { %3142 = vmatprep.subr.mxu1 %v4505_v2 }
 0x86d   :  { %3143 = vmatpush3.msra.mxu1 %v3798_v57 }
 0x86e   :  { %3144 = vmatprep.subr.mxu1 %v4505_v2 }
 0x86f   :  { %3145 = vmatpush3.msra.mxu1 %v3802_v58 }
 0x870   :  { %3146 = vmatprep.subr.mxu1 %v4505_v2 }
 0x871   :  { %3147 = vmatpush3.msra.mxu1 %v3806_v59 }
 0x872   :  { %3148 = vmatprep.subr.mxu1 %v4505_v2 }
 0x873   :  { %3149 = vmatpush3.msra.mxu1 %v3810_v60  ;;  %v4527_v60 = vld [vmem:[#allocation31_spill] sm:$0xff] }
 0x874   :  { %3150 = vmatprep.subr.mxu1 %v4505_v2 }
 0x875   :  { %3151 = vmatpush3.msra.mxu1 %v3814_v61 }
 0x876   :  { %3152 = vmatprep.subr.mxu1 %v4505_v2 }
 0x877   :  { %3153 = vmatpush3.msra.mxu1 %v3818_v62 }
 0x878   :  { %3157 = vmatprep.subr.mxu1 %v4505_v2 }
 0x918   :  { %v2170_v49 = vpop.f32.mrf.mxu1 }
 0x919   :  { %v2174_v52 = vadd.f32 %v2170_v49, %v4526_v51  ;;  %v4360_v49 = vld [vmem:[#allocation10 + $0x20] sm:$0xff]  ;;  %v4368_v51 = vld [vmem:[#allocation10 + $0x10] sm:$0xff] }
 0x91a   :  { %v3121_v53 = vpop.f32.mrf.mxu1 }
 0x91b   :  { %3286 = vtanh.f32 %v2174_v52  ;;  %v4372_v52 = vld [vmem:[#allocation10 + $0x8] sm:$0xff]  ;;  %v4376_v53 = vld [vmem:[#allocation10] sm:$0xff] }
 0x91c   :  { %3288 = vrcp.f32 %v2097_v50  ;;  %v4364_v50 = vld [vmem:[#allocation10 + $0x18] sm:$0xff] }
 0x928   :  { %v3287_v54 = vpop.eup %3286 }
 0x929   :  { %v2176_v55 = vsub.f32 %v4144_v11, %v3287_v54  ;;  %v3289_v56 = vpop.eup %3288 }
 0x92b   :  { %v2177_v57 = vmul.f32 %v3289_v56, %v2176_v55 }
 0x92d   :  { %v4274_v58 = vadd.f32 %v3287_v54, %v2177_v57 }
 0x92f   :  { %2180 = vst [vmem:[#allocation12 + $0x20] sm:$0xff] %v4274_v58  ;;  %2249 = vmatmul.mubr.f32.vlgmr.msra.gmra.mxu0 %v4274_v58 }
 0x930   :  { %2351 = vmatpush1.msra.mxu0 %v4062_v16  ;;  %2414 = vmatprep.mubr.f32.mxu0 %v4505_v2 }
 0x931   :  { %2352 = vmatprep.subr.mxu0 %v4066_v9 }
 0x932   :  { %2353 = vmatpush1.msra.mxu0 %v4069_v0 }
 0x933   :  { %2354 = vmatprep.subr.mxu0 %v4072_v10 }
 0x934   :  { %2355 = vmatpush1.msra.mxu0 %v4153_v43 }
 0x935   :  { %2356 = vmatprep.subr.mxu0 %v4156_v6 }
 0x936   :  { %2357 = vmatpush1.msra.mxu0 %v4159_v40 }
 0x937   :  { %2358 = vmatprep.subr.mxu0 %v4162_v45 }
 0x938   :  { %2359 = vmatpush1.msra.mxu0 %v4165_v8 }
 0x939   :  { %2360 = vmatprep.subr.mxu0 %v4168_v63 }
 0x93a   :  { %2361 = vmatpush1.msra.mxu0 %v4171_v7 }
 0x93b   :  { %2362 = vmatprep.subr.mxu0 %v4174_v46 }
 0x93c   :  { %2363 = vmatpush1.msra.mxu0 %v4177_v12 }
 0x93d   :  { %2364 = vmatprep.subr.mxu0 %v4180_v5 }
 0x93e   :  { %2365 = vmatpush1.msra.mxu0 %v4183_v13 }
 0x93f   :  { %2366 = vmatprep.subr.mxu0 %v4186_v4 }
 0x940   :  { %2367 = vmatpush1.msra.mxu0 %v4189_v44 }
 0x941   :  { %2368 = vmatprep.subr.mxu0 %v4192_v1 }
 0x942   :  { %2369 = vmatpush1.msra.mxu0 %v4195_v3 }
 0x943   :  { %2370 = vmatprep.subr.mxu0 %v4198_v14 }
 0x944   :  { %2371 = vmatpush1.msra.mxu0 %v4201_v15 }
 0x945   :  { %2372 = vmatprep.subr.mxu0 %v4204_v17 }
 0x946   :  { %2373 = vmatpush1.msra.mxu0 %v4207_v42 }
 0x947   :  { %2374 = vmatprep.subr.mxu0 %v4210_v19 }
 0x948   :  { %2375 = vmatpush1.msra.mxu0 %v4213_v20 }
 0x949   :  { %2376 = vmatprep.subr.mxu0 %v4216_v21 }
 0x94a   :  { %2377 = vmatpush1.msra.mxu0 %v4219_v22 }
 0x94b   :  { %2378 = vmatprep.subr.mxu0 %v4222_v23 }
 0x94c   :  { %2379 = vmatpush1.msra.mxu0 %v4225_v24 }
 0x94d   :  { %2380 = vmatprep.subr.mxu0 %v4228_v25 }
 0x94e   :  { %2381 = vmatpush1.msra.mxu0 %v4231_v26 }
 0x94f   :  { %2516 = vmatprep.subr.mxu0 %v4102_v18  ;;  %v4320_v18 = vld [vmem:[#allocation10 + $0x70] sm:$0xff] }
 0x9ef   :  { %v2250_v59 = vpop.f32.mrf.mxu0 }
 0x9f0   :  { %v2255_v61 = vadd.f32 %v2250_v59, %v4527_v60  ;;  %v4529_v59 = vld [vmem:[#allocation39_spill] sm:$0xff] }
 0x9f1   :  { %v2252_v62 = vpop.f32.mrf.mxu0 }
 0x9f2   :  { %v2256_v39 = vadd.f32 %v2252_v62, %v4528_v38  ;;  %v2725_v54 = vmul.f32 -1.442695, %v2255_v61 }
 0x9f4   :  { %v2726_v41 = vmul.f32 -1.442695, %v2256_v39 }
 0x9f6   :  { %3290 = vpow2.f32 %v2726_v41 }
 0xa03   :  { %v3291_v11 = vpop.eup %3290 }
 0xa04   :  { %v2264_v27 = vadd.f32 1.0, %v3291_v11 }
 0xa06   :  { %3292 = vrcp.f32 %v2264_v27 }
 0xa07   :  { %3294 = vpow2.f32 %v2725_v54 }
 0xa13   :  { %v3293_v28 = vpop.eup %3292 }
 0xa14   :  { %v2269_v29 = vmul.f32 %v3293_v28, %v4274_v58  ;;  %v3295_v55 = vpop.eup %3294 }
 0xa15   :  { %v2263_v57 = vadd.f32 1.0, %v3295_v55 }
 0xa16   :  { %3155 = vmatmul.mubr.f32.vlgmr.msra.gmra.mxu1 %v2269_v29 }
 0xa17   :  { %3158 = vmatpush3.msra.mxu1 %v4314_v30  ;;  %3189 = vmatprep.mubr.msk.f32.mxu1 %vm3487_vm1, %v4505_v2 }
 0xa18   :  { %3159 = vmatprep.subr.mxu1 %v4505_v2 }
 0xa19   :  { %3160 = vmatpush3.msra.mxu1 %v4320_v18 }
 0xa1a   :  { %3161 = vmatprep.subr.mxu1 %v4505_v2 }
 0xa1b   :  { %3162 = vmatpush3.msra.mxu1 %v4324_v31 }
 0xa1c   :  { %3163 = vmatprep.subr.mxu1 %v4505_v2 }
 0xa1d   :  { %3164 = vmatpush3.msra.mxu1 %v4328_v32 }
 0xa1e   :  { %3165 = vmatprep.subr.mxu1 %v4505_v2 }
 0xa1f   :  { %3166 = vmatpush3.msra.mxu1 %v4332_v33 }
 0xa20   :  { %3167 = vmatprep.subr.mxu1 %v4505_v2 }
 0xa21   :  { %3168 = vmatpush3.msra.mxu1 %v4336_v34 }
 0xa22   :  { %3169 = vmatprep.subr.mxu1 %v4505_v2 }
 0xa23   :  { %3170 = vmatpush3.msra.mxu1 %v4340_v35 }
 0xa24   :  { %3171 = vmatprep.subr.mxu1 %v4505_v2 }
 0xa25   :  { %3172 = vmatpush3.msra.mxu1 %v4344_v36 }
 0xa26   :  { %3173 = vmatprep.subr.mxu1 %v4505_v2 }
 0xa27   :  { %3174 = vmatpush3.msra.mxu1 %v4348_v37 }
 0xa28   :  { %3175 = vmatprep.subr.mxu1 %v4505_v2 }
 0xa29   :  { %3176 = vmatpush3.msra.mxu1 %v4352_v47 }
 0xa2a   :  { %3177 = vmatprep.subr.mxu1 %v4505_v2 }
 0xa2b   :  { %3178 = vmatpush3.msra.mxu1 %v4356_v48 }
 0xa2c   :  { %3179 = vmatprep.subr.mxu1 %v4505_v2 }
 0xa2d   :  { %3180 = vmatpush3.msra.mxu1 %v4360_v49 }
 0xa2e   :  { %3181 = vmatprep.subr.mxu1 %v4505_v2 }
 0xa2f   :  { %3182 = vmatpush3.msra.mxu1 %v4364_v50 }
 0xa30   :  { %3183 = vmatprep.subr.mxu1 %v4505_v2 }
 0xa31   :  { %3184 = vmatpush3.msra.mxu1 %v4368_v51 }
 0xa32   :  { %3185 = vmatprep.subr.mxu1 %v4505_v2 }
 0xa33   :  { %3186 = vmatpush3.msra.mxu1 %v4372_v52 }
 0xa34   :  { %3187 = vmatprep.subr.mxu1 %v4505_v2 }
 0xa35   :  { %3188 = vmatpush3.msra.mxu1 %v4376_v53 }
 0xa36   :  { %3192 = vmatprep.subr.mxu1 %v4505_v2 }
 0xad6   :  { %v2336_v56 = vpop.f32.mrf.mxu1 }
 0xad7   :  { %v2340_v60 = vadd.f32 %v2336_v56, %v4529_v59 }
 0xad8   :  { %v3156_v62 = vpop.f32.mrf.mxu1 }
 0xad9   :  { %3296 = vtanh.f32 %v2340_v60 }
 0xada   :  { %3298 = vrcp.f32 %v2263_v57 }
 0xae6   :  { %v3297_v38 = vpop.eup %3296 }
 0xae7   :  { %v2342_v39 = vsub.f32 %v4274_v58, %v3297_v38  ;;  %v3299_v41 = vpop.eup %3298 }
 0xae9   :  { %v2343_v11 = vmul.f32 %v3299_v41, %v2342_v39 }
 0xaeb   :  { %v4382_v27 = vadd.f32 %v3297_v38, %v2343_v11 }
 0xaed   :  { %2346 = vst [vmem:[#allocation12 + $0x28] sm:$0xff] %v4382_v27  ;;  %2415 = vmatmul.mubr.f32.vlgmr.msra.gmra.mxu0 %v4382_v27 }
 0xaee   :  { %2517 = vmatpush1.msra.mxu0 %v4062_v16  ;;  %2580 = vmatprep.mubr.f32.mxu0 %v4505_v2 }
 0xaef   :  { %2518 = vmatprep.subr.mxu0 %v4066_v9  ;;  %v4530_v9 = vld [vmem:[#allocation33_spill] sm:$0xff] }
 0xaf0   :  { %2519 = vmatpush1.msra.mxu0 %v4069_v0 }
 0xaf1   :  { %2520 = vmatprep.subr.mxu0 %v4072_v10 }
 0xaf2   :  { %2521 = vmatpush1.msra.mxu0 %v4153_v43  ;;  %v4531_v43 = vld [vmem:[#allocation34_spill] sm:$0xff] }
 0xaf3   :  { %2522 = vmatprep.subr.mxu0 %v4156_v6 }
 0xaf4   :  { %2523 = vmatpush1.msra.mxu0 %v4159_v40 }
 0xaf5   :  { %2524 = vmatprep.subr.mxu0 %v4162_v45 }
 0xaf6   :  { %2525 = vmatpush1.msra.mxu0 %v4165_v8 }
 0xaf7   :  { %2526 = vmatprep.subr.mxu0 %v4168_v63 }
 0xaf8   :  { %2527 = vmatpush1.msra.mxu0 %v4171_v7 }
 0xaf9   :  { %2528 = vmatprep.subr.mxu0 %v4174_v46 }
 0xafa   :  { %2529 = vmatpush1.msra.mxu0 %v4177_v12 }
 0xafb   :  { %2530 = vmatprep.subr.mxu0 %v4180_v5 }
 0xafc   :  { %2531 = vmatpush1.msra.mxu0 %v4183_v13 }
 0xafd   :  { %2532 = vmatprep.subr.mxu0 %v4186_v4  ;;  %v4532_v4 = vld [vmem:[#allocation40_spill] sm:$0xff] }
 0xafe   :  { %2533 = vmatpush1.msra.mxu0 %v4189_v44 }
 0xaff   :  { %2534 = vmatprep.subr.mxu0 %v4192_v1 }
 0xb00   :  { %2535 = vmatpush1.msra.mxu0 %v4195_v3 }
 0xb01   :  { %2536 = vmatprep.subr.mxu0 %v4198_v14 }
 0xb02   :  { %2537 = vmatpush1.msra.mxu0 %v4201_v15 }
 0xb03   :  { %2538 = vmatprep.subr.mxu0 %v4204_v17 }
 0xb04   :  { %2539 = vmatpush1.msra.mxu0 %v4207_v42 }
 0xb05   :  { %2540 = vmatprep.subr.mxu0 %v4210_v19  ;;  %v4533_v19 = vld [vmem:[#allocation35_spill] sm:$0xff] }
 0xb06   :  { %2541 = vmatpush1.msra.mxu0 %v4213_v20 }
 0xb07   :  { %2542 = vmatprep.subr.mxu0 %v4216_v21 }
 0xb08   :  { %2543 = vmatpush1.msra.mxu0 %v4219_v22  ;;  %v4534_v22 = vld [vmem:[#allocation36_spill] sm:$0xff] }
 0xb09   :  { %2544 = vmatprep.subr.mxu0 %v4222_v23 }
 0xb0a   :  { %2545 = vmatpush1.msra.mxu0 %v4225_v24 }
 0xb0b   :  { %2546 = vmatprep.subr.mxu0 %v4228_v25 }
 0xb0c   :  { %2547 = vmatpush1.msra.mxu0 %v4231_v26 }
 0xbad   :  { %v2416_v16 = vpop.f32.mrf.mxu0 }
 0xbae   :  { %v2421_v0 = vadd.f32 %v2416_v16, %v4530_v9 }
 0xbaf   :  { %v2418_v10 = vpop.f32.mrf.mxu0 }
 0xbb0   :  { %v2422_v6 = vadd.f32 %v2418_v10, %v4531_v43  ;;  %v2727_v46 = vmul.f32 -1.442695, %v2421_v0 }
 0xbb2   :  { %v2728_v40 = vmul.f32 -1.442695, %v2422_v6 }
 0xbb4   :  { %3300 = vpow2.f32 %v2728_v40 }
 0xbc1   :  { %v3301_v45 = vpop.eup %3300 }
 0xbc2   :  { %v2430_v8 = vadd.f32 1.0, %v3301_v45 }
 0xbc4   :  { %3302 = vrcp.f32 %v2430_v8 }
 0xbc5   :  { %3304 = vpow2.f32 %v2727_v46 }
 0xbd1   :  { %v3303_v63 = vpop.eup %3302 }
 0xbd2   :  { %v2435_v7 = vmul.f32 %v3303_v63, %v4382_v27  ;;  %v3305_v12 = vpop.eup %3304 }
 0xbd3   :  { %v2429_v13 = vadd.f32 1.0, %v3305_v12 }
 0xbd4   :  { %3190 = vmatmul.mubr.f32.vlgmr.msra.gmra.mxu1 %v2435_v7 }
 0xbd5   :  { %3193 = vmatpush3.msra.mxu1 %v4314_v30  ;;  %3224 = vmatprep.mubr.msk.f32.mxu1 %vm3487_vm1, %v4505_v2 }
 0xbd6   :  { %3194 = vmatprep.subr.mxu1 %v4505_v2 }
 0xbd7   :  { %3195 = vmatpush3.msra.mxu1 %v4320_v18 }
 0xbd8   :  { %3196 = vmatprep.subr.mxu1 %v4505_v2 }
 0xbd9   :  { %3197 = vmatpush3.msra.mxu1 %v4324_v31  ;;  %v4535_v31 = vld [vmem:[#allocation41_spill] sm:$0xff] }
 0xbda   :  { %3198 = vmatprep.subr.mxu1 %v4505_v2 }
 0xbdb   :  { %3199 = vmatpush3.msra.mxu1 %v4328_v32 }
 0xbdc   :  { %3200 = vmatprep.subr.mxu1 %v4505_v2 }
 0xbdd   :  { %3201 = vmatpush3.msra.mxu1 %v4332_v33 }
 0xbde   :  { %3202 = vmatprep.subr.mxu1 %v4505_v2 }
 0xbdf   :  { %3203 = vmatpush3.msra.mxu1 %v4336_v34 }
 0xbe0   :  { %3204 = vmatprep.subr.mxu1 %v4505_v2 }
 0xbe1   :  { %3205 = vmatpush3.msra.mxu1 %v4340_v35 }
 0xbe2   :  { %3206 = vmatprep.subr.mxu1 %v4505_v2 }
 0xbe3   :  { %3207 = vmatpush3.msra.mxu1 %v4344_v36 }
 0xbe4   :  { %3208 = vmatprep.subr.mxu1 %v4505_v2 }
 0xbe5   :  { %3209 = vmatpush3.msra.mxu1 %v4348_v37 }
 0xbe6   :  { %3210 = vmatprep.subr.mxu1 %v4505_v2 }
 0xbe7   :  { %3211 = vmatpush3.msra.mxu1 %v4352_v47 }
 0xbe8   :  { %3212 = vmatprep.subr.mxu1 %v4505_v2 }
 0xbe9   :  { %3213 = vmatpush3.msra.mxu1 %v4356_v48 }
 0xbea   :  { %3214 = vmatprep.subr.mxu1 %v4505_v2 }
 0xbeb   :  { %3215 = vmatpush3.msra.mxu1 %v4360_v49 }
 0xbec   :  { %3216 = vmatprep.subr.mxu1 %v4505_v2 }
 0xbed   :  { %3217 = vmatpush3.msra.mxu1 %v4364_v50 }
 0xbee   :  { %3218 = vmatprep.subr.mxu1 %v4505_v2 }
 0xbef   :  { %3219 = vmatpush3.msra.mxu1 %v4368_v51 }
 0xbf0   :  { %3220 = vmatprep.subr.mxu1 %v4505_v2 }
 0xbf1   :  { %3221 = vmatpush3.msra.mxu1 %v4372_v52 }
 0xbf2   :  { %3222 = vmatprep.subr.mxu1 %v4505_v2 }
 0xbf3   :  { %3223 = vmatpush3.msra.mxu1 %v4376_v53 }
 0xc94   :  { %v2502_v5 = vpop.f32.mrf.mxu1 }
 0xc95   :  { %v2506_v44 = vadd.f32 %v2502_v5, %v4532_v4 }
 0xc96   :  { %v3191_v1 = vpop.f32.mrf.mxu1 }
 0xc97   :  { %3306 = vtanh.f32 %v2506_v44 }
 0xc98   :  { %3308 = vrcp.f32 %v2429_v13 }
 0xca4   :  { %v3307_v3 = vpop.eup %3306 }
 0xca5   :  { %v2508_v14 = vsub.f32 %v4382_v27, %v3307_v3  ;;  %v3309_v15 = vpop.eup %3308 }
 0xca7   :  { %v2509_v17 = vmul.f32 %v3309_v15, %v2508_v14 }
 0xca9   :  { %v2510_v42 = vadd.f32 %v3307_v3, %v2509_v17 }
 0xcab   :  { %2512 = vst [vmem:[#allocation12 + $0x30] sm:$0xff] %v2510_v42  ;;  %2581 = vmatmul.mubr.f32.vlgmr.msra.gmra.mxu0 %v2510_v42 }
 0xd6b   :  { %v2582_v2 = vpop.f32.mrf.mxu0 }
 0xd6c   :  { %v2587_v20 = vadd.f32 %v2582_v2, %v4533_v19 }
 0xd6d   :  { %v2584_v21 = vpop.f32.mrf.mxu0 }
 0xd6e   :  { %v2588_v23 = vadd.f32 %v2584_v21, %v4534_v22  ;;  %v2729_v28 = vmul.f32 -1.442695, %v2587_v20 }
 0xd70   :  { %v2730_v24 = vmul.f32 -1.442695, %v2588_v23 }
 0xd72   :  { %3310 = vpow2.f32 %v2730_v24 }
 0xd7f   :  { %v3311_v25 = vpop.eup %3310 }
 0xd80   :  { %v2596_v26 = vadd.f32 1.0, %v3311_v25 }
 0xd82   :  { %3312 = vrcp.f32 %v2596_v26 }
 0xd83   :  { %3314 = vpow2.f32 %v2729_v28 }
 0xd8f   :  { %v3313_v58 = vpop.eup %3312 }
 0xd90   :  { %v2601_v61 = vmul.f32 %v3313_v58, %v2510_v42  ;;  %v3315_v29 = vpop.eup %3314 }
 0xd91   :  { %v2595_v18 = vadd.f32 1.0, %v3315_v29 }
 0xd92   :  { %3225 = vmatmul.mubr.f32.vlgmr.msra.gmra.mxu1 %v2601_v61 }
 0xe52   :  { %v2668_v30 = vpop.f32.mrf.mxu1 }
 0xe53   :  { %v2672_v32 = vadd.f32 %v2668_v30, %v4535_v31 }
 0xe54   :  { %v3226_v33 = vpop.f32.mrf.mxu1 }
 0xe55   :  { %3316 = vtanh.f32 %v2672_v32 }
 0xe56   :  { %3318 = vrcp.f32 %v2595_v18 }
 0xe62   :  { %v3317_v34 = vpop.eup %3316 }
 0xe63   :  { %v2674_v35 = vsub.f32 %v2510_v42, %v3317_v34  ;;  %v3319_v36 = vpop.eup %3318 }
 0xe65   :  { %v2675_v37 = vmul.f32 %v3319_v36, %v2674_v35 }
 0xe67   :  { %v2676_v47 = vadd.f32 %v3317_v34, %v2675_v37 }
 0xe69   :  { %2678 = vst [vmem:[#allocation12 + $0x38] sm:$0xff] %v2676_v47 }
 0xe6a   :  { %3459 = shalt.err (!%p3456_p10)
}
 0xe6b   :  { %2691 = dma.vmem_to_hbm [thread:$0]  %s2686_s17, 1024, %s4470_s5, [#allocation6], %s3480_s28, %s3480_s28, %s3481_s29  }
 0xe6c   :  { %3474 = dma.done.wait [#allocation6], 1024  }
 0xe6d   :  { %3475 = vsyncadd [#allocation6], 4294966272 }
 0xe6e   :  { %2695 = vsyncpa [#allocation5], 1 }
 0xe6f   :  { %2696 = vsyncpa [#allocation8], 1 }
 0xe70   :  { %2697 = vsyncpa [#allocation11], 1 }
 0xe71   :  { %2698 = vsyncpa [#allocation6], 1 }

// kernel: tpu_custom_call.1
= control target key start
LH: loop header
LB: loop body
LE: loop exit
PB: predicated region body
PF: predicated region fallthrough
CT: control target
= control target key end

     0   :  { %10 = vsyncpa [#allocation5], 0  ;;  %s4465_s0 = inlined_call_operand.hbm [shape: f32[8,8,16], index: 0, kind: input, shape index: {}]   ;;  %s4466_s1 = inlined_call_operand.hbm [shape: f32[16,384], index: 1, kind: input, shape index: {}]   ;;  %s4467_s2 = inlined_call_operand.vmem [shape: f32[1,384], index: 2, kind: input, shape index: {}]   ;;  %s4468_s3 = inlined_call_operand.hbm [shape: f32[128,256], index: 3, kind: input, shape index: {}]   ;;  %s4469_s4 = inlined_call_operand.hbm [shape: f32[128,128], index: 4, kind: input, shape index: {}]   ;;  %s4470_s5 = inlined_call_operand.hbm [shape: f32[8,8,128], index: 5, kind: output, shape index: {}]  }
   0x1   :  { %11 = vsyncpa [#allocation8], 0 }
   0x2   :  { %12 = vsyncpa [#allocation11], 0 }
   0x3   :  { %13 = vsyncpa [#allocation6], 0  ;;  %s3476_s18 = smov [#allocation7]  }
   0x4   :  { %s31_s19 = sshll.u32 %s3476_s18, 4  ;;  %s32_s19 = int_to_ptr.vmem [resolvable:$true] %s31_s19 }
   0x5   :  { %s3376_s20 = scalar_lea.vmem %s32_s19, 768  ;;  %p3381_p1 = scmp.lt.s32.totalorder %s32_s19, %s32_s19 }
   0x6   :  { %p3377_p0 = scmp.ne.s32.totalorder %s32_s19, %s3376_s20  ;;  %p3382_p2 = scmp.lt.s32.totalorder %s3376_s20, %s3376_s20 }
   0x8   :  { %p3383_p3 = por %p3382_p2, %p3381_p1 }
   0xa   :  { %p3384_p4 = pnand %p3383_p3, %p3377_p0 }
   0xc   :  { %3387 = shalt.err (!%p3384_p4)
}
   0xd   :  { %s3477_s21 = smov 384   ;;  %s3478_s22 = smov 24  }
   0xe   :  { %37 = dma.hbm_to_vmem [thread:$0]  %s4466_s1, 768, %s32_s19, [#allocation8], %s3477_s21, %s3477_s21, %s3478_s22  }
   0xf   :  { %s3479_s25 = smov [#allocation4]  }
  0x10   :  { %s19_s26 = sshll.u32 %s3479_s25, 4  ;;  %s20_s26 = int_to_ptr.vmem [resolvable:$true] %s19_s26 }
  0x11   :  { %s3396_s27 = scalar_lea.vmem %s20_s26, 1024  ;;  %p3401_p6 = scmp.lt.s32.totalorder %s20_s26, %s20_s26 }
  0x12   :  { %p3397_p5 = scmp.ne.s32.totalorder %s20_s26, %s3396_s27  ;;  %p3402_p7 = scmp.lt.s32.totalorder %s3396_s27, %s3396_s27 }
  0x14   :  { %p3403_p8 = por %p3402_p7, %p3401_p6 }
  0x16   :  { %p3404_p9 = pnand %p3403_p8, %p3397_p5 }
  0x18   :  { %3407 = shalt.err (!%p3404_p9)
}
  0x19   :  { %s3480_s28 = smov 128   ;;  %s3481_s29 = smov 8  }
  0x1a   :  { %25 = dma.hbm_to_vmem [thread:$0]  %s4465_s0, 1024, %s20_s26, [#allocation5], %s3480_s28, %s3480_s28, %s3481_s29  }
  0x1b   :  { %s3482_s1 = smov [#allocation9]  }
  0x1c   :  { %s45_s7 = sshll.u32 %s3482_s1, 4  ;;  %s46_s7 = int_to_ptr.vmem [resolvable:$true] %s45_s7 }
  0x1d   :  { %s3416_s8 = scalar_lea.vmem %s46_s7, 4096  ;;  %p3421_p11 = scmp.lt.s32.totalorder %s46_s7, %s46_s7 }
  0x1e   :  { %p3417_p10 = scmp.ne.s32.totalorder %s46_s7, %s3416_s8  ;;  %p3422_p12 = scmp.lt.s32.totalorder %s3416_s8, %s3416_s8 }
  0x20   :  { %p3423_p13 = por %p3422_p12, %p3421_p11 }
  0x22   :  { %p3424_p0 = pnand %p3423_p13, %p3417_p10 }
  0x24   :  { %3427 = shalt.err (!%p3424_p0)
}
  0x25   :  { %s3483_s9 = smov 256   ;;  %s3484_s10 = smov 16  }
  0x26   :  { %51 = dma.hbm_to_vmem [thread:$0]  %s4468_s3, 4096, %s46_s7, [#allocation8], %s3483_s9, %s3483_s9, %s3484_s10  }
  0x27   :  { %s3485_s13 = smov [#allocation10]  }
  0x28   :  { %s57_s14 = sshll.u32 %s3485_s13, 4  ;;  %s58_s14 = int_to_ptr.vmem [resolvable:$true] %s57_s14 }
  0x29   :  { %s3436_s0 = scalar_lea.vmem %s58_s14, 2048  ;;  %p3441_p2 = scmp.lt.s32.totalorder %s58_s14, %s58_s14 }
  0x2a   :  { %p3437_p1 = scmp.ne.s32.totalorder %s58_s14, %s3436_s0  ;;  %p3442_p3 = scmp.lt.s32.totalorder %s3436_s0, %s3436_s0 }
  0x2c   :  { %p3443_p4 = por %p3442_p3, %p3441_p2 }
  0x2e   :  { %p3444_p5 = pnand %p3443_p4, %p3437_p1 }
  0x30   :  { %3447 = shalt.err (!%p3444_p5)
}
  0x31   :  { %63 = dma.hbm_to_vmem [thread:$0]  %s4469_s4, 2048, %s58_s14, [#allocation11], %s3480_s28, %s3480_s28, %s3481_s29  }
  0x32   :  { %3468 = dma.done.wait [#allocation5], 1024  }
  0x33   :  { %3469 = vsyncadd [#allocation5], 4294966272 }
  0x34   :  { %3470 = dma.done.wait [#allocation8], 4864  }
  0x35   :  { %3471 = vsyncadd [#allocation8], 4294962432 }
  0x36   :  { %3472 = dma.done.wait [#allocation11], 2048  }
  0x37   :  { %3473 = vsyncadd [#allocation11], 4294965248  ;;  %v4471_v0 = vmov 0.0   ;;  %v85_v1 = vld [vmem:[#allocation7 + $0x20] sm:$0xff]  ;;  %v84_v2 = vld [vmem:[#allocation7 + $0x18] sm:$0xff]  ;;  %vm105_vm0 = vcmask 130048   ;;  %v89_v63 = vlaneseq }
  0x38   :  { %173 = vmatprep.mubr.f32.mxu0 %v4471_v0  ;;  %2891 = vmatprep.subr.mxu1 %v4471_v0  ;;  %v82_v3 = vld [vmem:[#allocation7 + $0x8] sm:$0xff]  ;;  %v81_v4 = vld [vmem:[#allocation7] sm:$0xff]  ;;  %v3549_v7 = vld [vmem:[#allocation4 + $0x10] sm:$0xff]  ;;  %vm3487_vm1 = vmmov 0  }
  0x39   :  { %137 = vmatprep.subr.mxu0 %v85_v1  ;;  %v3539_v5 = vld [vmem:[#allocation4] sm:$0xff]  ;;  %v3544_v6 = vld [vmem:[#allocation4 + $0x8] sm:$0xff]  ;;  %v3554_v8 = vld [vmem:[#allocation4 + $0x18] sm:$0xff]  ;;  %2895 = vmatprep.mubr.msk.f32.mxu1 %vm3487_vm1, %v4471_v0 }
  0x3a   :  { %138 = vmatpush1.msra.mxu0 %v84_v2  ;;  %v3559_v9 = vld [vmem:[#allocation4 + $0x20] sm:$0xff]  ;;  %v3564_v10 = vld [vmem:[#allocation4 + $0x28] sm:$0xff]  ;;  %v3569_v11 = vld [vmem:[#allocation4 + $0x30] sm:$0xff] }
  0x3b   :  { %139 = vmatprep.subr.mxu0 %v82_v3  ;;  %v3574_v12 = vld [vmem:[#allocation4 + $0x38] sm:$0xff]  ;;  %v3576_v13 = vld [vmem:[#allocation9 + $0xf8] sm:$0xff]  ;;  %v3578_v14 = vld [vmem:[#allocation9 + $0xf0] sm:$0xff] }
  0x3c   :  { %140 = vmatpush1.msra.mxu0 %v81_v4  ;;  %4485 = vst [vmem:[#allocation17_spill] sm:$0xff] %v3576_v13  ;;  %v3580_v15 = vld [vmem:[#allocation9 + $0xe8] sm:$0xff]  ;;  %v3585_v16 = vld [vmem:[#allocation9 + $0xe0] sm:$0xff]  ;;  %v3588_v17 = vld [vmem:[#allocation9 + $0xd8] sm:$0xff] }
  0x3d   :  { %2699 = vmatmul.mubr.msk.f32.vlgmr.msra.gmra.mxu0 %vm105_vm0, %v3539_v5  ;;  %286 = vmatprep.subr.mxu0 %v85_v1  ;;  %v3592_v18 = vld [vmem:[#allocation9 + $0xd0] sm:$0xff]  ;;  %v3595_v19 = vld [vmem:[#allocation9 + $0xc8] sm:$0xff]  ;;  %v3598_v20 = vld [vmem:[#allocation9 + $0xc0] sm:$0xff] }
  0x3e   :  { %287 = vmatpush1.msra.mxu0 %v84_v2  ;;  %322 = vmatprep.mubr.f32.mxu0 %v4471_v0  ;;  %v3601_v21 = vld [vmem:[#allocation9 + $0xb8] sm:$0xff]  ;;  %v3604_v22 = vld [vmem:[#allocation9 + $0xb0] sm:$0xff]  ;;  %v3607_v23 = vld [vmem:[#allocation9 + $0xa8] sm:$0xff] }
  0x3f   :  { %288 = vmatprep.subr.mxu0 %v82_v3  ;;  %v3610_v24 = vld [vmem:[#allocation9 + $0xa0] sm:$0xff]  ;;  %v3613_v25 = vld [vmem:[#allocation9 + $0x98] sm:$0xff]  ;;  %v3616_v26 = vld [vmem:[#allocation9 + $0x90] sm:$0xff] }
  0x40   :  { %289 = vmatpush1.msra.mxu0 %v81_v4  ;;  %v3619_v27 = vld [vmem:[#allocation9 + $0x88] sm:$0xff]  ;;  %v3622_v28 = vld [vmem:[#allocation9 + $0x80] sm:$0xff]  ;;  %v3625_v29 = vld [vmem:[#allocation9 + $0x78] sm:$0xff] }
  0x41   :  { %2701 = vmatmul.mubr.msk.f32.vlgmr.msra.gmra.mxu0 %vm105_vm0, %v3544_v6  ;;  %436 = vmatprep.subr.mxu0 %v85_v1  ;;  %v3628_v30 = vld [vmem:[#allocation9 + $0x70] sm:$0xff]  ;;  %v3631_v31 = vld [vmem:[#allocation9 + $0x68] sm:$0xff]  ;;  %v3634_v32 = vld [vmem:[#allocation9 + $0x60] sm:$0xff] }
  0x42   :  { %437 = vmatpush1.msra.mxu0 %v84_v2  ;;  %472 = vmatprep.mubr.f32.mxu0 %v4471_v0  ;;  %v3637_v33 = vld [vmem:[#allocation9 + $0x58] sm:$0xff]  ;;  %v3640_v34 = vld [vmem:[#allocation9 + $0x50] sm:$0xff]  ;;  %v3643_v35 = vld [vmem:[#allocation9 + $0x48] sm:$0xff] }
  0x43   :  { %438 = vmatprep.subr.mxu0 %v82_v3  ;;  %v3646_v36 = vld [vmem:[#allocation9 + $0x40] sm:$0xff]  ;;  %v3649_v37 = vld [vmem:[#allocation9 + $0x38] sm:$0xff]  ;;  %v3652_v38 = vld [vmem:[#allocation9 + $0x30] sm:$0xff] }
  0x44   :  { %439 = vmatpush1.msra.mxu0 %v81_v4  ;;  %v3655_v39 = vld [vmem:[#allocation9 + $0x28] sm:$0xff]  ;;  %v3658_v40 = vld [vmem:[#allocation9 + $0x20] sm:$0xff]  ;;  %v3661_v41 = vld [vmem:[#allocation9 + $0x18] sm:$0xff] }
  0x45   :  { %2703 = vmatmul.mubr.msk.f32.vlgmr.msra.gmra.mxu0 %vm105_vm0, %v3549_v7  ;;  %586 = vmatprep.subr.mxu0 %v85_v1  ;;  %4486 = vst [vmem:[#allocation18_spill] sm:$0xff] %v3658_v40  ;;  %4487 = vst [vmem:[#allocation19_spill] sm:$0xff] %v3661_v41  ;;  %v3664_v42 = vld [vmem:[#allocation9 + $0x10] sm:$0xff]  ;;  %v3667_v43 = vld [vmem:[#allocation9 + $0x8] sm:$0xff] }
  0x46   :  { %587 = vmatpush1.msra.mxu0 %v84_v2  ;;  %622 = vmatprep.mubr.f32.mxu0 %v4471_v0  ;;  %4488 = vst [vmem:[#allocation20_spill] sm:$0xff] %v3664_v42  ;;  %4489 = vst [vmem:[#allocation21_spill] sm:$0xff] %v3667_v43  ;;  %v3670_v44 = vld [vmem:[#allocation9] sm:$0xff]  ;;  %v86_v45 = vld [vmem:[#allocation7 + $0x28] sm:$0xff] }
  0x47   :  { %588 = vmatprep.subr.mxu0 %v82_v3  ;;  %4490 = vst [vmem:[#allocation22_spill] sm:$0xff] %v3670_v44  ;;  %v83_v46 = vld [vmem:[#allocation7 + $0x10] sm:$0xff]  ;;  %2892 = vmatpush3.msra.mxu1 %v86_v45  ;;  %v3760_v47 = vld [vmem:[#allocation10 + $0x78] sm:$0xff]  ;;  %v3764_v48 = vld [vmem:[#allocation10 + $0x70] sm:$0xff] }
  0x48   :  { %589 = vmatpush1.msra.mxu0 %v81_v4  ;;  %2893 = vmatprep.subr.mxu1 %v4471_v0  ;;  %v3768_v49 = vld [vmem:[#allocation10 + $0x68] sm:$0xff]  ;;  %v3772_v50 = vld [vmem:[#allocation10 + $0x60] sm:$0xff]  ;;  %v3776_v51 = vld [vmem:[#allocation10 + $0x58] sm:$0xff] }
  0x49   :  { %2705 = vmatmul.mubr.msk.f32.vlgmr.msra.gmra.mxu0 %vm105_vm0, %v3554_v8  ;;  %736 = vmatprep.subr.mxu0 %v85_v1  ;;  %v3780_v52 = vld [vmem:[#allocation10 + $0x50] sm:$0xff]  ;;  %v3784_v53 = vld [vmem:[#allocation10 + $0x48] sm:$0xff]  ;;  %v3788_v54 = vld [vmem:[#allocation10 + $0x40] sm:$0xff] }
  0x4a   :  { %737 = vmatpush1.msra.mxu0 %v84_v2  ;;  %772 = vmatprep.mubr.f32.mxu0 %v4471_v0  ;;  %v3792_v55 = vld [vmem:[#allocation10 + $0x38] sm:$0xff]  ;;  %v3794_v56 = vld [vmem:[#allocation10 + $0x30] sm:$0xff]  ;;  %v3798_v57 = vld [vmem:[#allocation10 + $0x28] sm:$0xff] }
  0x4b   :  { %738 = vmatprep.subr.mxu0 %v82_v3  ;;  %2894 = vmatpush3.msra.mxu1 %v83_v46  ;;  %v3802_v58 = vld [vmem:[#allocation10 + $0x20] sm:$0xff]  ;;  %v3806_v59 = vld [vmem:[#allocation10 + $0x18] sm:$0xff]  ;;  %v3810_v60 = vld [vmem:[#allocation10 + $0x10] sm:$0xff] }
  0x4c   :  { %739 = vmatpush1.msra.mxu0 %v81_v4  ;;  %2896 = vmatmul.mubr.msk.f32.vlgmr.msra.gmra.mxu1 %vm105_vm0, %v3539_v5  ;;  %v3814_v61 = vld [vmem:[#allocation10 + $0x8] sm:$0xff]  ;;  %v3818_v62 = vld [vmem:[#allocation10] sm:$0xff] }
  0x4d   :  { %2707 = vmatmul.mubr.msk.f32.vlgmr.msra.gmra.mxu0 %vm105_vm0, %v3559_v9  ;;  %886 = vmatprep.subr.mxu0 %v85_v1 }
  0x4e   :  { %887 = vmatpush1.msra.mxu0 %v84_v2  ;;  %922 = vmatprep.mubr.f32.mxu0 %v4471_v0 }
  0x4f   :  { %888 = vmatprep.subr.mxu0 %v82_v3  ;;  %2898 = vmatprep.subr.mxu1 %v4471_v0 }
  0x50   :  { %889 = vmatpush1.msra.mxu0 %v81_v4  ;;  %2899 = vmatpush3.msra.mxu1 %v86_v45 }
  0x51   :  { %2709 = vmatmul.mubr.msk.f32.vlgmr.msra.gmra.mxu0 %vm105_vm0, %v3564_v10  ;;  %1036 = vmatprep.subr.mxu0 %v85_v1 }
  0x52   :  { %1037 = vmatpush1.msra.mxu0 %v84_v2  ;;  %1072 = vmatprep.mubr.f32.mxu0 %v4471_v0 }
  0x53   :  { %1038 = vmatprep.subr.mxu0 %v82_v3  ;;  %2902 = vmatprep.mubr.msk.f32.mxu1 %vm3487_vm1, %v4471_v0 }
  0x54   :  { %1039 = vmatpush1.msra.mxu0 %v81_v4  ;;  %2900 = vmatprep.subr.mxu1 %v4471_v0 }
  0x55   :  { %2711 = vmatmul.mubr.msk.f32.vlgmr.msra.gmra.mxu0 %vm105_vm0, %v3569_v11  ;;  %1186 = vmatprep.subr.mxu0 %v85_v1  ;;  %v90_v1 = vshrl.u32 %v89_v63, 7 }
  0x56   :  { %1187 = vmatpush1.msra.mxu0 %v84_v2  ;;  %1222 = vmatprep.mubr.f32.mxu0 %v4471_v0 }
  0x57   :  { %1188 = vmatprep.subr.mxu0 %v82_v3  ;;  %2901 = vmatpush3.msra.mxu1 %v83_v46  ;;  %v91_v2 = vsub.s32 0, %v90_v1  ;;  %v87_v3 = vld [vmem:[%s4467_s2] sm:$0x7]  ;;  %v95_v5 = vsub.s32 1, %v90_v1  ;;  %s3488_s2 = smov [#allocation12]  }
  0x58   :  { %1189 = vmatpush1.msra.mxu0 %v81_v4  ;;  %2903 = vmatmul.mubr.msk.f32.vlgmr.msra.gmra.mxu1 %vm105_vm0, %v3544_v6  ;;  %s2685_s17 = sshll.u32 %s3488_s2, 4  ;;  %s2686_s17 = int_to_ptr.vmem [resolvable:$true] %s2685_s17 }
  0x59   :  { %2713 = vmatmul.mubr.msk.f32.vlgmr.msra.gmra.mxu0 %vm105_vm0, %v3574_v12  ;;  %1355 = vmatprep.subr.mxu0 %v3576_v13  ;;  %s3448_s18 = scalar_lea.vmem %s2686_s17, 1024  ;;  %p3453_p7 = scmp.lt.s32.totalorder %s2686_s17, %s2686_s17 }
  0x5a   :  { %1356 = vmatpush1.msra.mxu0 %v3578_v14  ;;  %1419 = vmatprep.mubr.f32.mxu0 %v4471_v0  ;;  %p3449_p6 = scmp.ne.s32.totalorder %s2686_s17, %s3448_s18  ;;  %p3454_p8 = scmp.lt.s32.totalorder %s3448_s18, %s3448_s18 }
  0x5b   :  { %1357 = vmatprep.subr.mxu0 %v3580_v15  ;;  %2905 = vmatprep.subr.mxu1 %v4471_v0 }
  0x5c   :  { %1358 = vmatpush1.msra.mxu0 %v3585_v16  ;;  %2906 = vmatpush3.msra.mxu1 %v86_v45  ;;  %p3455_p9 = por %p3454_p8, %p3453_p7 }
  0x5d   :  { %1359 = vmatprep.subr.mxu0 %v3588_v17  ;;  %2909 = vmatprep.mubr.msk.f32.mxu1 %vm3487_vm1, %v4471_v0 }
  0x5e   :  { %1360 = vmatpush1.msra.mxu0 %v3592_v18  ;;  %2907 = vmatprep.subr.mxu1 %v4471_v0  ;;  %p3456_p10 = pnand %p3455_p9, %p3449_p6 }
  0x5f   :  { %1361 = vmatprep.subr.mxu0 %v3595_v19  ;;  %2908 = vmatpush3.msra.mxu1 %v83_v46 }
  0x60   :  { %1362 = vmatpush1.msra.mxu0 %v3598_v20  ;;  %2910 = vmatmul.mubr.msk.f32.vlgmr.msra.gmra.mxu1 %vm105_vm0, %v3549_v7  ;;  %v92_v7 = vrot.slane %v87_v3, %v91_v2 }
  0x61   :  { %1363 = vmatprep.subr.mxu0 %v3601_v21  ;;  %2912 = vmatprep.subr.mxu1 %v4471_v0 }
  0x62   :  { %1364 = vmatpush1.msra.mxu0 %v3604_v22  ;;  %2913 = vmatpush3.msra.mxu1 %v86_v45 }
  0x63   :  { %1365 = vmatprep.subr.mxu0 %v3607_v23  ;;  %2916 = vmatprep.mubr.msk.f32.mxu1 %vm3487_vm1, %v4471_v0 }
  0x64   :  { %1366 = vmatpush1.msra.mxu0 %v3610_v24  ;;  %2914 = vmatprep.subr.mxu1 %v4471_v0 }
  0x65   :  { %1367 = vmatprep.subr.mxu0 %v3613_v25  ;;  %2915 = vmatpush3.msra.mxu1 %v83_v46 }
  0x66   :  { %1368 = vmatpush1.msra.mxu0 %v3616_v26  ;;  %2917 = vmatmul.mubr.msk.f32.vlgmr.msra.gmra.mxu1 %vm105_vm0, %v3554_v8 }
  0x67   :  { %1369 = vmatprep.subr.mxu0 %v3619_v27  ;;  %2919 = vmatprep.subr.mxu1 %v4471_v0 }
  0x68   :  { %1370 = vmatpush1.msra.mxu0 %v3622_v28  ;;  %2920 = vmatpush3.msra.mxu1 %v86_v45 }
  0x69   :  { %1371 = vmatprep.subr.mxu0 %v3625_v29  ;;  %2923 = vmatprep.mubr.msk.f32.mxu1 %vm3487_vm1, %v4471_v0 }
  0x6a   :  { %1372 = vmatpush1.msra.mxu0 %v3628_v30  ;;  %2921 = vmatprep.subr.mxu1 %v4471_v0 }
  0x6b   :  { %1373 = vmatprep.subr.mxu0 %v3631_v31  ;;  %2922 = vmatpush3.msra.mxu1 %v83_v46 }
  0x6c   :  { %1374 = vmatpush1.msra.mxu0 %v3634_v32  ;;  %2924 = vmatmul.mubr.msk.f32.vlgmr.msra.gmra.mxu1 %vm105_vm0, %v3559_v9  ;;  %v96_v9 = vrot.slane %v87_v3, %v95_v5 }
  0x6d   :  { %1375 = vmatprep.subr.mxu0 %v3637_v33  ;;  %2926 = vmatprep.subr.mxu1 %v4471_v0 }
  0x6e   :  { %1376 = vmatpush1.msra.mxu0 %v3640_v34  ;;  %2927 = vmatpush3.msra.mxu1 %v86_v45 }
  0x6f   :  { %1377 = vmatprep.subr.mxu0 %v3643_v35  ;;  %2930 = vmatprep.mubr.msk.f32.mxu1 %vm3487_vm1, %v4471_v0 }
  0x70   :  { %1378 = vmatpush1.msra.mxu0 %v3646_v36  ;;  %2928 = vmatprep.subr.mxu1 %v4471_v0 }
  0x71   :  { %1379 = vmatprep.subr.mxu0 %v3649_v37  ;;  %2929 = vmatpush3.msra.mxu1 %v83_v46 }
  0x72   :  { %1380 = vmatpush1.msra.mxu0 %v3652_v38  ;;  %2931 = vmatmul.mubr.msk.f32.vlgmr.msra.gmra.mxu1 %vm105_vm0, %v3564_v10 }
  0x73   :  { %1381 = vmatprep.subr.mxu0 %v3655_v39  ;;  %2933 = vmatprep.subr.mxu1 %v4471_v0 }
  0x74   :  { %1382 = vmatpush1.msra.mxu0 %v3658_v40  ;;  %2934 = vmatpush3.msra.mxu1 %v86_v45 }
  0x75   :  { %1383 = vmatprep.subr.mxu0 %v3661_v41  ;;  %2937 = vmatprep.mubr.msk.f32.mxu1 %vm3487_vm1, %v4471_v0 }
  0x76   :  { %1384 = vmatpush1.msra.mxu0 %v3664_v42  ;;  %2935 = vmatprep.subr.mxu1 %v4471_v0 }
  0x77   :  { %1385 = vmatprep.subr.mxu0 %v3667_v43  ;;  %2936 = vmatpush3.msra.mxu1 %v83_v46 }
  0x78   :  { %1386 = vmatpush1.msra.mxu0 %v3670_v44  ;;  %2938 = vmatmul.mubr.msk.f32.vlgmr.msra.gmra.mxu1 %vm105_vm0, %v3569_v11 }
  0x79   :  { %1420 = vmatmul.mubr.f32.vlgmr.msra.gmra.mxu0 %v4471_v0  ;;  %1520 = vmatprep.subr.mxu0 %v3576_v13 }
  0x7a   :  { %1521 = vmatpush1.msra.mxu0 %v3578_v14  ;;  %1584 = vmatprep.mubr.f32.mxu0 %v4471_v0 }
  0x7b   :  { %1522 = vmatprep.subr.mxu0 %v3580_v15  ;;  %2940 = vmatprep.subr.mxu1 %v4471_v0 }
  0x7c   :  { %1523 = vmatpush1.msra.mxu0 %v3585_v16  ;;  %2941 = vmatpush3.msra.mxu1 %v86_v45 }
  0x7d   :  { %1524 = vmatprep.subr.mxu0 %v3588_v17  ;;  %2944 = vmatprep.mubr.msk.f32.mxu1 %vm3487_vm1, %v4471_v0 }
  0x7e   :  { %1525 = vmatpush1.msra.mxu0 %v3592_v18  ;;  %2942 = vmatprep.subr.mxu1 %v4471_v0 }
  0x7f   :  { %1526 = vmatprep.subr.mxu0 %v3595_v19  ;;  %2943 = vmatpush3.msra.mxu1 %v83_v46 }
  0x80   :  { %1527 = vmatpush1.msra.mxu0 %v3598_v20  ;;  %2945 = vmatmul.mubr.msk.f32.vlgmr.msra.gmra.mxu1 %vm105_vm0, %v3574_v12 }
  0x81   :  { %1528 = vmatprep.subr.mxu0 %v3601_v21  ;;  %2947 = vmatprep.subr.mxu1 %v4471_v0 }
  0x82   :  { %1529 = vmatpush1.msra.mxu0 %v3604_v22  ;;  %2979 = vmatprep.mubr.msk.f32.mxu1 %vm3487_vm1, %v4471_v0 }
  0x83   :  { %1530 = vmatprep.subr.mxu0 %v3607_v23  ;;  %2948 = vmatpush3.msra.mxu1 %v3760_v47 }
  0x84   :  { %1531 = vmatpush1.msra.mxu0 %v3610_v24  ;;  %2949 = vmatprep.subr.mxu1 %v4471_v0 }
  0x85   :  { %1532 = vmatprep.subr.mxu0 %v3613_v25  ;;  %2950 = vmatpush3.msra.mxu1 %v3764_v48 }
  0x86   :  { %1533 = vmatpush1.msra.mxu0 %v3616_v26  ;;  %2951 = vmatprep.subr.mxu1 %v4471_v0 }
  0x87   :  { %1534 = vmatprep.subr.mxu0 %v3619_v27  ;;  %2952 = vmatpush3.msra.mxu1 %v3768_v49 }
  0x88   :  { %1535 = vmatpush1.msra.mxu0 %v3622_v28  ;;  %2953 = vmatprep.subr.mxu1 %v4471_v0 }
  0x89   :  { %1536 = vmatprep.subr.mxu0 %v3625_v29  ;;  %2954 = vmatpush3.msra.mxu1 %v3772_v50 }
  0x8a   :  { %1537 = vmatpush1.msra.mxu0 %v3628_v30  ;;  %2955 = vmatprep.subr.mxu1 %v4471_v0 }
  0x8b   :  { %1538 = vmatprep.subr.mxu0 %v3631_v31  ;;  %2956 = vmatpush3.msra.mxu1 %v3776_v51 }
  0x8c   :  { %1539 = vmatpush1.msra.mxu0 %v3634_v32  ;;  %2957 = vmatprep.subr.mxu1 %v4471_v0 }
  0x8d   :  { %1540 = vmatprep.subr.mxu0 %v3637_v33  ;;  %2958 = vmatpush3.msra.mxu1 %v3780_v52 }
  0x8e   :  { %1541 = vmatpush1.msra.mxu0 %v3640_v34  ;;  %2959 = vmatprep.subr.mxu1 %v4471_v0 }
  0x8f   :  { %1542 = vmatprep.subr.mxu0 %v3643_v35  ;;  %2960 = vmatpush3.msra.mxu1 %v3784_v53 }
  0x90   :  { %1543 = vmatpush1.msra.mxu0 %v3646_v36  ;;  %2961 = vmatprep.subr.mxu1 %v4471_v0 }
  0x91   :  { %1544 = vmatprep.subr.mxu0 %v3649_v37  ;;  %2962 = vmatpush3.msra.mxu1 %v3788_v54 }
  0x92   :  { %1545 = vmatpush1.msra.mxu0 %v3652_v38  ;;  %2963 = vmatprep.subr.mxu1 %v4471_v0 }
  0x93   :  { %1546 = vmatprep.subr.mxu0 %v3655_v39  ;;  %2964 = vmatpush3.msra.mxu1 %v3792_v55 }
  0x94   :  { %1547 = vmatpush1.msra.mxu0 %v3658_v40  ;;  %2965 = vmatprep.subr.mxu1 %v4471_v0  ;;  %v99_v40 = vsub.s32 2, %v90_v1 }
  0x95   :  { %1548 = vmatprep.subr.mxu0 %v3661_v41  ;;  %2966 = vmatpush3.msra.mxu1 %v3794_v56 }
  0x96   :  { %1549 = vmatpush1.msra.mxu0 %v3664_v42  ;;  %2967 = vmatprep.subr.mxu1 %v4471_v0 }
  0x97   :  { %1550 = vmatprep.subr.mxu0 %v3667_v43  ;;  %2968 = vmatpush3.msra.mxu1 %v3798_v57 }
  0x98   :  { %1551 = vmatpush1.msra.mxu0 %v3670_v44  ;;  %2969 = vmatprep.subr.mxu1 %v4471_v0 }
  0x99   :  { %1686 = vmatprep.subr.mxu0 %v3576_v13  ;;  %2970 = vmatpush3.msra.mxu1 %v3802_v58 }
  0x9a   :  { %2971 = vmatprep.subr.mxu1 %v4471_v0 }
  0x9b   :  { %2972 = vmatpush3.msra.mxu1 %v3806_v59 }
  0x9c   :  { %2973 = vmatprep.subr.mxu1 %v4471_v0 }
  0x9d   :  { %2974 = vmatpush3.msra.mxu1 %v3810_v60 }
  0x9e   :  { %2975 = vmatprep.subr.mxu1 %v4471_v0 }
  0x9f   :  { %2976 = vmatpush3.msra.mxu1 %v3814_v61 }
  0xa0   :  { %2977 = vmatprep.subr.mxu1 %v4471_v0 }
  0xa1   :  { %2978 = vmatpush3.msra.mxu1 %v3818_v62 }
  0xa2   :  { %2982 = vmatprep.subr.mxu1 %v4471_v0 }
  0xfd   :  { %v175_v4 = vpop.f32.mrf.mxu0 }
  0xff   :  { %v177_v6 = vpop.f32.mrf.mxu0 }
 0x101   :  { %v324_v8 = vpop.f32.mrf.mxu0 }
 0x102   :  { %v3827_v10 = vadd.f32 %v324_v8, %v92_v7 }
 0x103   :  { %v326_v11 = vpop.f32.mrf.mxu0 }
 0x104   :  { %4491 = vst [vmem:[#allocation23_spill] sm:$0xff] %v3827_v10  ;;  %v3829_v12 = vadd.f32 %v326_v11, %v96_v9  ;;  %v178_v10 = vadd.f32 %v177_v6, %v96_v9  ;;  %v100_v6 = vrot.slane %v87_v3, %v99_v40 }
 0x105   :  { %v474_v45 = vpop.f32.mrf.mxu0 }
 0x106   :  { %4492 = vst [vmem:[#allocation24_spill] sm:$0xff] %v3829_v12  ;;  %v3831_v46 = vadd.f32 %v474_v45, %v92_v7 }
 0x107   :  { %v476_v63 = vpop.f32.mrf.mxu0 }
 0x108   :  { %4493 = vst [vmem:[#allocation25_spill] sm:$0xff] %v3831_v46  ;;  %v3833_v0 = vadd.f32 %v476_v63, %v96_v9 }
 0x109   :  { %v624_v13 = vpop.f32.mrf.mxu0 }
 0x10a   :  { %4494 = vst [vmem:[#allocation26_spill] sm:$0xff] %v3833_v0  ;;  %v3835_v44 = vadd.f32 %v624_v13, %v92_v7 }
 0x10b   :  { %v626_v43 = vpop.f32.mrf.mxu0 }
 0x10c   :  { %4495 = vst [vmem:[#allocation27_spill] sm:$0xff] %v3835_v44  ;;  %v3837_v42 = vadd.f32 %v626_v43, %v96_v9 }
 0x10d   :  { %v774_v2 = vpop.f32.mrf.mxu0 }
 0x10e   :  { %4496 = vst [vmem:[#allocation28_spill] sm:$0xff] %v3837_v42  ;;  %v3839_v41 = vadd.f32 %v774_v2, %v92_v7 }
 0x10f   :  { %v776_v5 = vpop.f32.mrf.mxu0 }
 0x110   :  { %4497 = vst [vmem:[#allocation29_spill] sm:$0xff] %v3839_v41  ;;  %v3841_v8 = vadd.f32 %v776_v5, %v96_v9  ;;  %v176_v5 = vadd.f32 %v175_v4, %v92_v7 }
 0x111   :  { %v924_v11 = vpop.f32.mrf.mxu0 }
 0x112   :  { %4498 = vst [vmem:[#allocation30_spill] sm:$0xff] %v3841_v8  ;;  %v3843_v12 = vadd.f32 %v924_v11, %v92_v7 }
 0x113   :  { %v926_v45 = vpop.f32.mrf.mxu0 }
 0x114   :  { %4499 = vst [vmem:[#allocation31_spill] sm:$0xff] %v3843_v12  ;;  %v3845_v46 = vadd.f32 %v926_v45, %v96_v9 }
 0x115   :  { %v1074_v63 = vpop.f32.mrf.mxu0 }
 0x116   :  { %4500 = vst [vmem:[#allocation32_spill] sm:$0xff] %v3845_v46  ;;  %v3847_v0 = vadd.f32 %v1074_v63, %v92_v7 }
 0x117   :  { %v1076_v13 = vpop.f32.mrf.mxu0 }
 0x118   :  { %4501 = vst [vmem:[#allocation33_spill] sm:$0xff] %v3847_v0  ;;  %v3849_v44 = vadd.f32 %v1076_v13, %v96_v9 }
 0x119   :  { %v1224_v43 = vpop.f32.mrf.mxu0 }
 0x11a   :  { %4502 = vst [vmem:[#allocation34_spill] sm:$0xff] %v3849_v44  ;;  %v3851_v42 = vadd.f32 %v1224_v43, %v92_v7  ;;  %v246_v43 = vpop.f32.mrf.mxu1 }
 0x11b   :  { %v1226_v2 = vpop.f32.mrf.mxu0 }
 0x11c   :  { %4503 = vst [vmem:[#allocation35_spill] sm:$0xff] %v3851_v42  ;;  %v3853_v41 = vadd.f32 %v1226_v2, %v96_v9  ;;  %v4505_v2 = vmov 0.0   ;;  %v2897_v4 = vpop.f32.mrf.mxu1 }
 0x11e   :  { %4504 = vst [vmem:[#allocation36_spill] sm:$0xff] %v3853_v41  ;;  %v395_v7 = vpop.f32.mrf.mxu1 }
 0x139   :  { %v1421_v8 = vpop.f32.mrf.mxu0 }
 0x13a   :  { %v3855_v11 = vadd.f32 %v1421_v8, %v176_v5 }
 0x13b   :  { %v1423_v12 = vpop.f32.mrf.mxu0 }
 0x13c   :  { %v1427_v45 = vadd.f32 %v1423_v12, %v178_v10 }
 0x13e   :  { %v2716_v46 = vmul.f32 -1.442695, %v1427_v45 }
 0x140   :  { %3240 = vpow2.f32 %v2716_v46 }
 0x14d   :  { %v3241_v63 = vpop.eup %3240 }
 0x14e   :  { %v1435_v0 = vadd.f32 1.0, %v3241_v63 }
 0x150   :  { %3242 = vrcp.f32 %v1435_v0  ;;  %v3863_v0 = vadd.f32 %v395_v7, %v100_v6 }
 0x15d   :  { %v3243_v13 = vpop.eup %3242 }
 0x15e   :  { %v1440_v44 = vmul.f32 0.0, %v3243_v13 }
 0x160   :  { %2980 = vmatmul.mubr.f32.vlgmr.msra.gmra.mxu1 %v1440_v44  ;;  %v2904_v44 = vpop.f32.mrf.mxu1 }
 0x161   :  { %2983 = vmatpush3.msra.mxu1 %v3760_v47  ;;  %3014 = vmatprep.mubr.msk.f32.mxu1 %vm3487_vm1, %v4505_v2 }
 0x162   :  { %2984 = vmatprep.subr.mxu1 %v4505_v2  ;;  %v545_v1 = vpop.f32.mrf.mxu1 }
 0x163   :  { %2985 = vmatpush3.msra.mxu1 %v3764_v48  ;;  %v3869_v9 = vadd.f32 %v545_v1, %v100_v6 }
 0x164   :  { %2986 = vmatprep.subr.mxu1 %v4505_v2  ;;  %v2911_v40 = vpop.f32.mrf.mxu1 }
 0x165   :  { %2987 = vmatpush3.msra.mxu1 %v3768_v49 }
 0x166   :  { %2988 = vmatprep.subr.mxu1 %v4505_v2  ;;  %v695_v3 = vpop.f32.mrf.mxu1 }
 0x167   :  { %2989 = vmatpush3.msra.mxu1 %v3772_v50  ;;  %v3875_v10 = vadd.f32 %v695_v3, %v100_v6 }
 0x168   :  { %2990 = vmatprep.subr.mxu1 %v4505_v2  ;;  %v2918_v12 = vpop.f32.mrf.mxu1 }
 0x169   :  { %2991 = vmatpush3.msra.mxu1 %v3776_v51  ;;  %4506 = vst [vmem:[#allocation37_spill] sm:$0xff] %v3875_v10  ;;  %v2715_v12 = vmul.f32 -1.442695, %v3855_v11  ;;  %v4512_v11 = vld [vmem:[#allocation19_spill] sm:$0xff] }
 0x16a   :  { %2992 = vmatprep.subr.mxu1 %v4505_v2  ;;  %v845_v46 = vpop.f32.mrf.mxu1 }
 0x16b   :  { %2993 = vmatpush3.msra.mxu1 %v3780_v52  ;;  %v3881_v8 = vadd.f32 %v845_v46, %v100_v6  ;;  %3244 = vpow2.f32 %v2715_v12  ;;  %v4516_v12 = vld [vmem:[#allocation17_spill] sm:$0xff] }
 0x16c   :  { %2994 = vmatprep.subr.mxu1 %v4505_v2  ;;  %v2925_v5 = vpop.f32.mrf.mxu1 }
 0x16d   :  { %2995 = vmatpush3.msra.mxu1 %v3784_v53  ;;  %4507 = vst [vmem:[#allocation38_spill] sm:$0xff] %v3881_v8  ;;  %v247_v5 = vadd.f32 %v246_v43, %v100_v6  ;;  %v4513_v43 = vld [vmem:[#allocation20_spill] sm:$0xff] }
 0x16e   :  { %2996 = vmatprep.subr.mxu1 %v4505_v2  ;;  %v995_v45 = vpop.f32.mrf.mxu1 }
 0x16f   :  { %2997 = vmatpush3.msra.mxu1 %v3788_v54  ;;  %v3887_v63 = vadd.f32 %v995_v45, %v100_v6 }
 0x170   :  { %2998 = vmatprep.subr.mxu1 %v4505_v2  ;;  %v2932_v13 = vpop.f32.mrf.mxu1 }
 0x171   :  { %2999 = vmatpush3.msra.mxu1 %v3792_v55  ;;  %4508 = vst [vmem:[#allocation39_spill] sm:$0xff] %v3887_v63 }
 0x172   :  { %3000 = vmatprep.subr.mxu1 %v4505_v2  ;;  %v1145_v4 = vpop.f32.mrf.mxu1 }
 0x173   :  { %3001 = vmatpush3.msra.mxu1 %v3794_v56  ;;  %v3893_v7 = vadd.f32 %v1145_v4, %v100_v6 }
 0x174   :  { %3002 = vmatprep.subr.mxu1 %v4505_v2  ;;  %v2939_v44 = vpop.f32.mrf.mxu1 }
 0x175   :  { %3003 = vmatpush3.msra.mxu1 %v3798_v57  ;;  %4509 = vst [vmem:[#allocation40_spill] sm:$0xff] %v3893_v7 }
 0x176   :  { %3004 = vmatprep.subr.mxu1 %v4505_v2  ;;  %v1295_v1 = vpop.f32.mrf.mxu1 }
 0x177   :  { %3005 = vmatpush3.msra.mxu1 %v3802_v58  ;;  %v3899_v40 = vadd.f32 %v1295_v1, %v100_v6  ;;  %v4514_v6 = vld [vmem:[#allocation21_spill] sm:$0xff] }
 0x178   :  { %3006 = vmatprep.subr.mxu1 %v4505_v2  ;;  %v2946_v3 = vpop.f32.mrf.mxu1  ;;  %v3245_v46 = vpop.eup %3244 }
 0x179   :  { %3007 = vmatpush3.msra.mxu1 %v3806_v59  ;;  %4510 = vst [vmem:[#allocation41_spill] sm:$0xff] %v3899_v40  ;;  %v1434_v13 = vadd.f32 1.0, %v3245_v46 }
 0x17a   :  { %3008 = vmatprep.subr.mxu1 %v4505_v2 }
 0x17b   :  { %3009 = vmatpush3.msra.mxu1 %v3810_v60 }
 0x17c   :  { %3010 = vmatprep.subr.mxu1 %v4505_v2 }
 0x17d   :  { %3011 = vmatpush3.msra.mxu1 %v3814_v61 }
 0x17e   :  { %3012 = vmatprep.subr.mxu1 %v4505_v2 }
 0x17f   :  { %3013 = vmatpush3.msra.mxu1 %v3818_v62 }
 0x180   :  { %3017 = vmatprep.subr.mxu1 %v4505_v2 }
 0x220   :  { %v1507_v45 = vpop.f32.mrf.mxu1 }
 0x221   :  { %v1511_v4 = vadd.f32 %v1507_v45, %v247_v5  ;;  %v4517_v5 = vld [vmem:[#allocation23_spill] sm:$0xff] }
 0x222   :  { %v2981_v44 = vpop.f32.mrf.mxu1 }
 0x223   :  { %3246 = vtanh.f32 %v1511_v4  ;;  %v4518_v4 = vld [vmem:[#allocation24_spill] sm:$0xff] }
 0x224   :  { %3248 = vrcp.f32 %v1434_v13 }
 0x230   :  { %v3247_v1 = vpop.eup %3246 }
 0x231   :  { %v1513_v40 = vsub.f32 0.0, %v3247_v1  ;;  %v3249_v3 = vpop.eup %3248 }
 0x233   :  { %v1514_v41 = vmul.f32 %v3249_v3, %v1513_v40  ;;  %v4515_v40 = vld [vmem:[#allocation22_spill] sm:$0xff] }
 0x235   :  { %v3906_v42 = vadd.f32 %v3247_v1, %v1514_v41  ;;  %v4511_v41 = vld [vmem:[#allocation18_spill] sm:$0xff] }
 0x237   :  { %1516 = vst [vmem:[#allocation12] sm:$0xff] %v3906_v42  ;;  %1585 = vmatmul.mubr.f32.vlgmr.msra.gmra.mxu0 %v3906_v42 }
 0x238   :  { %1687 = vmatpush1.msra.mxu0 %v3578_v14  ;;  %1750 = vmatprep.mubr.f32.mxu0 %v4505_v2 }
 0x239   :  { %1688 = vmatprep.subr.mxu0 %v3580_v15 }
 0x23a   :  { %1689 = vmatpush1.msra.mxu0 %v3585_v16 }
 0x23b   :  { %1690 = vmatprep.subr.mxu0 %v3588_v17 }
 0x23c   :  { %1691 = vmatpush1.msra.mxu0 %v3592_v18 }
 0x23d   :  { %1692 = vmatprep.subr.mxu0 %v3595_v19 }
 0x23e   :  { %1693 = vmatpush1.msra.mxu0 %v3598_v20 }
 0x23f   :  { %1694 = vmatprep.subr.mxu0 %v3601_v21 }
 0x240   :  { %1695 = vmatpush1.msra.mxu0 %v3604_v22 }
 0x241   :  { %1696 = vmatprep.subr.mxu0 %v3607_v23 }
 0x242   :  { %1697 = vmatpush1.msra.mxu0 %v3610_v24 }
 0x243   :  { %1698 = vmatprep.subr.mxu0 %v3613_v25 }
 0x244   :  { %1699 = vmatpush1.msra.mxu0 %v3616_v26 }
 0x245   :  { %1700 = vmatprep.subr.mxu0 %v3619_v27 }
 0x246   :  { %1701 = vmatpush1.msra.mxu0 %v3622_v28 }
 0x247   :  { %1702 = vmatprep.subr.mxu0 %v3625_v29 }
 0x248   :  { %1703 = vmatpush1.msra.mxu0 %v3628_v30 }
 0x249   :  { %1704 = vmatprep.subr.mxu0 %v3631_v31 }
 0x24a   :  { %1705 = vmatpush1.msra.mxu0 %v3634_v32 }
 0x24b   :  { %1706 = vmatprep.subr.mxu0 %v3637_v33 }
 0x24c   :  { %1707 = vmatpush1.msra.mxu0 %v3640_v34 }
 0x24d   :  { %1708 = vmatprep.subr.mxu0 %v3643_v35 }
 0x24e   :  { %1709 = vmatpush1.msra.mxu0 %v3646_v36 }
 0x24f   :  { %1710 = vmatprep.subr.mxu0 %v3649_v37 }
 0x250   :  { %1711 = vmatpush1.msra.mxu0 %v3652_v38 }
 0x251   :  { %1712 = vmatprep.subr.mxu0 %v3655_v39 }
 0x252   :  { %1713 = vmatpush1.msra.mxu0 %v4511_v41 }
 0x253   :  { %1714 = vmatprep.subr.mxu0 %v4512_v11 }
 0x254   :  { %1715 = vmatpush1.msra.mxu0 %v4513_v43 }
 0x255   :  { %1716 = vmatprep.subr.mxu0 %v4514_v6 }
 0x256   :  { %1717 = vmatpush1.msra.mxu0 %v4515_v40 }
 0x257   :  { %1852 = vmatprep.subr.mxu0 %v4516_v12 }
 0x2f7   :  { %v1586_v46 = vpop.f32.mrf.mxu0 }
 0x2f8   :  { %v1591_v45 = vadd.f32 %v1586_v46, %v4517_v5 }
 0x2f9   :  { %v1588_v13 = vpop.f32.mrf.mxu0 }
 0x2fa   :  { %v1592_v44 = vadd.f32 %v1588_v13, %v4518_v4 }
 0x2fc   :  { %v2718_v1 = vmul.f32 -1.442695, %v1592_v44 }
 0x2fe   :  { %3250 = vpow2.f32 %v2718_v1 }
 0x30b   :  { %v3251_v3 = vpop.eup %3250 }
 0x30c   :  { %v1600_v7 = vadd.f32 1.0, %v3251_v3 }
 0x30e   :  { %3252 = vrcp.f32 %v1600_v7 }
 0x31b   :  { %v3253_v63 = vpop.eup %3252 }
 0x31c   :  { %v1605_v8 = vmul.f32 %v3253_v63, %v3906_v42 }
 0x31e   :  { %3015 = vmatmul.mubr.f32.vlgmr.msra.gmra.mxu1 %v1605_v8  ;;  %v2717_v8 = vmul.f32 -1.442695, %v1591_v45 }
 0x31f   :  { %3018 = vmatpush3.msra.mxu1 %v3760_v47  ;;  %3049 = vmatprep.mubr.msk.f32.mxu1 %vm3487_vm1, %v4505_v2 }
 0x320   :  { %3019 = vmatprep.subr.mxu1 %v4505_v2  ;;  %3254 = vpow2.f32 %v2717_v8 }
 0x321   :  { %3020 = vmatpush3.msra.mxu1 %v3764_v48 }
 0x322   :  { %3021 = vmatprep.subr.mxu1 %v4505_v2 }
 0x323   :  { %3022 = vmatpush3.msra.mxu1 %v3768_v49 }
 0x324   :  { %3023 = vmatprep.subr.mxu1 %v4505_v2 }
 0x325   :  { %3024 = vmatpush3.msra.mxu1 %v3772_v50 }
 0x326   :  { %3025 = vmatprep.subr.mxu1 %v4505_v2 }
 0x327   :  { %3026 = vmatpush3.msra.mxu1 %v3776_v51 }
 0x328   :  { %3027 = vmatprep.subr.mxu1 %v4505_v2 }
 0x329   :  { %3028 = vmatpush3.msra.mxu1 %v3780_v52 }
 0x32a   :  { %3029 = vmatprep.subr.mxu1 %v4505_v2 }
 0x32b   :  { %3030 = vmatpush3.msra.mxu1 %v3784_v53 }
 0x32c   :  { %3031 = vmatprep.subr.mxu1 %v4505_v2 }
 0x32d   :  { %3032 = vmatpush3.msra.mxu1 %v3788_v54  ;;  %v3255_v63 = vpop.eup %3254 }
 0x32e   :  { %3033 = vmatprep.subr.mxu1 %v4505_v2  ;;  %v1599_v46 = vadd.f32 1.0, %v3255_v63 }
 0x32f   :  { %3034 = vmatpush3.msra.mxu1 %v3792_v55 }
 0x330   :  { %3035 = vmatprep.subr.mxu1 %v4505_v2 }
 0x331   :  { %3036 = vmatpush3.msra.mxu1 %v3794_v56 }
 0x332   :  { %3037 = vmatprep.subr.mxu1 %v4505_v2 }
 0x333   :  { %3038 = vmatpush3.msra.mxu1 %v3798_v57 }
 0x334   :  { %3039 = vmatprep.subr.mxu1 %v4505_v2 }
 0x335   :  { %3040 = vmatpush3.msra.mxu1 %v3802_v58 }
 0x336   :  { %3041 = vmatprep.subr.mxu1 %v4505_v2 }
 0x337   :  { %3042 = vmatpush3.msra.mxu1 %v3806_v59 }
 0x338   :  { %3043 = vmatprep.subr.mxu1 %v4505_v2 }
 0x339   :  { %3044 = vmatpush3.msra.mxu1 %v3810_v60 }
 0x33a   :  { %3045 = vmatprep.subr.mxu1 %v4505_v2 }
 0x33b   :  { %3046 = vmatpush3.msra.mxu1 %v3814_v61 }
 0x33c   :  { %3047 = vmatprep.subr.mxu1 %v4505_v2 }
 0x33d   :  { %3048 = vmatpush3.msra.mxu1 %v3818_v62 }
 0x33e   :  { %3052 = vmatprep.subr.mxu1 %v4505_v2 }
 0x3de   :  { %v1672_v7 = vpop.f32.mrf.mxu1 }
 0x3df   :  { %v1676_v5 = vadd.f32 %v1672_v7, %v3863_v0 }
 0x3e0   :  { %v3016_v13 = vpop.f32.mrf.mxu1 }
 0x3e1   :  { %3256 = vtanh.f32 %v1676_v5 }
 0x3e2   :  { %3258 = vrcp.f32 %v1599_v46 }
 0x3ee   :  { %v3257_v4 = vpop.eup %3256 }
 0x3ef   :  { %v1678_v44 = vsub.f32 %v3906_v42, %v3257_v4  ;;  %v3259_v1 = vpop.eup %3258  ;;  %v4520_v42 = vld [vmem:[#allocation26_spill] sm:$0xff] }
 0x3f1   :  { %v1679_v3 = vmul.f32 %v3259_v1, %v1678_v44 }
 0x3f3   :  { %v3982_v10 = vadd.f32 %v3257_v4, %v1679_v3 }
 0x3f5   :  { %1682 = vst [vmem:[#allocation12 + $0x8] sm:$0xff] %v3982_v10  ;;  %1751 = vmatmul.mubr.f32.vlgmr.msra.gmra.mxu0 %v3982_v10 }
 0x3f6   :  { %1853 = vmatpush1.msra.mxu0 %v3578_v14  ;;  %1916 = vmatprep.mubr.f32.mxu0 %v4505_v2 }
 0x3f7   :  { %1854 = vmatprep.subr.mxu0 %v3580_v15  ;;  %v4519_v15 = vld [vmem:[#allocation25_spill] sm:$0xff] }
 0x3f8   :  { %1855 = vmatpush1.msra.mxu0 %v3585_v16 }
 0x3f9   :  { %1856 = vmatprep.subr.mxu0 %v3588_v17 }
 0x3fa   :  { %1857 = vmatpush1.msra.mxu0 %v3592_v18 }
 0x3fb   :  { %1858 = vmatprep.subr.mxu0 %v3595_v19 }
 0x3fc   :  { %1859 = vmatpush1.msra.mxu0 %v3598_v20 }
 0x3fd   :  { %1860 = vmatprep.subr.mxu0 %v3601_v21 }
 0x3fe   :  { %1861 = vmatpush1.msra.mxu0 %v3604_v22 }
 0x3ff   :  { %1862 = vmatprep.subr.mxu0 %v3607_v23 }
 0x400   :  { %1863 = vmatpush1.msra.mxu0 %v3610_v24 }
 0x401   :  { %1864 = vmatprep.subr.mxu0 %v3613_v25 }
 0x402   :  { %1865 = vmatpush1.msra.mxu0 %v3616_v26 }
 0x403   :  { %1866 = vmatprep.subr.mxu0 %v3619_v27 }
 0x404   :  { %1867 = vmatpush1.msra.mxu0 %v3622_v28 }
 0x405   :  { %1868 = vmatprep.subr.mxu0 %v3625_v29 }
 0x406   :  { %1869 = vmatpush1.msra.mxu0 %v3628_v30 }
 0x407   :  { %1870 = vmatprep.subr.mxu0 %v3631_v31 }
 0x408   :  { %1871 = vmatpush1.msra.mxu0 %v3634_v32 }
 0x409   :  { %1872 = vmatprep.subr.mxu0 %v3637_v33 }
 0x40a   :  { %1873 = vmatpush1.msra.mxu0 %v3640_v34 }
 0x40b   :  { %1874 = vmatprep.subr.mxu0 %v3643_v35 }
 0x40c   :  { %1875 = vmatpush1.msra.mxu0 %v3646_v36 }
 0x40d   :  { %1876 = vmatprep.subr.mxu0 %v3649_v37 }
 0x40e   :  { %1877 = vmatpush1.msra.mxu0 %v3652_v38 }
 0x40f   :  { %1878 = vmatprep.subr.mxu0 %v3655_v39 }
 0x410   :  { %1879 = vmatpush1.msra.mxu0 %v4511_v41 }
 0x411   :  { %1880 = vmatprep.subr.mxu0 %v4512_v11 }
 0x412   :  { %1881 = vmatpush1.msra.mxu0 %v4513_v43 }
 0x413   :  { %1882 = vmatprep.subr.mxu0 %v4514_v6 }
 0x414   :  { %1883 = vmatpush1.msra.mxu0 %v4515_v40 }
 0x415   :  { %2018 = vmatprep.subr.mxu0 %v4516_v12 }
 0x4b5   :  { %v1752_v14 = vpop.f32.mrf.mxu0 }
 0x4b6   :  { %v1757_v16 = vadd.f32 %v1752_v14, %v4519_v15 }
 0x4b7   :  { %v1754_v17 = vpop.f32.mrf.mxu0 }
 0x4b8   :  { %v1758_v0 = vadd.f32 %v1754_v17, %v4520_v42  ;;  %v2719_v12 = vmul.f32 -1.442695, %v1757_v16  ;;  %v4062_v16 = vld [vmem:[#allocation9 + $0xf0] sm:$0xff] }
 0x4ba   :  { %v2720_v45 = vmul.f32 -1.442695, %v1758_v0  ;;  %v4069_v0 = vld [vmem:[#allocation9 + $0xe0] sm:$0xff] }
 0x4bc   :  { %3260 = vpow2.f32 %v2720_v45  ;;  %v4162_v45 = vld [vmem:[#allocation9 + $0xb8] sm:$0xff] }
 0x4c9   :  { %v3261_v8 = vpop.eup %3260 }
 0x4ca   :  { %v1766_v63 = vadd.f32 1.0, %v3261_v8  ;;  %v4165_v8 = vld [vmem:[#allocation9 + $0xb0] sm:$0xff] }
 0x4cc   :  { %3262 = vrcp.f32 %v1766_v63  ;;  %v4168_v63 = vld [vmem:[#allocation9 + $0xa8] sm:$0xff] }
 0x4cd   :  { %3264 = vpow2.f32 %v2719_v12  ;;  %v4177_v12 = vld [vmem:[#allocation9 + $0x90] sm:$0xff] }
 0x4d9   :  { %v3263_v7 = vpop.eup %3262 }
 0x4da   :  { %v1771_v46 = vmul.f32 %v3263_v7, %v3982_v10  ;;  %v3265_v5 = vpop.eup %3264  ;;  %v4171_v7 = vld [vmem:[#allocation9 + $0xa0] sm:$0xff] }
 0x4db   :  { %v1765_v4 = vadd.f32 1.0, %v3265_v5  ;;  %v4180_v5 = vld [vmem:[#allocation9 + $0x88] sm:$0xff] }
 0x4dc   :  { %3050 = vmatmul.mubr.f32.vlgmr.msra.gmra.mxu1 %v1771_v46  ;;  %v4174_v46 = vld [vmem:[#allocation9 + $0x98] sm:$0xff] }
 0x4dd   :  { %3053 = vmatpush3.msra.mxu1 %v3760_v47  ;;  %3084 = vmatprep.mubr.msk.f32.mxu1 %vm3487_vm1, %v4505_v2 }
 0x4de   :  { %3054 = vmatprep.subr.mxu1 %v4505_v2 }
 0x4df   :  { %3055 = vmatpush3.msra.mxu1 %v3764_v48 }
 0x4e0   :  { %3056 = vmatprep.subr.mxu1 %v4505_v2 }
 0x4e1   :  { %3057 = vmatpush3.msra.mxu1 %v3768_v49 }
 0x4e2   :  { %3058 = vmatprep.subr.mxu1 %v4505_v2 }
 0x4e3   :  { %3059 = vmatpush3.msra.mxu1 %v3772_v50 }
 0x4e4   :  { %3060 = vmatprep.subr.mxu1 %v4505_v2 }
 0x4e5   :  { %3061 = vmatpush3.msra.mxu1 %v3776_v51 }
 0x4e6   :  { %3062 = vmatprep.subr.mxu1 %v4505_v2 }
 0x4e7   :  { %3063 = vmatpush3.msra.mxu1 %v3780_v52 }
 0x4e8   :  { %3064 = vmatprep.subr.mxu1 %v4505_v2 }
 0x4e9   :  { %3065 = vmatpush3.msra.mxu1 %v3784_v53 }
 0x4ea   :  { %3066 = vmatprep.subr.mxu1 %v4505_v2 }
 0x4eb   :  { %3067 = vmatpush3.msra.mxu1 %v3788_v54 }
 0x4ec   :  { %3068 = vmatprep.subr.mxu1 %v4505_v2 }
 0x4ed   :  { %3069 = vmatpush3.msra.mxu1 %v3792_v55 }
 0x4ee   :  { %3070 = vmatprep.subr.mxu1 %v4505_v2 }
 0x4ef   :  { %3071 = vmatpush3.msra.mxu1 %v3794_v56 }
 0x4f0   :  { %3072 = vmatprep.subr.mxu1 %v4505_v2 }
 0x4f1   :  { %3073 = vmatpush3.msra.mxu1 %v3798_v57 }
 0x4f2   :  { %3074 = vmatprep.subr.mxu1 %v4505_v2 }
 0x4f3   :  { %3075 = vmatpush3.msra.mxu1 %v3802_v58 }
 0x4f4   :  { %3076 = vmatprep.subr.mxu1 %v4505_v2 }
 0x4f5   :  { %3077 = vmatpush3.msra.mxu1 %v3806_v59 }
 0x4f6   :  { %3078 = vmatprep.subr.mxu1 %v4505_v2 }
 0x4f7   :  { %3079 = vmatpush3.msra.mxu1 %v3810_v60 }
 0x4f8   :  { %3080 = vmatprep.subr.mxu1 %v4505_v2 }
 0x4f9   :  { %3081 = vmatpush3.msra.mxu1 %v3814_v61 }
 0x4fa   :  { %3082 = vmatprep.subr.mxu1 %v4505_v2 }
 0x4fb   :  { %3083 = vmatpush3.msra.mxu1 %v3818_v62 }
 0x4fc   :  { %3087 = vmatprep.subr.mxu1 %v4505_v2 }
 0x59c   :  { %v1838_v13 = vpop.f32.mrf.mxu1 }
 0x59d   :  { %v1842_v44 = vadd.f32 %v1838_v13, %v3869_v9  ;;  %v4066_v9 = vld [vmem:[#allocation9 + $0xe8] sm:$0xff]  ;;  %v4183_v13 = vld [vmem:[#allocation9 + $0x80] sm:$0xff] }
 0x59e   :  { %v3051_v1 = vpop.f32.mrf.mxu1 }
 0x59f   :  { %3266 = vtanh.f32 %v1842_v44  ;;  %v4189_v44 = vld [vmem:[#allocation9 + $0x70] sm:$0xff]  ;;  %v4192_v1 = vld [vmem:[#allocation9 + $0x68] sm:$0xff] }
 0x5a0   :  { %3268 = vrcp.f32 %v1765_v4  ;;  %v4186_v4 = vld [vmem:[#allocation9 + $0x78] sm:$0xff] }
 0x5ac   :  { %v3267_v3 = vpop.eup %3266 }
 0x5ad   :  { %v1844_v14 = vsub.f32 %v3982_v10, %v3267_v3  ;;  %v3269_v15 = vpop.eup %3268  ;;  %v4072_v10 = vld [vmem:[#allocation9 + $0xd8] sm:$0xff] }
 0x5af   :  { %v1845_v17 = vmul.f32 %v3269_v15, %v1844_v14  ;;  %v4198_v14 = vld [vmem:[#allocation9 + $0x58] sm:$0xff]  ;;  %v4201_v15 = vld [vmem:[#allocation9 + $0x50] sm:$0xff] }
 0x5b1   :  { %v4058_v42 = vadd.f32 %v3267_v3, %v1845_v17  ;;  %v4195_v3 = vld [vmem:[#allocation9 + $0x60] sm:$0xff]  ;;  %v4204_v17 = vld [vmem:[#allocation9 + $0x48] sm:$0xff] }
 0x5b3   :  { %1848 = vst [vmem:[#allocation12 + $0x10] sm:$0xff] %v4058_v42  ;;  %1917 = vmatmul.mubr.f32.vlgmr.msra.gmra.mxu0 %v4058_v42 }
 0x5b4   :  { %2019 = vmatpush1.msra.mxu0 %v4062_v16  ;;  %2082 = vmatprep.mubr.f32.mxu0 %v4505_v2 }
 0x5b5   :  { %2020 = vmatprep.subr.mxu0 %v4066_v9 }
 0x5b6   :  { %2021 = vmatpush1.msra.mxu0 %v4069_v0 }
 0x5b7   :  { %2022 = vmatprep.subr.mxu0 %v4072_v10 }
 0x5b8   :  { %2023 = vmatpush1.msra.mxu0 %v3592_v18  ;;  %v4102_v18 = vld [vmem:[#allocation9 + $0xf8] sm:$0xff] }
 0x5b9   :  { %2024 = vmatprep.subr.mxu0 %v3595_v19 }
 0x5ba   :  { %2025 = vmatpush1.msra.mxu0 %v3598_v20  ;;  %v4521_v20 = vld [vmem:[#allocation27_spill] sm:$0xff] }
 0x5bb   :  { %2026 = vmatprep.subr.mxu0 %v3601_v21 }
 0x5bc   :  { %2027 = vmatpush1.msra.mxu0 %v3604_v22 }
 0x5bd   :  { %2028 = vmatprep.subr.mxu0 %v3607_v23  ;;  %v4522_v23 = vld [vmem:[#allocation28_spill] sm:$0xff] }
 0x5be   :  { %2029 = vmatpush1.msra.mxu0 %v3610_v24 }
 0x5bf   :  { %2030 = vmatprep.subr.mxu0 %v3613_v25 }
 0x5c0   :  { %2031 = vmatpush1.msra.mxu0 %v3616_v26 }
 0x5c1   :  { %2032 = vmatprep.subr.mxu0 %v3619_v27 }
 0x5c2   :  { %2033 = vmatpush1.msra.mxu0 %v3622_v28 }
 0x5c3   :  { %2034 = vmatprep.subr.mxu0 %v3625_v29 }
 0x5c4   :  { %2035 = vmatpush1.msra.mxu0 %v3628_v30 }
 0x5c5   :  { %2036 = vmatprep.subr.mxu0 %v3631_v31 }
 0x5c6   :  { %2037 = vmatpush1.msra.mxu0 %v3634_v32 }
 0x5c7   :  { %2038 = vmatprep.subr.mxu0 %v3637_v33 }
 0x5c8   :  { %2039 = vmatpush1.msra.mxu0 %v3640_v34  ;;  %v4523_v34 = vld [vmem:[#allocation37_spill] sm:$0xff] }
 0x5c9   :  { %2040 = vmatprep.subr.mxu0 %v3643_v35 }
 0x5ca   :  { %2041 = vmatpush1.msra.mxu0 %v3646_v36 }
 0x5cb   :  { %2042 = vmatprep.subr.mxu0 %v3649_v37 }
 0x5cc   :  { %2043 = vmatpush1.msra.mxu0 %v3652_v38 }
 0x5cd   :  { %2044 = vmatprep.subr.mxu0 %v3655_v39 }
 0x5ce   :  { %2045 = vmatpush1.msra.mxu0 %v4511_v41 }
 0x5cf   :  { %2046 = vmatprep.subr.mxu0 %v4512_v11 }
 0x5d0   :  { %2047 = vmatpush1.msra.mxu0 %v4513_v43  ;;  %v4153_v43 = vld [vmem:[#allocation9 + $0xd0] sm:$0xff] }
 0x5d1   :  { %2048 = vmatprep.subr.mxu0 %v4514_v6  ;;  %v4156_v6 = vld [vmem:[#allocation9 + $0xc8] sm:$0xff] }
 0x5d2   :  { %2049 = vmatpush1.msra.mxu0 %v4515_v40  ;;  %v4159_v40 = vld [vmem:[#allocation9 + $0xc0] sm:$0xff] }
 0x5d3   :  { %2184 = vmatprep.subr.mxu0 %v4102_v18 }
 0x673   :  { %v1918_v19 = vpop.f32.mrf.mxu0 }
 0x674   :  { %v1923_v21 = vadd.f32 %v1918_v19, %v4521_v20  ;;  %v4210_v19 = vld [vmem:[#allocation9 + $0x38] sm:$0xff]  ;;  %v4213_v20 = vld [vmem:[#allocation9 + $0x30] sm:$0xff] }
 0x675   :  { %v1920_v22 = vpop.f32.mrf.mxu0 }
 0x676   :  { %v1924_v24 = vadd.f32 %v1920_v22, %v4522_v23  ;;  %v2721_v30 = vmul.f32 -1.442695, %v1923_v21  ;;  %v4216_v21 = vld [vmem:[#allocation9 + $0x28] sm:$0xff]  ;;  %v4219_v22 = vld [vmem:[#allocation9 + $0x20] sm:$0xff]  ;;  %v4222_v23 = vld [vmem:[#allocation9 + $0x18] sm:$0xff] }
 0x678   :  { %v2722_v25 = vmul.f32 -1.442695, %v1924_v24  ;;  %v4225_v24 = vld [vmem:[#allocation9 + $0x10] sm:$0xff] }
 0x67a   :  { %3270 = vpow2.f32 %v2722_v25  ;;  %v4228_v25 = vld [vmem:[#allocation9 + $0x8] sm:$0xff] }
 0x687   :  { %v3271_v26 = vpop.eup %3270 }
 0x688   :  { %v1932_v27 = vadd.f32 1.0, %v3271_v26  ;;  %v4231_v26 = vld [vmem:[#allocation9] sm:$0xff] }
 0x68a   :  { %3272 = vrcp.f32 %v1932_v27 }
 0x68b   :  { %3274 = vpow2.f32 %v2721_v30 }
 0x697   :  { %v3273_v28 = vpop.eup %3272 }
 0x698   :  { %v1937_v29 = vmul.f32 %v3273_v28, %v4058_v42  ;;  %v3275_v31 = vpop.eup %3274  ;;  %v4524_v28 = vld [vmem:[#allocation29_spill] sm:$0xff] }
 0x699   :  { %v1931_v33 = vadd.f32 1.0, %v3275_v31  ;;  %v4525_v31 = vld [vmem:[#allocation30_spill] sm:$0xff] }
 0x69a   :  { %3085 = vmatmul.mubr.f32.vlgmr.msra.gmra.mxu1 %v1937_v29 }
 0x69b   :  { %3088 = vmatpush3.msra.mxu1 %v3760_v47  ;;  %3119 = vmatprep.mubr.msk.f32.mxu1 %vm3487_vm1, %v4505_v2 }
 0x69c   :  { %3089 = vmatprep.subr.mxu1 %v4505_v2 }
 0x69d   :  { %3090 = vmatpush3.msra.mxu1 %v3764_v48 }
 0x69e   :  { %3091 = vmatprep.subr.mxu1 %v4505_v2 }
 0x69f   :  { %3092 = vmatpush3.msra.mxu1 %v3768_v49 }
 0x6a0   :  { %3093 = vmatprep.subr.mxu1 %v4505_v2 }
 0x6a1   :  { %3094 = vmatpush3.msra.mxu1 %v3772_v50 }
 0x6a2   :  { %3095 = vmatprep.subr.mxu1 %v4505_v2 }
 0x6a3   :  { %3096 = vmatpush3.msra.mxu1 %v3776_v51 }
 0x6a4   :  { %3097 = vmatprep.subr.mxu1 %v4505_v2 }
 0x6a5   :  { %3098 = vmatpush3.msra.mxu1 %v3780_v52 }
 0x6a6   :  { %3099 = vmatprep.subr.mxu1 %v4505_v2 }
 0x6a7   :  { %3100 = vmatpush3.msra.mxu1 %v3784_v53 }
 0x6a8   :  { %3101 = vmatprep.subr.mxu1 %v4505_v2 }
 0x6a9   :  { %3102 = vmatpush3.msra.mxu1 %v3788_v54 }
 0x6aa   :  { %3103 = vmatprep.subr.mxu1 %v4505_v2 }
 0x6ab   :  { %3104 = vmatpush3.msra.mxu1 %v3792_v55 }
 0x6ac   :  { %3105 = vmatprep.subr.mxu1 %v4505_v2 }
 0x6ad   :  { %3106 = vmatpush3.msra.mxu1 %v3794_v56 }
 0x6ae   :  { %3107 = vmatprep.subr.mxu1 %v4505_v2 }
 0x6af   :  { %3108 = vmatpush3.msra.mxu1 %v3798_v57 }
 0x6b0   :  { %3109 = vmatprep.subr.mxu1 %v4505_v2 }
 0x6b1   :  { %3110 = vmatpush3.msra.mxu1 %v3802_v58 }
 0x6b2   :  { %3111 = vmatprep.subr.mxu1 %v4505_v2 }
 0x6b3   :  { %3112 = vmatpush3.msra.mxu1 %v3806_v59 }
 0x6b4   :  { %3113 = vmatprep.subr.mxu1 %v4505_v2 }
 0x6b5   :  { %3114 = vmatpush3.msra.mxu1 %v3810_v60 }
 0x6b6   :  { %3115 = vmatprep.subr.mxu1 %v4505_v2 }
 0x6b7   :  { %3116 = vmatpush3.msra.mxu1 %v3814_v61 }
 0x6b8   :  { %3117 = vmatprep.subr.mxu1 %v4505_v2 }
 0x6b9   :  { %3118 = vmatpush3.msra.mxu1 %v3818_v62 }
 0x6ba   :  { %3122 = vmatprep.subr.mxu1 %v4505_v2 }
 0x75a   :  { %v2004_v32 = vpop.f32.mrf.mxu1 }
 0x75b   :  { %v2008_v35 = vadd.f32 %v2004_v32, %v4523_v34 }
 0x75c   :  { %v3086_v36 = vpop.f32.mrf.mxu1 }
 0x75d   :  { %3276 = vtanh.f32 %v2008_v35 }
 0x75e   :  { %3278 = vrcp.f32 %v1931_v33 }
 0x76a   :  { %v3277_v37 = vpop.eup %3276 }
 0x76b   :  { %v2010_v38 = vsub.f32 %v4058_v42, %v3277_v37  ;;  %v3279_v39 = vpop.eup %3278  ;;  %v4207_v42 = vld [vmem:[#allocation9 + $0x40] sm:$0xff] }
 0x76d   :  { %v2011_v41 = vmul.f32 %v3279_v39, %v2010_v38  ;;  %v4528_v38 = vld [vmem:[#allocation32_spill] sm:$0xff] }
 0x76f   :  { %v4144_v11 = vadd.f32 %v3277_v37, %v2011_v41 }
 0x771   :  { %2014 = vst [vmem:[#allocation12 + $0x18] sm:$0xff] %v4144_v11  ;;  %2083 = vmatmul.mubr.f32.vlgmr.msra.gmra.mxu0 %v4144_v11 }
 0x772   :  { %2185 = vmatpush1.msra.mxu0 %v4062_v16  ;;  %2248 = vmatprep.mubr.f32.mxu0 %v4505_v2 }
 0x773   :  { %2186 = vmatprep.subr.mxu0 %v4066_v9 }
 0x774   :  { %2187 = vmatpush1.msra.mxu0 %v4069_v0 }
 0x775   :  { %2188 = vmatprep.subr.mxu0 %v4072_v10 }
 0x776   :  { %2189 = vmatpush1.msra.mxu0 %v4153_v43 }
 0x777   :  { %2190 = vmatprep.subr.mxu0 %v4156_v6 }
 0x778   :  { %2191 = vmatpush1.msra.mxu0 %v4159_v40 }
 0x779   :  { %2192 = vmatprep.subr.mxu0 %v4162_v45 }
 0x77a   :  { %2193 = vmatpush1.msra.mxu0 %v4165_v8 }
 0x77b   :  { %2194 = vmatprep.subr.mxu0 %v4168_v63 }
 0x77c   :  { %2195 = vmatpush1.msra.mxu0 %v4171_v7 }
 0x77d   :  { %2196 = vmatprep.subr.mxu0 %v4174_v46 }
 0x77e   :  { %2197 = vmatpush1.msra.mxu0 %v4177_v12 }
 0x77f   :  { %2198 = vmatprep.subr.mxu0 %v4180_v5 }
 0x780   :  { %2199 = vmatpush1.msra.mxu0 %v4183_v13 }
 0x781   :  { %2200 = vmatprep.subr.mxu0 %v4186_v4 }
 0x782   :  { %2201 = vmatpush1.msra.mxu0 %v4189_v44 }
 0x783   :  { %2202 = vmatprep.subr.mxu0 %v4192_v1 }
 0x784   :  { %2203 = vmatpush1.msra.mxu0 %v4195_v3 }
 0x785   :  { %2204 = vmatprep.subr.mxu0 %v4198_v14 }
 0x786   :  { %2205 = vmatpush1.msra.mxu0 %v4201_v15 }
 0x787   :  { %2206 = vmatprep.subr.mxu0 %v4204_v17 }
 0x788   :  { %2207 = vmatpush1.msra.mxu0 %v4207_v42 }
 0x789   :  { %2208 = vmatprep.subr.mxu0 %v4210_v19 }
 0x78a   :  { %2209 = vmatpush1.msra.mxu0 %v4213_v20 }
 0x78b   :  { %2210 = vmatprep.subr.mxu0 %v4216_v21 }
 0x78c   :  { %2211 = vmatpush1.msra.mxu0 %v4219_v22 }
 0x78d   :  { %2212 = vmatprep.subr.mxu0 %v4222_v23 }
 0x78e   :  { %2213 = vmatpush1.msra.mxu0 %v4225_v24 }
 0x78f   :  { %2214 = vmatprep.subr.mxu0 %v4228_v25 }
 0x790   :  { %2215 = vmatpush1.msra.mxu0 %v4231_v26 }
 0x791   :  { %2350 = vmatprep.subr.mxu0 %v4102_v18 }
 0x831   :  { %v2084_v27 = vpop.f32.mrf.mxu0 }
 0x832   :  { %v2089_v29 = vadd.f32 %v2084_v27, %v4524_v28 }
 0x833   :  { %v2086_v30 = vpop.f32.mrf.mxu0 }
 0x834   :  { %v2090_v32 = vadd.f32 %v2086_v30, %v4525_v31  ;;  %v4314_v30 = vld [vmem:[#allocation10 + $0x78] sm:$0xff]  ;;  %v4324_v31 = vld [vmem:[#allocation10 + $0x68] sm:$0xff] }
 0x836   :  { %v2724_v33 = vmul.f32 -1.442695, %v2090_v32  ;;  %v4328_v32 = vld [vmem:[#allocation10 + $0x60] sm:$0xff] }
 0x838   :  { %3280 = vpow2.f32 %v2724_v33  ;;  %v4332_v33 = vld [vmem:[#allocation10 + $0x58] sm:$0xff] }
 0x845   :  { %v3281_v34 = vpop.eup %3280 }
 0x846   :  { %v2098_v35 = vadd.f32 1.0, %v3281_v34  ;;  %v4336_v34 = vld [vmem:[#allocation10 + $0x50] sm:$0xff] }
 0x848   :  { %3282 = vrcp.f32 %v2098_v35  ;;  %v4340_v35 = vld [vmem:[#allocation10 + $0x48] sm:$0xff] }
 0x855   :  { %v3283_v36 = vpop.eup %3282 }
 0x856   :  { %v2103_v37 = vmul.f32 %v3283_v36, %v4144_v11  ;;  %v4344_v36 = vld [vmem:[#allocation10 + $0x40] sm:$0xff] }
 0x858   :  { %3120 = vmatmul.mubr.f32.vlgmr.msra.gmra.mxu1 %v2103_v37  ;;  %v4348_v37 = vld [vmem:[#allocation10 + $0x38] sm:$0xff] }
 0x859   :  { %3123 = vmatpush3.msra.mxu1 %v3760_v47  ;;  %3154 = vmatprep.mubr.msk.f32.mxu1 %vm3487_vm1, %v4505_v2  ;;  %v2723_v47 = vmul.f32 -1.442695, %v2089_v29 }
 0x85a   :  { %3124 = vmatprep.subr.mxu1 %v4505_v2 }
 0x85b   :  { %3125 = vmatpush3.msra.mxu1 %v3764_v48  ;;  %3284 = vpow2.f32 %v2723_v47  ;;  %v4352_v47 = vld [vmem:[#allocation10 + $0x30] sm:$0xff] }
 0x85c   :  { %3126 = vmatprep.subr.mxu1 %v4505_v2 }
 0x85d   :  { %3127 = vmatpush3.msra.mxu1 %v3768_v49 }
 0x85e   :  { %3128 = vmatprep.subr.mxu1 %v4505_v2 }
 0x85f   :  { %3129 = vmatpush3.msra.mxu1 %v3772_v50 }
 0x860   :  { %3130 = vmatprep.subr.mxu1 %v4505_v2 }
 0x861   :  { %3131 = vmatpush3.msra.mxu1 %v3776_v51  ;;  %v4526_v51 = vld [vmem:[#allocation38_spill] sm:$0xff] }
 0x862   :  { %3132 = vmatprep.subr.mxu1 %v4505_v2 }
 0x863   :  { %3133 = vmatpush3.msra.mxu1 %v3780_v52 }
 0x864   :  { %3134 = vmatprep.subr.mxu1 %v4505_v2 }
 0x865   :  { %3135 = vmatpush3.msra.mxu1 %v3784_v53 }
 0x866   :  { %3136 = vmatprep.subr.mxu1 %v4505_v2 }
 0x867   :  { %3137 = vmatpush3.msra.mxu1 %v3788_v54 }
 0x868   :  { %3138 = vmatprep.subr.mxu1 %v4505_v2  ;;  %v3285_v48 = vpop.eup %3284 }
 0x869   :  { %3139 = vmatpush3.msra.mxu1 %v3792_v55  ;;  %v2097_v50 = vadd.f32 1.0, %v3285_v48  ;;  %v4356_v48 = vld [vmem:[#allocation10 + $0x28] sm:$0xff] }
 0x86a   :  { %3140 = vmatprep.subr.mxu1 %v4505_v2 }
 0x86b   :  { %3141 = vmatpush3.msra.mxu1 %v3794_v56 }
 0x86c   :  { %3142 = vmatprep.subr.mxu1 %v4505_v2 }
 0x86d   :  { %3143 = vmatpush3.msra.mxu1 %v3798_v57 }
 0x86e   :  { %3144 = vmatprep.subr.mxu1 %v4505_v2 }
 0x86f   :  { %3145 = vmatpush3.msra.mxu1 %v3802_v58 }
 0x870   :  { %3146 = vmatprep.subr.mxu1 %v4505_v2 }
 0x871   :  { %3147 = vmatpush3.msra.mxu1 %v3806_v59 }
 0x872   :  { %3148 = vmatprep.subr.mxu1 %v4505_v2 }
 0x873   :  { %3149 = vmatpush3.msra.mxu1 %v3810_v60  ;;  %v4527_v60 = vld [vmem:[#allocation31_spill] sm:$0xff] }
 0x874   :  { %3150 = vmatprep.subr.mxu1 %v4505_v2 }
 0x875   :  { %3151 = vmatpush3.msra.mxu1 %v3814_v61 }
 0x876   :  { %3152 = vmatprep.subr.mxu1 %v4505_v2 }
 0x877   :  { %3153 = vmatpush3.msra.mxu1 %v3818_v62 }
 0x878   :  { %3157 = vmatprep.subr.mxu1 %v4505_v2 }
 0x918   :  { %v2170_v49 = vpop.f32.mrf.mxu1 }
 0x919   :  { %v2174_v52 = vadd.f32 %v2170_v49, %v4526_v51  ;;  %v4360_v49 = vld [vmem:[#allocation10 + $0x20] sm:$0xff]  ;;  %v4368_v51 = vld [vmem:[#allocation10 + $0x10] sm:$0xff] }
 0x91a   :  { %v3121_v53 = vpop.f32.mrf.mxu1 }
 0x91b   :  { %3286 = vtanh.f32 %v2174_v52  ;;  %v4372_v52 = vld [vmem:[#allocation10 + $0x8] sm:$0xff]  ;;  %v4376_v53 = vld [vmem:[#allocation10] sm:$0xff] }
 0x91c   :  { %3288 = vrcp.f32 %v2097_v50  ;;  %v4364_v50 = vld [vmem:[#allocation10 + $0x18] sm:$0xff] }
 0x928   :  { %v3287_v54 = vpop.eup %3286 }
 0x929   :  { %v2176_v55 = vsub.f32 %v4144_v11, %v3287_v54  ;;  %v3289_v56 = vpop.eup %3288 }
 0x92b   :  { %v2177_v57 = vmul.f32 %v3289_v56, %v2176_v55 }
 0x92d   :  { %v4274_v58 = vadd.f32 %v3287_v54, %v2177_v57 }
 0x92f   :  { %2180 = vst [vmem:[#allocation12 + $0x20] sm:$0xff] %v4274_v58  ;;  %2249 = vmatmul.mubr.f32.vlgmr.msra.gmra.mxu0 %v4274_v58 }
 0x930   :  { %2351 = vmatpush1.msra.mxu0 %v4062_v16  ;;  %2414 = vmatprep.mubr.f32.mxu0 %v4505_v2 }
 0x931   :  { %2352 = vmatprep.subr.mxu0 %v4066_v9 }
 0x932   :  { %2353 = vmatpush1.msra.mxu0 %v4069_v0 }
 0x933   :  { %2354 = vmatprep.subr.mxu0 %v4072_v10 }
 0x934   :  { %2355 = vmatpush1.msra.mxu0 %v4153_v43 }
 0x935   :  { %2356 = vmatprep.subr.mxu0 %v4156_v6 }
 0x936   :  { %2357 = vmatpush1.msra.mxu0 %v4159_v40 }
 0x937   :  { %2358 = vmatprep.subr.mxu0 %v4162_v45 }
 0x938   :  { %2359 = vmatpush1.msra.mxu0 %v4165_v8 }
 0x939   :  { %2360 = vmatprep.subr.mxu0 %v4168_v63 }
 0x93a   :  { %2361 = vmatpush1.msra.mxu0 %v4171_v7 }
 0x93b   :  { %2362 = vmatprep.subr.mxu0 %v4174_v46 }
 0x93c   :  { %2363 = vmatpush1.msra.mxu0 %v4177_v12 }
 0x93d   :  { %2364 = vmatprep.subr.mxu0 %v4180_v5 }
 0x93e   :  { %2365 = vmatpush1.msra.mxu0 %v4183_v13 }
 0x93f   :  { %2366 = vmatprep.subr.mxu0 %v4186_v4 }
 0x940   :  { %2367 = vmatpush1.msra.mxu0 %v4189_v44 }
 0x941   :  { %2368 = vmatprep.subr.mxu0 %v4192_v1 }
 0x942   :  { %2369 = vmatpush1.msra.mxu0 %v4195_v3 }
 0x943   :  { %2370 = vmatprep.subr.mxu0 %v4198_v14 }
 0x944   :  { %2371 = vmatpush1.msra.mxu0 %v4201_v15 }
 0x945   :  { %2372 = vmatprep.subr.mxu0 %v4204_v17 }
 0x946   :  { %2373 = vmatpush1.msra.mxu0 %v4207_v42 }
 0x947   :  { %2374 = vmatprep.subr.mxu0 %v4210_v19 }
 0x948   :  { %2375 = vmatpush1.msra.mxu0 %v4213_v20 }
 0x949   :  { %2376 = vmatprep.subr.mxu0 %v4216_v21 }
 0x94a   :  { %2377 = vmatpush1.msra.mxu0 %v4219_v22 }
 0x94b   :  { %2378 = vmatprep.subr.mxu0 %v4222_v23 }
 0x94c   :  { %2379 = vmatpush1.msra.mxu0 %v4225_v24 }
 0x94d   :  { %2380 = vmatprep.subr.mxu0 %v4228_v25 }
 0x94e   :  { %2381 = vmatpush1.msra.mxu0 %v4231_v26 }
 0x94f   :  { %2516 = vmatprep.subr.mxu0 %v4102_v18  ;;  %v4320_v18 = vld [vmem:[#allocation10 + $0x70] sm:$0xff] }
 0x9ef   :  { %v2250_v59 = vpop.f32.mrf.mxu0 }
 0x9f0   :  { %v2255_v61 = vadd.f32 %v2250_v59, %v4527_v60  ;;  %v4529_v59 = vld [vmem:[#allocation39_spill] sm:$0xff] }
 0x9f1   :  { %v2252_v62 = vpop.f32.mrf.mxu0 }
 0x9f2   :  { %v2256_v39 = vadd.f32 %v2252_v62, %v4528_v38  ;;  %v2725_v54 = vmul.f32 -1.442695, %v2255_v61 }
 0x9f4   :  { %v2726_v41 = vmul.f32 -1.442695, %v2256_v39 }
 0x9f6   :  { %3290 = vpow2.f32 %v2726_v41 }
 0xa03   :  { %v3291_v11 = vpop.eup %3290 }
 0xa04   :  { %v2264_v27 = vadd.f32 1.0, %v3291_v11 }
 0xa06   :  { %3292 = vrcp.f32 %v2264_v27 }
 0xa07   :  { %3294 = vpow2.f32 %v2725_v54 }
 0xa13   :  { %v3293_v28 = vpop.eup %3292 }
 0xa14   :  { %v2269_v29 = vmul.f32 %v3293_v28, %v4274_v58  ;;  %v3295_v55 = vpop.eup %3294 }
 0xa15   :  { %v2263_v57 = vadd.f32 1.0, %v3295_v55 }
 0xa16   :  { %3155 = vmatmul.mubr.f32.vlgmr.msra.gmra.mxu1 %v2269_v29 }
 0xa17   :  { %3158 = vmatpush3.msra.mxu1 %v4314_v30  ;;  %3189 = vmatprep.mubr.msk.f32.mxu1 %vm3487_vm1, %v4505_v2 }
 0xa18   :  { %3159 = vmatprep.subr.mxu1 %v4505_v2 }
 0xa19   :  { %3160 = vmatpush3.msra.mxu1 %v4320_v18 }
 0xa1a   :  { %3161 = vmatprep.subr.mxu1 %v4505_v2 }
 0xa1b   :  { %3162 = vmatpush3.msra.mxu1 %v4324_v31 }
 0xa1c   :  { %3163 = vmatprep.subr.mxu1 %v4505_v2 }
 0xa1d   :  { %3164 = vmatpush3.msra.mxu1 %v4328_v32 }
 0xa1e   :  { %3165 = vmatprep.subr.mxu1 %v4505_v2 }
 0xa1f   :  { %3166 = vmatpush3.msra.mxu1 %v4332_v33 }
 0xa20   :  { %3167 = vmatprep.subr.mxu1 %v4505_v2 }
 0xa21   :  { %3168 = vmatpush3.msra.mxu1 %v4336_v34 }
 0xa22   :  { %3169 = vmatprep.subr.mxu1 %v4505_v2 }
 0xa23   :  { %3170 = vmatpush3.msra.mxu1 %v4340_v35 }
 0xa24   :  { %3171 = vmatprep.subr.mxu1 %v4505_v2 }
 0xa25   :  { %3172 = vmatpush3.msra.mxu1 %v4344_v36 }
 0xa26   :  { %3173 = vmatprep.subr.mxu1 %v4505_v2 }
 0xa27   :  { %3174 = vmatpush3.msra.mxu1 %v4348_v37 }
 0xa28   :  { %3175 = vmatprep.subr.mxu1 %v4505_v2 }
 0xa29   :  { %3176 = vmatpush3.msra.mxu1 %v4352_v47 }
 0xa2a   :  { %3177 = vmatprep.subr.mxu1 %v4505_v2 }
 0xa2b   :  { %3178 = vmatpush3.msra.mxu1 %v4356_v48 }
 0xa2c   :  { %3179 = vmatprep.subr.mxu1 %v4505_v2 }
 0xa2d   :  { %3180 = vmatpush3.msra.mxu1 %v4360_v49 }
 0xa2e   :  { %3181 = vmatprep.subr.mxu1 %v4505_v2 }
 0xa2f   :  { %3182 = vmatpush3.msra.mxu1 %v4364_v50 }
 0xa30   :  { %3183 = vmatprep.subr.mxu1 %v4505_v2 }
 0xa31   :  { %3184 = vmatpush3.msra.mxu1 %v4368_v51 }
 0xa32   :  { %3185 = vmatprep.subr.mxu1 %v4505_v2 }
 0xa33   :  { %3186 = vmatpush3.msra.mxu1 %v4372_v52 }
 0xa34   :  { %3187 = vmatprep.subr.mxu1 %v4505_v2 }
 0xa35   :  { %3188 = vmatpush3.msra.mxu1 %v4376_v53 }
 0xa36   :  { %3192 = vmatprep.subr.mxu1 %v4505_v2 }
 0xad6   :  { %v2336_v56 = vpop.f32.mrf.mxu1 }
 0xad7   :  { %v2340_v60 = vadd.f32 %v2336_v56, %v4529_v59 }
 0xad8   :  { %v3156_v62 = vpop.f32.mrf.mxu1 }
 0xad9   :  { %3296 = vtanh.f32 %v2340_v60 }
 0xada   :  { %3298 = vrcp.f32 %v2263_v57 }
 0xae6   :  { %v3297_v38 = vpop.eup %3296 }
 0xae7   :  { %v2342_v39 = vsub.f32 %v4274_v58, %v3297_v38  ;;  %v3299_v41 = vpop.eup %3298 }
 0xae9   :  { %v2343_v11 = vmul.f32 %v3299_v41, %v2342_v39 }
 0xaeb   :  { %v4382_v27 = vadd.f32 %v3297_v38, %v2343_v11 }
 0xaed   :  { %2346 = vst [vmem:[#allocation12 + $0x28] sm:$0xff] %v4382_v27  ;;  %2415 = vmatmul.mubr.f32.vlgmr.msra.gmra.mxu0 %v4382_v27 }
 0xaee   :  { %2517 = vmatpush1.msra.mxu0 %v4062_v16  ;;  %2580 = vmatprep.mubr.f32.mxu0 %v4505_v2 }
 0xaef   :  { %2518 = vmatprep.subr.mxu0 %v4066_v9  ;;  %v4530_v9 = vld [vmem:[#allocation33_spill] sm:$0xff] }
 0xaf0   :  { %2519 = vmatpush1.msra.mxu0 %v4069_v0 }
 0xaf1   :  { %2520 = vmatprep.subr.mxu0 %v4072_v10 }
 0xaf2   :  { %2521 = vmatpush1.msra.mxu0 %v4153_v43  ;;  %v4531_v43 = vld [vmem:[#allocation34_spill] sm:$0xff] }
 0xaf3   :  { %2522 = vmatprep.subr.mxu0 %v4156_v6 }
 0xaf4   :  { %2523 = vmatpush1.msra.mxu0 %v4159_v40 }
 0xaf5   :  { %2524 = vmatprep.subr.mxu0 %v4162_v45 }
 0xaf6   :  { %2525 = vmatpush1.msra.mxu0 %v4165_v8 }
 0xaf7   :  { %2526 = vmatprep.subr.mxu0 %v4168_v63 }
 0xaf8   :  { %2527 = vmatpush1.msra.mxu0 %v4171_v7 }
 0xaf9   :  { %2528 = vmatprep.subr.mxu0 %v4174_v46 }
 0xafa   :  { %2529 = vmatpush1.msra.mxu0 %v4177_v12 }
 0xafb   :  { %2530 = vmatprep.subr.mxu0 %v4180_v5 }
 0xafc   :  { %2531 = vmatpush1.msra.mxu0 %v4183_v13 }
 0xafd   :  { %2532 = vmatprep.subr.mxu0 %v4186_v4  ;;  %v4532_v4 = vld [vmem:[#allocation40_spill] sm:$0xff] }
 0xafe   :  { %2533 = vmatpush1.msra.mxu0 %v4189_v44 }
 0xaff   :  { %2534 = vmatprep.subr.mxu0 %v4192_v1 }
 0xb00   :  { %2535 = vmatpush1.msra.mxu0 %v4195_v3 }
 0xb01   :  { %2536 = vmatprep.subr.mxu0 %v4198_v14 }
 0xb02   :  { %2537 = vmatpush1.msra.mxu0 %v4201_v15 }
 0xb03   :  { %2538 = vmatprep.subr.mxu0 %v4204_v17 }
 0xb04   :  { %2539 = vmatpush1.msra.mxu0 %v4207_v42 }
 0xb05   :  { %2540 = vmatprep.subr.mxu0 %v4210_v19  ;;  %v4533_v19 = vld [vmem:[#allocation35_spill] sm:$0xff] }
 0xb06   :  { %2541 = vmatpush1.msra.mxu0 %v4213_v20 }
 0xb07   :  { %2542 = vmatprep.subr.mxu0 %v4216_v21 }
 0xb08   :  { %2543 = vmatpush1.msra.mxu0 %v4219_v22  ;;  %v4534_v22 = vld [vmem:[#allocation36_spill] sm:$0xff] }
 0xb09   :  { %2544 = vmatprep.subr.mxu0 %v4222_v23 }
 0xb0a   :  { %2545 = vmatpush1.msra.mxu0 %v4225_v24 }
 0xb0b   :  { %2546 = vmatprep.subr.mxu0 %v4228_v25 }
 0xb0c   :  { %2547 = vmatpush1.msra.mxu0 %v4231_v26 }
 0xbad   :  { %v2416_v16 = vpop.f32.mrf.mxu0 }
 0xbae   :  { %v2421_v0 = vadd.f32 %v2416_v16, %v4530_v9 }
 0xbaf   :  { %v2418_v10 = vpop.f32.mrf.mxu0 }
 0xbb0   :  { %v2422_v6 = vadd.f32 %v2418_v10, %v4531_v43  ;;  %v2727_v46 = vmul.f32 -1.442695, %v2421_v0 }
 0xbb2   :  { %v2728_v40 = vmul.f32 -1.442695, %v2422_v6 }
 0xbb4   :  { %3300 = vpow2.f32 %v2728_v40 }
 0xbc1   :  { %v3301_v45 = vpop.eup %3300 }
 0xbc2   :  { %v2430_v8 = vadd.f32 1.0, %v3301_v45 }
 0xbc4   :  { %3302 = vrcp.f32 %v2430_v8 }
 0xbc5   :  { %3304 = vpow2.f32 %v2727_v46 }
 0xbd1   :  { %v3303_v63 = vpop.eup %3302 }
 0xbd2   :  { %v2435_v7 = vmul.f32 %v3303_v63, %v4382_v27  ;;  %v3305_v12 = vpop.eup %3304 }
 0xbd3   :  { %v2429_v13 = vadd.f32 1.0, %v3305_v12 }
 0xbd4   :  { %3190 = vmatmul.mubr.f32.vlgmr.msra.gmra.mxu1 %v2435_v7 }
 0xbd5   :  { %3193 = vmatpush3.msra.mxu1 %v4314_v30  ;;  %3224 = vmatprep.mubr.msk.f32.mxu1 %vm3487_vm1, %v4505_v2 }
 0xbd6   :  { %3194 = vmatprep.subr.mxu1 %v4505_v2 }
 0xbd7   :  { %3195 = vmatpush3.msra.mxu1 %v4320_v18 }
 0xbd8   :  { %3196 = vmatprep.subr.mxu1 %v4505_v2 }
 0xbd9   :  { %3197 = vmatpush3.msra.mxu1 %v4324_v31  ;;  %v4535_v31 = vld [vmem:[#allocation41_spill] sm:$0xff] }
 0xbda   :  { %3198 = vmatprep.subr.mxu1 %v4505_v2 }
 0xbdb   :  { %3199 = vmatpush3.msra.mxu1 %v4328_v32 }
 0xbdc   :  { %3200 = vmatprep.subr.mxu1 %v4505_v2 }
 0xbdd   :  { %3201 = vmatpush3.msra.mxu1 %v4332_v33 }
 0xbde   :  { %3202 = vmatprep.subr.mxu1 %v4505_v2 }
 0xbdf   :  { %3203 = vmatpush3.msra.mxu1 %v4336_v34 }
 0xbe0   :  { %3204 = vmatprep.subr.mxu1 %v4505_v2 }
 0xbe1   :  { %3205 = vmatpush3.msra.mxu1 %v4340_v35 }
 0xbe2   :  { %3206 = vmatprep.subr.mxu1 %v4505_v2 }
 0xbe3   :  { %3207 = vmatpush3.msra.mxu1 %v4344_v36 }
 0xbe4   :  { %3208 = vmatprep.subr.mxu1 %v4505_v2 }
 0xbe5   :  { %3209 = vmatpush3.msra.mxu1 %v4348_v37 }
 0xbe6   :  { %3210 = vmatprep.subr.mxu1 %v4505_v2 }
 0xbe7   :  { %3211 = vmatpush3.msra.mxu1 %v4352_v47 }
 0xbe8   :  { %3212 = vmatprep.subr.mxu1 %v4505_v2 }
 0xbe9   :  { %3213 = vmatpush3.msra.mxu1 %v4356_v48 }
 0xbea   :  { %3214 = vmatprep.subr.mxu1 %v4505_v2 }
 0xbeb   :  { %3215 = vmatpush3.msra.mxu1 %v4360_v49 }
 0xbec   :  { %3216 = vmatprep.subr.mxu1 %v4505_v2 }
 0xbed   :  { %3217 = vmatpush3.msra.mxu1 %v4364_v50 }
 0xbee   :  { %3218 = vmatprep.subr.mxu1 %v4505_v2 }
 0xbef   :  { %3219 = vmatpush3.msra.mxu1 %v4368_v51 }
 0xbf0   :  { %3220 = vmatprep.subr.mxu1 %v4505_v2 }
 0xbf1   :  { %3221 = vmatpush3.msra.mxu1 %v4372_v52 }
 0xbf2   :  { %3222 = vmatprep.subr.mxu1 %v4505_v2 }
 0xbf3   :  { %3223 = vmatpush3.msra.mxu1 %v4376_v53 }
 0xc94   :  { %v2502_v5 = vpop.f32.mrf.mxu1 }
 0xc95   :  { %v2506_v44 = vadd.f32 %v2502_v5, %v4532_v4 }
 0xc96   :  { %v3191_v1 = vpop.f32.mrf.mxu1 }
 0xc97   :  { %3306 = vtanh.f32 %v2506_v44 }
 0xc98   :  { %3308 = vrcp.f32 %v2429_v13 }
 0xca4   :  { %v3307_v3 = vpop.eup %3306 }
 0xca5   :  { %v2508_v14 = vsub.f32 %v4382_v27, %v3307_v3  ;;  %v3309_v15 = vpop.eup %3308 }
 0xca7   :  { %v2509_v17 = vmul.f32 %v3309_v15, %v2508_v14 }
 0xca9   :  { %v2510_v42 = vadd.f32 %v3307_v3, %v2509_v17 }
 0xcab   :  { %2512 = vst [vmem:[#allocation12 + $0x30] sm:$0xff] %v2510_v42  ;;  %2581 = vmatmul.mubr.f32.vlgmr.msra.gmra.mxu0 %v2510_v42 }
 0xd6b   :  { %v2582_v2 = vpop.f32.mrf.mxu0 }
 0xd6c   :  { %v2587_v20 = vadd.f32 %v2582_v2, %v4533_v19 }
 0xd6d   :  { %v2584_v21 = vpop.f32.mrf.mxu0 }
 0xd6e   :  { %v2588_v23 = vadd.f32 %v2584_v21, %v4534_v22  ;;  %v2729_v28 = vmul.f32 -1.442695, %v2587_v20 }
 0xd70   :  { %v2730_v24 = vmul.f32 -1.442695, %v2588_v23 }
 0xd72   :  { %3310 = vpow2.f32 %v2730_v24 }
 0xd7f   :  { %v3311_v25 = vpop.eup %3310 }
 0xd80   :  { %v2596_v26 = vadd.f32 1.0, %v3311_v25 }
 0xd82   :  { %3312 = vrcp.f32 %v2596_v26 }
 0xd83   :  { %3314 = vpow2.f32 %v2729_v28 }
 0xd8f   :  { %v3313_v58 = vpop.eup %3312 }
 0xd90   :  { %v2601_v61 = vmul.f32 %v3313_v58, %v2510_v42  ;;  %v3315_v29 = vpop.eup %3314 }
 0xd91   :  { %v2595_v18 = vadd.f32 1.0, %v3315_v29 }
 0xd92   :  { %3225 = vmatmul.mubr.f32.vlgmr.msra.gmra.mxu1 %v2601_v61 }
 0xe52   :  { %v2668_v30 = vpop.f32.mrf.mxu1 }
 0xe53   :  { %v2672_v32 = vadd.f32 %v2668_v30, %v4535_v31 }
 0xe54   :  { %v3226_v33 = vpop.f32.mrf.mxu1 }
 0xe55   :  { %3316 = vtanh.f32 %v2672_v32 }
 0xe56   :  { %3318 = vrcp.f32 %v2595_v18 }
 0xe62   :  { %v3317_v34 = vpop.eup %3316 }
 0xe63   :  { %v2674_v35 = vsub.f32 %v2510_v42, %v3317_v34  ;;  %v3319_v36 = vpop.eup %3318 }
 0xe65   :  { %v2675_v37 = vmul.f32 %v3319_v36, %v2674_v35 }
 0xe67   :  { %v2676_v47 = vadd.f32 %v3317_v34, %v2675_v37 }
 0xe69   :  { %2678 = vst [vmem:[#allocation12 + $0x38] sm:$0xff] %v2676_v47 }
 0xe6a   :  { %3459 = shalt.err (!%p3456_p10)
}
 0xe6b   :  { %2691 = dma.vmem_to_hbm [thread:$0]  %s2686_s17, 1024, %s4470_s5, [#allocation6], %s3480_s28, %s3480_s28, %s3481_s29  }
 0xe6c   :  { %3474 = dma.done.wait [#allocation6], 1024  }
 0xe6d   :  { %3475 = vsyncadd [#allocation6], 4294966272 }
 0xe6e   :  { %2695 = vsyncpa [#allocation5], 1 }
 0xe6f   :  { %2696 = vsyncpa [#allocation8], 1 }
 0xe70   :  { %2697 = vsyncpa [#allocation11], 1 }
 0xe71   :  { %2698 = vsyncpa [#allocation6], 1 }

</bundles_post_ra>
